<compile_context>
chip_gen: v6e
topology: v6e:2x2x1
jax: 0.10.0
libtpu: 0.0.40
codegen_flags: <defaults>
</compile_context>

<pallas_src>
import functools

import jax
import jax.numpy as jnp
from jax import lax
from jax.experimental import pallas as pl
from jax.experimental.pallas import tpu as pltpu

MXU_BF16 = True  # bf16 MXU operands + f32 accumulation (see precision note)


# ----------------------------------------------------------------------------
# Tiling heuristics
# ----------------------------------------------------------------------------
def _pick_row_tile(ho, batch):
    """Largest row tile th that (a) divides Ho, (b) is a multiple of 8 (sublane
    aligned) or equals Ho, and (c) still leaves >= 8 grid steps when possible
    (pipelining + v7x megacore sharding)."""
    cands = [d for d in range(8, min(ho, 64) + 1, 8) if ho % d == 0]
    if not cands:
        return ho
    for d in sorted(cands, reverse=True):
        if batch * (ho // d) >= 8:
            return d
    return min(cands)  # otherwise maximize the number of grid steps


def _pick_group(wo):
    """Largest width group Gw <= 32 dividing Wo.  4*Gw == 128 keeps every
    output store a full aligned vreg row; Gw also bounds MXU redundancy."""
    return max(d for d in range(1, min(wo, 32) + 1) if wo % d == 0)


# ----------------------------------------------------------------------------
# Fused conv3x3/s3 + pixel-shuffle kernel
# ----------------------------------------------------------------------------
def _fused_conv_shuffle_kernel(x_ref, w_ref, b_ref, o_ref, *, wo, gw, w_eff):
    # x_ref : (1, 3, th, 3*w_eff) f32, lane index = ky*w_eff + 3*w + kx
    # w_ref : (3, 9*gw, 48*gw)    banded weight, one slab per input channel:
    #                             K = (ky, w_loc, kx), N = (c, a1, w_loc, a2)
    # b_ref : (1, 48*gw)          f32 bias, same N ordering
    # o_ref : (1, 3, th, 16*wo)   f32, lane index = a1*4*wo + 4*w + a2
    n_groups = wo // gw
    cdt = w_ref.dtype
    xs = [x_ref[0, ci].astype(cdt) for ci in range(3)]   # 3 x (th, 3*w_eff)
    bias = b_ref[...]                                    # (1, 48*gw)

    for g in range(n_groups):                            # static unroll
        if n_groups == 1:
            lhs = xs                                     # already (th, 9*gw)
        else:
            base = 3 * g * gw
            lhs = [jnp.concatenate(
                       [xs[ci][:, ky * w_eff + base: ky * w_eff + base + 3 * gw]
                        for ky in range(3)], axis=-1)    # (th, 9*gw)
                   for ci in range(3)]
        acc = jnp.dot(lhs[0], w_ref[0], preferred_element_type=jnp.float32)
        acc = acc + jnp.dot(lhs[1], w_ref[1], preferred_element_type=jnp.float32)
        acc = acc + jnp.dot(lhs[2], w_ref[2], preferred_element_type=jnp.float32)
        acc = acc + bias                                 # (th, 48*gw), f32

        # Scatter to the (already pixel-shuffled) output layout: one dense,
        # 128-lane-aligned store per (c, a1).
        for c in range(3):
            for a1 in range(4):
                src = acc[:, (c * 4 + a1) * 4 * gw:(c * 4 + a1 + 1) * 4 * gw]
                dst = a1 * 4 * wo + g * 4 * gw
                o_ref[0, c, :, dst:dst + 4 * gw] = src.astype(o_ref.dtype)


# ----------------------------------------------------------------------------
# Module forward
# ----------------------------------------------------------------------------
def cs_upsample_x1_33_forward(params, x_nchw):
    """x: (B, 3, H, W) f32 NCHW  ->  (B, 3, 4*Ho, 4*Wo) f32 NCHW."""
    w, b = params["conv1_w"], params["conv1_b"]          # (48,3,3,3), (48,)
    B, C, H, W = x_nchw.shape
    assert C == 3
    ho, wo = (H - 3) // 3 + 1, (W - 3) // 3 + 1           # VALID, stride 3
    w_eff = 3 * wo
    x = x_nchw[:, :, :3 * ho, :w_eff]                     # conv drops remainder
    # Free fold: (B,3,3*ho,w_eff) -> (B,3,ho,3*w_eff); lane = ky*w_eff + 3*w + kx
    x_fold = x.reshape(B, 3, ho, 3 * w_eff)

    th = _pick_row_tile(ho, B)
    gw = _pick_group(wo)

    # Banded block weight (ci, K=9*gw, N=48*gw):
    #   Wbig[ci, (ky,wl,kx), (c,a1,wl',a2)] = w[c*16+a1*4+a2, ci, ky, kx] * (wl==wl')
    wr = w.astype(jnp.float32).reshape(3, 4, 4, 3, 3, 3)  # (c,a1,a2,ci,ky,kx)
    eye = jnp.eye(gw, dtype=jnp.float32)
    w_big = jnp.einsum('cpqikx,wv->ikwxcpvq', wr, eye).reshape(3, 9 * gw, 48 * gw)
    if MXU_BF16:
        w_big = w_big.astype(jnp.bfloat16)
    b_big = jnp.broadcast_to(b.astype(jnp.float32).reshape(3, 4, 1, 4),
                             (3, 4, gw, 4)).reshape(1, 48 * gw)

    grid = (B, ho // th)
    flops = 2 * B * ho * wo * gw * 1296                   # banded-matmul MACs
    w_bytes = w_big.size * (2 if MXU_BF16 else 4)
    bytes_accessed = (x_fold.size * 4 + w_bytes + b_big.size * 4
                      + B * 3 * ho * 16 * wo * 4)

    kernel = functools.partial(_fused_conv_shuffle_kernel,
                               wo=wo, gw=gw, w_eff=w_eff)
    out_fold = pl.pallas_call(
        kernel,
        out_shape=jax.ShapeDtypeStruct((B, 3, ho, 16 * wo), jnp.float32),
        grid=grid,
        in_specs=[
            # activations: one (batch, row-tile) block per grid step
            pl.BlockSpec((1, 3, th, 3 * w_eff), lambda bi, hi: (bi, 0, hi, 0)),
            # banded weight + bias: resident (constant index -> fetched once)
            pl.BlockSpec((3, 9 * gw, 48 * gw), lambda bi, hi: (0, 0, 0)),
            pl.BlockSpec((1, 48 * gw), lambda bi, hi: (0, 0)),
        ],
        out_specs=pl.BlockSpec((1, 3, th, 16 * wo), lambda bi, hi: (bi, 0, hi, 0)),
        compiler_params=pltpu.CompilerParams(
            dimension_semantics=("parallel", "parallel")),
        cost_estimate=pl.CostEstimate(flops=flops, transcendentals=0,
                                      bytes_accessed=bytes_accessed),
    )(x_fold, w_big, b_big)

    # Free unfold: (B,3,ho,16*wo) -> (B,3,4*ho,4*wo)
    return out_fold.reshape(B, 3, 4 * ho, 4 * wo)


# ----------------------------------------------------------------------------
# Reference (pure JAX) and parameter init (PyTorch uniform(+-1/sqrt(fan_in)))
# ----------------------------------------------------------------------------
def _reference(params, x):
    y = lax.conv_general_dilated(
        x, params["conv1_w"], window_strides=(3, 3), padding="VALID",
        dimension_numbers=("NCHW", "OIHW", "NCHW"))
    y = y + params["conv1_b"].reshape(1, -1, 1, 1)
    B, _, Ho, Wo = y.shape
    y = y.reshape(B, 3, 4, 4, Ho, Wo)
    y = jnp.transpose(y, (0, 1, 4, 2, 5, 3)).reshape(B, 3, Ho * 4, Wo * 4)
    return y


def init_params(key):
    kw, kb = jax.random.split(key)
    fan_in = 3 * 3 * 3
    bound = fan_in ** -0.5
    w = jax.random.uniform(kw, (48, 3, 3, 3), jnp.float32, -bound, bound)
    b = jax.random.uniform(kb, (48,), jnp.float32, -bound, bound)
    return {"conv1_w": w, "conv1_b": b}


# ----------------------------------------------------------------------------
if __name__ == "__main__":
    key = jax.random.PRNGKey(0)
    kp, kx = jax.random.split(key)
    params = init_params(kp)

    # Small NCHW input; spatial multiple of 3 (stride-3 valid conv).
    # 96x96 -> Ho=Wo=32 -> grid (2, 4) row tiles, 4*Wo = 128 lane-dense output.
    x = jax.random.uniform(kx, (2, 3, 96, 96), jnp.float32)

    fwd = jax.jit(cs_upsample_x1_33_forward)
    out = fwd(params, x)
    jax.block_until_ready(out)

    assert out.shape == (2, 3, 128, 128), out.shape

    ref = _reference(params, x)
    err = float(jnp.max(jnp.abs(out - ref)))
    # bf16 MXU operands with f32 accumulation: expected |err| is a few 1e-3.
    assert err < 2e-2, f"max abs err {err}"

    print("KERNEL_OK")
</pallas_src>

<mosaic_0001>
module attributes {stable_mosaic.version = 11 : i64} {
  func.func @_fused_conv_shuffle_kernel(%arg0: i32, %arg1: i32, %arg2: memref<1x3x8x288xf32, #tpu.memory_space<vmem>>, %arg3: memref<3x288x1536xbf16, #tpu.memory_space<vmem>>, %arg4: memref<1x1536xf32, #tpu.memory_space<vmem>>, %arg5: memref<1x3x8x512xf32, #tpu.memory_space<vmem>>) attributes {dimension_semantics = [#tpu.dimension_semantics<parallel>, #tpu.dimension_semantics<parallel>], iteration_bounds = array<i64: 2, 4>, scalar_prefetch = 0 : i64, scratch_operands = 0 : i64, tpu.core_type = #tpu.core_type<tc>, window_params = [{transform_indices = @transform_0, window_bounds = array<i64: 1, 3, 8, 288>}, {pipeline_mode = #tpu.pipeline_mode<synchronous>, transform_indices = @transform_1, window_bounds = array<i64: 3, 288, 1536>}, {pipeline_mode = #tpu.pipeline_mode<synchronous>, transform_indices = @transform_2, window_bounds = array<i64: 1, 1536>}, {transform_indices = @transform_3, window_bounds = array<i64: 1, 3, 8, 512>}]} {
    %c0 = arith.constant 0 : index
    %c0_0 = arith.constant 0 : index
    %c0_1 = arith.constant 0 : index
    %c0_2 = arith.constant 0 : index
    %0 = vector.load %arg2[%c0, %c0_0, %c0_1, %c0_2] : memref<1x3x8x288xf32, #tpu.memory_space<vmem>>, vector<1x1x8x288xf32>
    %1 = vector.shape_cast %0 : vector<1x1x8x288xf32> to vector<8x288xf32>
    %2 = arith.truncf %1 : vector<8x288xf32> to vector<8x288xbf16>
    %c0_3 = arith.constant 0 : index
    %c1 = arith.constant 1 : index
    %c0_4 = arith.constant 0 : index
    %c0_5 = arith.constant 0 : index
    %3 = vector.load %arg2[%c0_3, %c1, %c0_4, %c0_5] : memref<1x3x8x288xf32, #tpu.memory_space<vmem>>, vector<1x1x8x288xf32>
    %4 = vector.shape_cast %3 : vector<1x1x8x288xf32> to vector<8x288xf32>
    %5 = arith.truncf %4 : vector<8x288xf32> to vector<8x288xbf16>
    %c0_6 = arith.constant 0 : index
    %c2 = arith.constant 2 : index
    %c0_7 = arith.constant 0 : index
    %c0_8 = arith.constant 0 : index
    %6 = vector.load %arg2[%c0_6, %c2, %c0_7, %c0_8] : memref<1x3x8x288xf32, #tpu.memory_space<vmem>>, vector<1x1x8x288xf32>
    %7 = vector.shape_cast %6 : vector<1x1x8x288xf32> to vector<8x288xf32>
    %8 = arith.truncf %7 : vector<8x288xf32> to vector<8x288xbf16>
    %c0_9 = arith.constant 0 : index
    %c0_10 = arith.constant 0 : index
    %9 = vector.load %arg4[%c0_9, %c0_10] : memref<1x1536xf32, #tpu.memory_space<vmem>>, vector<1x1536xf32>
    %c0_11 = arith.constant 0 : index
    %c0_12 = arith.constant 0 : index
    %c0_13 = arith.constant 0 : index
    %10 = vector.load %arg3[%c0_11, %c0_12, %c0_13] : memref<3x288x1536xbf16, #tpu.memory_space<vmem>>, vector<1x288x1536xbf16>
    %11 = vector.shape_cast %10 : vector<1x288x1536xbf16> to vector<288x1536xbf16>
    %cst = arith.constant dense<0.000000e+00> : vector<8x1536xf32>
    %12 = tpu.matmul %2, %11, %cst {dimension_numbers = #tpu.dot_dimension_numbers<[1], [0], [0], [1], [0, 0, 1, 1], [], []>} : vector<8x288xbf16>, vector<288x1536xbf16>, vector<8x1536xf32> -> vector<8x1536xf32>
    %c1_14 = arith.constant 1 : index
    %c0_15 = arith.constant 0 : index
    %c0_16 = arith.constant 0 : index
    %13 = vector.load %arg3[%c1_14, %c0_15, %c0_16] : memref<3x288x1536xbf16, #tpu.memory_space<vmem>>, vector<1x288x1536xbf16>
    %14 = vector.shape_cast %13 : vector<1x288x1536xbf16> to vector<288x1536xbf16>
    %cst_17 = arith.constant dense<0.000000e+00> : vector<8x1536xf32>
    %15 = tpu.matmul %5, %14, %cst_17 {dimension_numbers = #tpu.dot_dimension_numbers<[1], [0], [0], [1], [0, 0, 1, 1], [], []>} : vector<8x288xbf16>, vector<288x1536xbf16>, vector<8x1536xf32> -> vector<8x1536xf32>
    %16 = arith.addf %12, %15 : vector<8x1536xf32>
    %c2_18 = arith.constant 2 : index
    %c0_19 = arith.constant 0 : index
    %c0_20 = arith.constant 0 : index
    %17 = vector.load %arg3[%c2_18, %c0_19, %c0_20] : memref<3x288x1536xbf16, #tpu.memory_space<vmem>>, vector<1x288x1536xbf16>
    %18 = vector.shape_cast %17 : vector<1x288x1536xbf16> to vector<288x1536xbf16>
    %cst_21 = arith.constant dense<0.000000e+00> : vector<8x1536xf32>
    %19 = tpu.matmul %8, %18, %cst_21 {dimension_numbers = #tpu.dot_dimension_numbers<[1], [0], [0], [1], [0, 0, 1, 1], [], []>} : vector<8x288xbf16>, vector<288x1536xbf16>, vector<8x1536xf32> -> vector<8x1536xf32>
    %20 = arith.addf %16, %19 : vector<8x1536xf32>
    %21 = vector.broadcast %9 : vector<1x1536xf32> to vector<8x1536xf32>
    %22 = arith.addf %20, %21 : vector<8x1536xf32>
    %23 = vector.extract_strided_slice %22 {offsets = [0, 0], sizes = [8, 128], strides = [1, 1]} : vector<8x1536xf32> to vector<8x128xf32>
    %c0_22 = arith.constant 0 : index
    %c0_23 = arith.constant 0 : index
    %c0_24 = arith.constant 0 : index
    %c0_25 = arith.constant 0 : index
    %24 = vector.load %arg5[%c0_22, %c0_23, %c0_24, %c0_25] : memref<1x3x8x512xf32, #tpu.memory_space<vmem>>, vector<1x1x8x128xf32>
    %25 = vector.shape_cast %24 : vector<1x1x8x128xf32> to vector<8x128xf32>
    %26 = vector.shape_cast %23 : vector<8x128xf32> to vector<1x1x8x128xf32>
    tpu.vector_store %arg5[%c0_22, %c0_23, %c0_24, %c0_25], %26 {strides = array<i32>} : memref<1x3x8x512xf32, #tpu.memory_space<vmem>>, vector<1x1x8x128xf32>,
    %27 = vector.extract_strided_slice %22 {offsets = [0, 128], sizes = [8, 128], strides = [1, 1]} : vector<8x1536xf32> to vector<8x128xf32>
    %c0_26 = arith.constant 0 : index
    %c0_27 = arith.constant 0 : index
    %c0_28 = arith.constant 0 : index
    %c128 = arith.constant 128 : index
    %28 = vector.load %arg5[%c0_26, %c0_27, %c0_28, %c128] : memref<1x3x8x512xf32, #tpu.memory_space<vmem>>, vector<1x1x8x128xf32>
    %29 = vector.shape_cast %28 : vector<1x1x8x128xf32> to vector<8x128xf32>
    %30 = vector.shape_cast %27 : vector<8x128xf32> to vector<1x1x8x128xf32>
    tpu.vector_store %arg5[%c0_26, %c0_27, %c0_28, %c128], %30 {strides = array<i32>} : memref<1x3x8x512xf32, #tpu.memory_space<vmem>>, vector<1x1x8x128xf32>,
    %31 = vector.extract_strided_slice %22 {offsets = [0, 256], sizes = [8, 128], strides = [1, 1]} : vector<8x1536xf32> to vector<8x128xf32>
    %c0_29 = arith.constant 0 : index
    %c0_30 = arith.constant 0 : index
    %c0_31 = arith.constant 0 : index
    %c256 = arith.constant 256 : index
    %32 = vector.load %arg5[%c0_29, %c0_30, %c0_31, %c256] : memref<1x3x8x512xf32, #tpu.memory_space<vmem>>, vector<1x1x8x128xf32>
    %33 = vector.shape_cast %32 : vector<1x1x8x128xf32> to vector<8x128xf32>
    %34 = vector.shape_cast %31 : vector<8x128xf32> to vector<1x1x8x128xf32>
    tpu.vector_store %arg5[%c0_29, %c0_30, %c0_31, %c256], %34 {strides = array<i32>} : memref<1x3x8x512xf32, #tpu.memory_space<vmem>>, vector<1x1x8x128xf32>,
    %35 = vector.extract_strided_slice %22 {offsets = [0, 384], sizes = [8, 128], strides = [1, 1]} : vector<8x1536xf32> to vector<8x128xf32>
    %c0_32 = arith.constant 0 : index
    %c0_33 = arith.constant 0 : index
    %c0_34 = arith.constant 0 : index
    %c384 = arith.constant 384 : index
    %36 = vector.load %arg5[%c0_32, %c0_33, %c0_34, %c384] : memref<1x3x8x512xf32, #tpu.memory_space<vmem>>, vector<1x1x8x128xf32>
    %37 = vector.shape_cast %36 : vector<1x1x8x128xf32> to vector<8x128xf32>
    %38 = vector.shape_cast %35 : vector<8x128xf32> to vector<1x1x8x128xf32>
    tpu.vector_store %arg5[%c0_32, %c0_33, %c0_34, %c384], %38 {strides = array<i32>} : memref<1x3x8x512xf32, #tpu.memory_space<vmem>>, vector<1x1x8x128xf32>,
    %39 = vector.extract_strided_slice %22 {offsets = [0, 512], sizes = [8, 128], strides = [1, 1]} : vector<8x1536xf32> to vector<8x128xf32>
    %c0_35 = arith.constant 0 : index
    %c1_36 = arith.constant 1 : index
    %c0_37 = arith.constant 0 : index
    %c0_38 = arith.constant 0 : index
    %40 = vector.load %arg5[%c0_35, %c1_36, %c0_37, %c0_38] : memref<1x3x8x512xf32, #tpu.memory_space<vmem>>, vector<1x1x8x128xf32>
    %41 = vector.shape_cast %40 : vector<1x1x8x128xf32> to vector<8x128xf32>
    %42 = vector.shape_cast %39 : vector<8x128xf32> to vector<1x1x8x128xf32>
    tpu.vector_store %arg5[%c0_35, %c1_36, %c0_37, %c0_38], %42 {strides = array<i32>} : memref<1x3x8x512xf32, #tpu.memory_space<vmem>>, vector<1x1x8x128xf32>,
    %43 = vector.extract_strided_slice %22 {offsets = [0, 640], sizes = [8, 128], strides = [1, 1]} : vector<8x1536xf32> to vector<8x128xf32>
    %c0_39 = arith.constant 0 : index
    %c1_40 = arith.constant 1 : index
    %c0_41 = arith.constant 0 : index
    %c128_42 = arith.constant 128 : index
    %44 = vector.load %arg5[%c0_39, %c1_40, %c0_41, %c128_42] : memref<1x3x8x512xf32, #tpu.memory_space<vmem>>, vector<1x1x8x128xf32>
    %45 = vector.shape_cast %44 : vector<1x1x8x128xf32> to vector<8x128xf32>
    %46 = vector.shape_cast %43 : vector<8x128xf32> to vector<1x1x8x128xf32>
    tpu.vector_store %arg5[%c0_39, %c1_40, %c0_41, %c128_42], %46 {strides = array<i32>} : memref<1x3x8x512xf32, #tpu.memory_space<vmem>>, vector<1x1x8x128xf32>,
    %47 = vector.extract_strided_slice %22 {offsets = [0, 768], sizes = [8, 128], strides = [1, 1]} : vector<8x1536xf32> to vector<8x128xf32>
    %c0_43 = arith.constant 0 : index
    %c1_44 = arith.constant 1 : index
    %c0_45 = arith.constant 0 : index
    %c256_46 = arith.constant 256 : index
    %48 = vector.load %arg5[%c0_43, %c1_44, %c0_45, %c256_46] : memref<1x3x8x512xf32, #tpu.memory_space<vmem>>, vector<1x1x8x128xf32>
    %49 = vector.shape_cast %48 : vector<1x1x8x128xf32> to vector<8x128xf32>
    %50 = vector.shape_cast %47 : vector<8x128xf32> to vector<1x1x8x128xf32>
    tpu.vector_store %arg5[%c0_43, %c1_44, %c0_45, %c256_46], %50 {strides = array<i32>} : memref<1x3x8x512xf32, #tpu.memory_space<vmem>>, vector<1x1x8x128xf32>,
    %51 = vector.extract_strided_slice %22 {offsets = [0, 896], sizes = [8, 128], strides = [1, 1]} : vector<8x1536xf32> to vector<8x128xf32>
    %c0_47 = arith.constant 0 : index
    %c1_48 = arith.constant 1 : index
    %c0_49 = arith.constant 0 : index
    %c384_50 = arith.constant 384 : index
    %52 = vector.load %arg5[%c0_47, %c1_48, %c0_49, %c384_50] : memref<1x3x8x512xf32, #tpu.memory_space<vmem>>, vector<1x1x8x128xf32>
    %53 = vector.shape_cast %52 : vector<1x1x8x128xf32> to vector<8x128xf32>
    %54 = vector.shape_cast %51 : vector<8x128xf32> to vector<1x1x8x128xf32>
    tpu.vector_store %arg5[%c0_47, %c1_48, %c0_49, %c384_50], %54 {strides = array<i32>} : memref<1x3x8x512xf32, #tpu.memory_space<vmem>>, vector<1x1x8x128xf32>,
    %55 = vector.extract_strided_slice %22 {offsets = [0, 1024], sizes = [8, 128], strides = [1, 1]} : vector<8x1536xf32> to vector<8x128xf32>
    %c0_51 = arith.constant 0 : index
    %c2_52 = arith.constant 2 : index
    %c0_53 = arith.constant 0 : index
    %c0_54 = arith.constant 0 : index
    %56 = vector.load %arg5[%c0_51, %c2_52, %c0_53, %c0_54] : memref<1x3x8x512xf32, #tpu.memory_space<vmem>>, vector<1x1x8x128xf32>
    %57 = vector.shape_cast %56 : vector<1x1x8x128xf32> to vector<8x128xf32>
    %58 = vector.shape_cast %55 : vector<8x128xf32> to vector<1x1x8x128xf32>
    tpu.vector_store %arg5[%c0_51, %c2_52, %c0_53, %c0_54], %58 {strides = array<i32>} : memref<1x3x8x512xf32, #tpu.memory_space<vmem>>, vector<1x1x8x128xf32>,
    %59 = vector.extract_strided_slice %22 {offsets = [0, 1152], sizes = [8, 128], strides = [1, 1]} : vector<8x1536xf32> to vector<8x128xf32>
    %c0_55 = arith.constant 0 : index
    %c2_56 = arith.constant 2 : index
    %c0_57 = arith.constant 0 : index
    %c128_58 = arith.constant 128 : index
    %60 = vector.load %arg5[%c0_55, %c2_56, %c0_57, %c128_58] : memref<1x3x8x512xf32, #tpu.memory_space<vmem>>, vector<1x1x8x128xf32>
    %61 = vector.shape_cast %60 : vector<1x1x8x128xf32> to vector<8x128xf32>
    %62 = vector.shape_cast %59 : vector<8x128xf32> to vector<1x1x8x128xf32>
    tpu.vector_store %arg5[%c0_55, %c2_56, %c0_57, %c128_58], %62 {strides = array<i32>} : memref<1x3x8x512xf32, #tpu.memory_space<vmem>>, vector<1x1x8x128xf32>,
    %63 = vector.extract_strided_slice %22 {offsets = [0, 1280], sizes = [8, 128], strides = [1, 1]} : vector<8x1536xf32> to vector<8x128xf32>
    %c0_59 = arith.constant 0 : index
    %c2_60 = arith.constant 2 : index
    %c0_61 = arith.constant 0 : index
    %c256_62 = arith.constant 256 : index
    %64 = vector.load %arg5[%c0_59, %c2_60, %c0_61, %c256_62] : memref<1x3x8x512xf32, #tpu.memory_space<vmem>>, vector<1x1x8x128xf32>
    %65 = vector.shape_cast %64 : vector<1x1x8x128xf32> to vector<8x128xf32>
    %66 = vector.shape_cast %63 : vector<8x128xf32> to vector<1x1x8x128xf32>
    tpu.vector_store %arg5[%c0_59, %c2_60, %c0_61, %c256_62], %66 {strides = array<i32>} : memref<1x3x8x512xf32, #tpu.memory_space<vmem>>, vector<1x1x8x128xf32>,
    %67 = vector.extract_strided_slice %22 {offsets = [0, 1408], sizes = [8, 128], strides = [1, 1]} : vector<8x1536xf32> to vector<8x128xf32>
    %c0_63 = arith.constant 0 : index
    %c2_64 = arith.constant 2 : index
    %c0_65 = arith.constant 0 : index
    %c384_66 = arith.constant 384 : index
    %68 = vector.load %arg5[%c0_63, %c2_64, %c0_65, %c384_66] : memref<1x3x8x512xf32, #tpu.memory_space<vmem>>, vector<1x1x8x128xf32>
    %69 = vector.shape_cast %68 : vector<1x1x8x128xf32> to vector<8x128xf32>
    %70 = vector.shape_cast %67 : vector<8x128xf32> to vector<1x1x8x128xf32>
    tpu.vector_store %arg5[%c0_63, %c2_64, %c0_65, %c384_66], %70 {strides = array<i32>} : memref<1x3x8x512xf32, #tpu.memory_space<vmem>>, vector<1x1x8x128xf32>,
    return
  }
  func.func @transform_0(%arg0: i32, %arg1: i32) -> (i32, i32, i32, i32) {
    %c0_i32 = arith.constant 0 : i32
    %c0_i32_0 = arith.constant 0 : i32
    %c0_i32_1 = arith.constant 0 : i32
    return %arg0, %c0_i32, %arg1, %c0_i32_0 : i32, i32, i32, i32
  }
  func.func @transform_1(%arg0: i32, %arg1: i32) -> (i32, i32, i32) {
    %c0_i32 = arith.constant 0 : i32
    %c0_i32_0 = arith.constant 0 : i32
    %c0_i32_1 = arith.constant 0 : i32
    %c0_i32_2 = arith.constant 0 : i32
    return %c0_i32, %c0_i32_0, %c0_i32_1 : i32, i32, i32
  }
  func.func @transform_2(%arg0: i32, %arg1: i32) -> (i32, i32) {
    %c0_i32 = arith.constant 0 : i32
    %c0_i32_0 = arith.constant 0 : i32
    %c0_i32_1 = arith.constant 0 : i32
    return %c0_i32, %c0_i32_0 : i32, i32
  }
  func.func @transform_3(%arg0: i32, %arg1: i32) -> (i32, i32, i32, i32) {
    %c0_i32 = arith.constant 0 : i32
    %c0_i32_0 = arith.constant 0 : i32
    %c0_i32_1 = arith.constant 0 : i32
    return %arg0, %c0_i32, %arg1, %c0_i32_0 : i32, i32, i32, i32
  }
}

</mosaic_0001>

<bundles_post_ra>
// kernel: cs_upsample_x1_33_forward.1
= control target key start
LH: loop header
LB: loop body
LE: loop exit
PB: predicated region body
PF: predicated region fallthrough
CT: control target
= control target key end

     0   :  { %s8077_s12 = smov 0   ;;  %s8079_s13 = smov 0   ;;  %s10416_s0 = inlined_call_operand.vmem [shape: f32[2,3,32,288], index: 0, kind: input, shape index: {}]   ;;  %s10417_s1 = inlined_call_operand.vmem [shape: bf16[3,288,1536], index: 1, kind: input, shape index: {}]   ;;  %s10418_s2 = inlined_call_operand.vmem [shape: f32[1,1536], index: 2, kind: input, shape index: {}]   ;;  %s10419_s3 = inlined_call_operand.vmem [shape: f32[2,3,32,512], index: 3, kind: output, shape index: {}]  }
   0x1   :  { %s8081_s14 = smov 0   ;;  %s8083_s15 = smov 0  }
   0x2   :  { %s8085_s16 = smov 0   ;;  %s8087_s17 = smov 0  }
   0x3   :  { %s8089_s18 = smov 0  }
   0x4 LB: > { %s22_s19 = sadd.s32 1, %s8046_s16  ;;  %s25_s20 = sadd.s32 1, %s8050_s17  ;;  %s8054_s18 = sphi %s8089_s18, %s13_s18   ;;  %s8050_s17 = sphi %s8087_s17, %s10426_s17   ;;  %s8046_s16 = sphi %s8085_s16, %s10425_s16   ;;  %s8042_s15 = sphi %s8083_s15, %s10424_s15   ;;  %s8038_s14 = sphi %s8081_s14, %s10423_s14   ;;  %s8034_s13 = sphi %s8079_s13, %s10422_s13   ;;  %s8030_s12 = sphi %s8077_s12, %s10421_s12  }
   0x5   : > { %p23_p0 = scmp.ge.s32.totalorder %s22_s19, 4  ;;  %s5843_s21 = sadd.s32 4294967295, %s8054_s18  }
   0x6   : > { %p41_p1 = scmp.ne.s32.totalorder %s8034_s13, %s8030_s12  ;;  %p42_p2 = scmp.eq.s32.totalorder %s8054_s18, 0 }
   0x7   : > { %s10428_s19 = smov (%p23_p0, %s22_s19), 0  ;;  %s10430_s20 = smov (!%p23_p0, %s25_s20), %s8050_s17 }
   0x8   : > { %p27_p3 = scmp.ge.s32.totalorder %s10430_s20, 2  ;;  %p115_p4 = scmp.eq.s32.totalorder %s5843_s21, 7 }
   0x9   : > { %s30_s22 = ssub.s32 %s8046_s16, %s10428_s19  ;;  %p43_p5 = por %p42_p2, %p41_p1 }
   0xa   : > { %s10432_s20 = smov (%p27_p3, %s10430_s20), 0  ;;  %p8125_p6 = por %p115_p4, %p41_p1 }
   0xb   : > { %s29_s24 = ssub.s32 %s8050_s17, %s10432_s20  ;;  %s34_s26 = sadd.s32 1, %s8034_s13 }
   0xc   : > { %s31_s25 = sor.u32 %s30_s22, %s29_s24  ;;  %p5846_p8 = scmp.ge.s32.totalorder %s8054_s18, 8 }
   0xd   : > { %p32_p7 = scmp.eq.s32.totalorder %s31_s25, 0 }
   0xe   : > { %143 = sbr.rel (%p5846_p8) target bundleno = 33 (0x21), region = 24 }
   0xf   : > { %s8133_s27 = scalar_select %p32_p7, %s8034_s13, %s34_s26  }
  0x13   : > { %146 = sbr.rel (!%p43_p5) target bundleno = 33 (0x21), region = 28  ;;  %s148_s28 = sand.u32 (%p43_p5), 1, %s8034_s13  }
  0x14   : > { %s6966_s29 = smul.u32 (%p43_p5), 3, %s8046_s16 }
  0x15   : > { %s6965_s30 = smul.u32 (%p43_p5), 72, %s148_s28 }
  0x16   : > { %s6967_s4 = smul.u32 (%p43_p5), 36, %s8050_s17 }
  0x17   : > { %s150_s10 = scalar_lea.vmem (%p43_p5), [#allocation2], %s6965_s30 }
  0x18   : > { %s153_s5 = sadd.s32 %s6967_s4, %s6966_s29 }
  0x19   : > { %s5847_s6 = sshll.u32 %s153_s5, 3 }
  0x1a   : > { %s155_s9 = scalar_lea.vmem %s10416_s0, %s5847_s6 }
  0x1b   : > { %v168_v0 = vld [vmem:[%s155_s9] sm:$0xff]  ;;  %v170_v1 = vld [vmem:[%s155_s9 + $0x8] sm:$0xff]  ;;  %v172_v2 = vld [vmem:[%s155_s9 + $0x10] sm:$0xff] }
  0x1c   : > { %169 = vst [vmem:[%s150_s10] sm:$0xff] %v168_v0  ;;  %171 = vst [vmem:[%s150_s10 + $0x8] sm:$0xff] %v170_v1  ;;  %v174_v3 = vld [vmem:[%s155_s9 + $0x60] sm:$0xff]  ;;  %v176_v4 = vld [vmem:[%s155_s9 + $0x68] sm:$0xff] }
  0x1d   : > { %173 = vst [vmem:[%s150_s10 + $0x10] sm:$0xff] %v172_v2  ;;  %v178_v5 = vld [vmem:[%s155_s9 + $0x70] sm:$0xff]  ;;  %175 = vst [vmem:[%s150_s10 + $0x18] sm:$0xff] %v174_v3  ;;  %v180_v6 = vld [vmem:[%s155_s9 + $0xc0] sm:$0xff] }
  0x1e   : > { %177 = vst [vmem:[%s150_s10 + $0x20] sm:$0xff] %v176_v4  ;;  %179 = vst [vmem:[%s150_s10 + $0x28] sm:$0xff] %v178_v5  ;;  %v182_v7 = vld [vmem:[%s155_s9 + $0xc8] sm:$0xff]  ;;  %v184_v8 = vld [vmem:[%s155_s9 + $0xd0] sm:$0xff] }
  0x1f   : > { %181 = vst [vmem:[%s150_s10 + $0x30] sm:$0xff] %v180_v6  ;;  %183 = vst [vmem:[%s150_s10 + $0x38] sm:$0xff] %v182_v7 }
  0x20   : > { %185 = vst [vmem:[%s150_s10 + $0x40] sm:$0xff] %v184_v8 }
  0x21 PF: > { %p5848_p9 = scmp.ge.s32.totalorder %s8054_s18, 1  ;;  %p190_p10 = scmp.lt.s32.totalorder %s8054_s18, 9 }
  0x23   : > { %p191_p11 = pnand %p5848_p9, %p190_p10 }
  0x24   : > { %s197_s22 = sand.u32 (!%p191_p11), 1, %s8030_s12  }
  0x25   : > { %194 = sbr.rel (%p191_p11) target bundleno = 902 (0x386), region = 51 }
  0x26   : > { %s6968_s26 = smul.u32 (!%p191_p11), 72, %s197_s22 }
  0x28   : > { %s8175_s28 = scalar_lea.vmem (!%p191_p11), [#allocation2], %s6968_s26 }
  0x2a   : > { %v7028_v9 = vld [vmem:[%s10417_s1 + $0x964] ss:$48 sps:$4 sm:$0xff]   ;;  %v8056_v11 = vmov 0   ;;  %v7032_v12 = vld [vmem:[%s10417_s1 + $0x960] ss:$48 sps:$4 sm:$0xff]   ;;  %vm1755_vm0 = vcmask 261120  }
  0x2b   : > { %v7030_v10 = vld [vmem:[%s10417_s1 + $0xd24] ss:$48 sps:$4 sm:$0xff]   ;;  %1832 = vmatprep.mubr.bf16.mxu1 %v8056_v11  ;;  %1759 = vmatprep.subr.bf16.mxu0 %v7028_v9  ;;  %v7033_v13 = vld [vmem:[%s10417_s1 + $0xd20] ss:$48 sps:$4 sm:$0xff]   ;;  %v7042_v21 = vld [vmem:[%s10417_s1 + $0x968] ss:$48 sps:$4 sm:$0xff]  }
  0x2c   : > { %1812 = vmatprep.subr.bf16.mxu1 %v7030_v10  ;;  %v7034_v14 = vld [vmem:[%s10417_s1 + $0x904] ss:$48 sps:$4 sm:$0xff]   ;;  %1760 = vmatpush1.bf16.msra.mxu0 %v7032_v12  ;;  %v7038_v16 = vld [vmem:[%s10417_s1 + $0x900] ss:$48 sps:$4 sm:$0xff]   ;;  %v7044_v22 = vld [vmem:[%s10417_s1 + $0x96c] ss:$48 sps:$4 sm:$0xff]  }
  0x2d   : > { %1813 = vmatpush1.bf16.msra.mxu1 %v7033_v13  ;;  %v7036_v15 = vld [vmem:[%s10417_s1 + $0xcc4] ss:$48 sps:$4 sm:$0xff]   ;;  %1761 = vmatprep.subr.bf16.mxu0 %v7034_v14  ;;  %v7039_v17 = vld [vmem:[%s10417_s1 + $0xcc0] ss:$48 sps:$4 sm:$0xff]   ;;  %v7050_v25 = vld [vmem:[%s10417_s1 + $0x90c] ss:$48 sps:$4 sm:$0xff]  }
  0x2e   : > { %1814 = vmatprep.subr.bf16.mxu1 %v7036_v15  ;;  %v7040_v18 = vld [vmem:[%s10417_s1 + $0x8a4] ss:$48 sps:$4 sm:$0xff]   ;;  %v7045_v23 = vld [vmem:[%s10417_s1 + $0x8a0] ss:$48 sps:$4 sm:$0xff]   ;;  %v7048_v26 = vld [vmem:[%s10417_s1 + $0x908] ss:$48 sps:$4 sm:$0xff]  }
  0x2f   : > { %v5851_v19 = vld [vmem:[%s8175_s28 + $0x28] sm:$0xff]  ;;  %v5850_v59 = vld [vmem:[%s8175_s28 + $0x20] sm:$0xff]  ;;  %v5849_v15 = vld [vmem:[%s8175_s28 + $0x18] sm:$0xff]  ;;  %s6961_s30 = sshll.u32 (%p8125_p6), %s8038_s14, 2  ;;  %s6970_s4 = smul.u32 (%p8125_p6), 48, %s8042_s15 }
  0x30   : > { %v8178_v20 = vpack.c.bf16 %v5851_v19, %v5851_v19  ;;  %1762 = vmatpush1.bf16.msra.mxu0 %v7038_v16  ;;  %v7046_v24 = vld [vmem:[%s10417_s1 + $0x844] ss:$48 sps:$4 sm:$0xff]   ;;  %v7051_v27 = vld [vmem:[%s10417_s1 + $0x840] ss:$48 sps:$4 sm:$0xff]   ;;  %v7056_v29 = vld [vmem:[%s10417_s1 + $0x8ac] ss:$48 sps:$4 sm:$0xff]   ;;  %v8303_v62 = vpack.c.bf16 %v5850_v59, %v5850_v59 }
  0x31   : > { %1815 = vmatpush1.bf16.msra.mxu1 %v7039_v17  ;;  %1763 = vmatprep.subr.bf16.mxu0 %v7040_v18  ;;  %v7052_v28 = vld [vmem:[%s10417_s1 + $0x7e4] ss:$48 sps:$4 sm:$0xff]   ;;  %v7054_v30 = vld [vmem:[%s10417_s1 + $0x8a8] ss:$48 sps:$4 sm:$0xff]   ;;  %v7057_v31 = vld [vmem:[%s10417_s1 + $0x7e0] ss:$48 sps:$4 sm:$0xff]   ;;  %v8359_v18 = vpack.c.bf16 %v5849_v15, %v5849_v15  ;;  %s5727_s23 = sadd.s32 (%p8125_p6), %s6970_s4, %s6961_s30 }
  0x32   : > { %1841 = vmatprep.subr.bf16.mxu1 %v7044_v22  ;;  %v7058_v32 = vld [vmem:[%s10417_s1 + $0x784] ss:$48 sps:$4 sm:$0xff]   ;;  %v7062_v33 = vld [vmem:[%s10417_s1 + $0x84c] ss:$48 sps:$4 sm:$0xff]   ;;  %v7060_v34 = vld [vmem:[%s10417_s1 + $0x848] ss:$48 sps:$4 sm:$0xff]   ;;  %1791 = vmatprep.mubr.bf16.mxu0 %v8303_v62 }
  0x33   : > { %v7063_v35 = vld [vmem:[%s10417_s1 + $0x780] ss:$48 sps:$4 sm:$0xff]   ;;  %v7064_v36 = vld [vmem:[%s10417_s1 + $0x724] ss:$48 sps:$4 sm:$0xff]   ;;  %v7068_v37 = vld [vmem:[%s10417_s1 + $0x7ec] ss:$48 sps:$4 sm:$0xff]  }
  0x34   : > { %6287 = vmatmul.mubr.msk.bf16.vlgmr.msra.gmra.mxu1 %vm1755_vm0, %v8178_v20  ;;  %1764 = vmatpush1.bf16.msra.mxu0 %v7045_v23  ;;  %v7066_v38 = vld [vmem:[%s10417_s1 + $0x7e8] ss:$48 sps:$4 sm:$0xff]   ;;  %v7069_v39 = vld [vmem:[%s10417_s1 + $0x720] ss:$48 sps:$4 sm:$0xff]   ;;  %v7070_v40 = vld [vmem:[%s10417_s1 + $0x6c4] ss:$48 sps:$4 sm:$0xff]  }
  0x35   : > { %1842 = vmatpush1.bf16.msra.mxu1 %v7042_v21  ;;  %1765 = vmatprep.subr.bf16.mxu0 %v7046_v24  ;;  %v7074_v41 = vld [vmem:[%s10417_s1 + $0x78c] ss:$48 sps:$4 sm:$0xff]   ;;  %v7072_v42 = vld [vmem:[%s10417_s1 + $0x788] ss:$48 sps:$4 sm:$0xff]   ;;  %v7075_v43 = vld [vmem:[%s10417_s1 + $0x6c0] ss:$48 sps:$4 sm:$0xff]  }
  0x36   : > { %1843 = vmatprep.subr.bf16.mxu1 %v7050_v25  ;;  %v7076_v44 = vld [vmem:[%s10417_s1 + $0xc64] ss:$48 sps:$4 sm:$0xff]   ;;  %v7080_v45 = vld [vmem:[%s10417_s1 + $0x72c] ss:$48 sps:$4 sm:$0xff]   ;;  %v7078_v46 = vld [vmem:[%s10417_s1 + $0x728] ss:$48 sps:$4 sm:$0xff]   ;;  %1873 = vmatprep.mubr.bf16.mxu1 %v8303_v62 }
  0x37   : > { %v7081_v47 = vld [vmem:[%s10417_s1 + $0xc60] ss:$48 sps:$4 sm:$0xff]   ;;  %v7082_v48 = vld [vmem:[%s10417_s1 + $0xc04] ss:$48 sps:$4 sm:$0xff]   ;;  %v7086_v49 = vld [vmem:[%s10417_s1 + $0x6cc] ss:$48 sps:$4 sm:$0xff]  }
  0x38   : > { %1766 = vmatpush1.bf16.msra.mxu0 %v7051_v27  ;;  %v7084_v50 = vld [vmem:[%s10417_s1 + $0x6c8] ss:$48 sps:$4 sm:$0xff]   ;;  %v7087_v51 = vld [vmem:[%s10417_s1 + $0xc00] ss:$48 sps:$4 sm:$0xff]   ;;  %v7088_v52 = vld [vmem:[%s10417_s1 + $0xba4] ss:$48 sps:$4 sm:$0xff]  }
  0x39   : > { %1844 = vmatpush1.bf16.msra.mxu1 %v7048_v26  ;;  %1767 = vmatprep.subr.bf16.mxu0 %v7052_v28  ;;  %v7092_v53 = vld [vmem:[%s10417_s1 + $0xc6c] ss:$48 sps:$4 sm:$0xff]   ;;  %v7090_v54 = vld [vmem:[%s10417_s1 + $0xc68] ss:$48 sps:$4 sm:$0xff]   ;;  %v7093_v55 = vld [vmem:[%s10417_s1 + $0xba0] ss:$48 sps:$4 sm:$0xff]  }
  0x3a   : > { %1845 = vmatprep.subr.bf16.mxu1 %v7056_v29  ;;  %v7094_v56 = vld [vmem:[%s10417_s1 + $0xb44] ss:$48 sps:$4 sm:$0xff]   ;;  %v7098_v57 = vld [vmem:[%s10417_s1 + $0xc0c] ss:$48 sps:$4 sm:$0xff]   ;;  %v7096_v58 = vld [vmem:[%s10417_s1 + $0xc08] ss:$48 sps:$4 sm:$0xff]  }
  0x3b   : > { %v7099_v60 = vld [vmem:[%s10417_s1 + $0xb40] ss:$48 sps:$4 sm:$0xff]   ;;  %v7100_v61 = vld [vmem:[%s10417_s1 + $0xae4] ss:$48 sps:$4 sm:$0xff]   ;;  %v7104_v63 = vld [vmem:[%s10417_s1 + $0xbac] ss:$48 sps:$4 sm:$0xff]  }
  0x3c   : > { %1768 = vmatpush1.bf16.msra.mxu0 %v7057_v31  ;;  %v7102_v0 = vld [vmem:[%s10417_s1 + $0xba8] ss:$48 sps:$4 sm:$0xff]   ;;  %v7105_v1 = vld [vmem:[%s10417_s1 + $0xae0] ss:$48 sps:$4 sm:$0xff]   ;;  %v7106_v2 = vld [vmem:[%s10417_s1 + $0xa84] ss:$48 sps:$4 sm:$0xff]  }
  0x3d   : > { %1846 = vmatpush1.bf16.msra.mxu1 %v7054_v30  ;;  %1769 = vmatprep.subr.bf16.mxu0 %v7058_v32  ;;  %v7110_v3 = vld [vmem:[%s10417_s1 + $0xb4c] ss:$48 sps:$4 sm:$0xff]   ;;  %v7108_v4 = vld [vmem:[%s10417_s1 + $0xb48] ss:$48 sps:$4 sm:$0xff]   ;;  %v7111_v5 = vld [vmem:[%s10417_s1 + $0xa80] ss:$48 sps:$4 sm:$0xff]  }
  0x3e   : > { %1847 = vmatprep.subr.bf16.mxu1 %v7062_v33  ;;  %v7112_v6 = vld [vmem:[%s10417_s1 + $0xa24] ss:$48 sps:$4 sm:$0xff]   ;;  %v7116_v7 = vld [vmem:[%s10417_s1 + $0xaec] ss:$48 sps:$4 sm:$0xff]   ;;  %v7114_v8 = vld [vmem:[%s10417_s1 + $0xae8] ss:$48 sps:$4 sm:$0xff]  }
  0x3f   : > { %v7117_v9 = vld [vmem:[%s10417_s1 + $0xa20] ss:$48 sps:$4 sm:$0xff]   ;;  %v7118_v10 = vld [vmem:[%s10417_s1 + $0x9c4] ss:$48 sps:$4 sm:$0xff]   ;;  %v7122_v12 = vld [vmem:[%s10417_s1 + $0xa8c] ss:$48 sps:$4 sm:$0xff]  }
  0x40   : > { %1770 = vmatpush1.bf16.msra.mxu0 %v7063_v35  ;;  %v7120_v13 = vld [vmem:[%s10417_s1 + $0xa88] ss:$48 sps:$4 sm:$0xff]   ;;  %v7123_v14 = vld [vmem:[%s10417_s1 + $0x9c0] ss:$48 sps:$4 sm:$0xff]   ;;  %v7126_v16 = vld [vmem:[%s10417_s1 + $0xa2c] ss:$48 sps:$4 sm:$0xff]  }
  0x41   : > { %1848 = vmatpush1.bf16.msra.mxu1 %v7060_v34  ;;  %1771 = vmatprep.subr.bf16.mxu0 %v7064_v36  ;;  %v7129_v17 = vld [vmem:[%s10417_s1 + $0xd2c] ss:$48 sps:$4 sm:$0xff]   ;;  %v7124_v19 = vld [vmem:[%s10417_s1 + $0xa28] ss:$48 sps:$4 sm:$0xff]   ;;  %v7138_v26 = vld [vmem:[%s10417_s1 + $0x974] ss:$48 sps:$4 sm:$0xff]  }
  0x42   : > { %1849 = vmatprep.subr.bf16.mxu1 %v7068_v37  ;;  %v7127_v21 = vld [vmem:[%s10417_s1 + $0xd28] ss:$48 sps:$4 sm:$0xff]   ;;  %v7132_v22 = vld [vmem:[%s10417_s1 + $0x9cc] ss:$48 sps:$4 sm:$0xff]   ;;  %v7141_v27 = vld [vmem:[%s10417_s1 + $0xd34] ss:$48 sps:$4 sm:$0xff]  }
  0x43   : > { %v7135_v23 = vld [vmem:[%s10417_s1 + $0xccc] ss:$48 sps:$4 sm:$0xff]   ;;  %v7130_v24 = vld [vmem:[%s10417_s1 + $0x9c8] ss:$48 sps:$4 sm:$0xff]   ;;  %v7136_v28 = vld [vmem:[%s10417_s1 + $0x970] ss:$48 sps:$4 sm:$0xff]  }
  0x44   : > { %1772 = vmatpush1.bf16.msra.mxu0 %v7069_v39  ;;  %v7133_v25 = vld [vmem:[%s10417_s1 + $0xcc8] ss:$48 sps:$4 sm:$0xff]   ;;  %v7139_v29 = vld [vmem:[%s10417_s1 + $0xd30] ss:$48 sps:$4 sm:$0xff]   ;;  %v7144_v30 = vld [vmem:[%s10417_s1 + $0x914] ss:$48 sps:$4 sm:$0xff]  }
  0x45   : > { %1850 = vmatpush1.bf16.msra.mxu1 %v7066_v38  ;;  %1773 = vmatprep.subr.bf16.mxu0 %v7070_v40  ;;  %v7147_v31 = vld [vmem:[%s10417_s1 + $0xcd4] ss:$48 sps:$4 sm:$0xff]   ;;  %v7142_v32 = vld [vmem:[%s10417_s1 + $0x910] ss:$48 sps:$4 sm:$0xff]   ;;  %v7153_v35 = vld [vmem:[%s10417_s1 + $0x97c] ss:$48 sps:$4 sm:$0xff]  }
  0x46   : > { %1851 = vmatprep.subr.bf16.mxu1 %v7074_v41  ;;  %v7145_v33 = vld [vmem:[%s10417_s1 + $0xcd0] ss:$48 sps:$4 sm:$0xff]   ;;  %v7150_v34 = vld [vmem:[%s10417_s1 + $0x8b4] ss:$48 sps:$4 sm:$0xff]   ;;  %v7151_v37 = vld [vmem:[%s10417_s1 + $0x978] ss:$48 sps:$4 sm:$0xff]  }
  0x47   : > { %v7148_v36 = vld [vmem:[%s10417_s1 + $0x8b0] ss:$48 sps:$4 sm:$0xff]   ;;  %v7156_v38 = vld [vmem:[%s10417_s1 + $0x854] ss:$48 sps:$4 sm:$0xff]   ;;  %v7159_v39 = vld [vmem:[%s10417_s1 + $0x91c] ss:$48 sps:$4 sm:$0xff]  }
  0x48   : > { %1774 = vmatpush1.bf16.msra.mxu0 %v7075_v43  ;;  %v7154_v40 = vld [vmem:[%s10417_s1 + $0x850] ss:$48 sps:$4 sm:$0xff]   ;;  %v7157_v41 = vld [vmem:[%s10417_s1 + $0x918] ss:$48 sps:$4 sm:$0xff]   ;;  %v7165_v43 = vld [vmem:[%s10417_s1 + $0x8bc] ss:$48 sps:$4 sm:$0xff]  }
  0x49   : > { %1852 = vmatpush1.bf16.msra.mxu1 %v7072_v42  ;;  %1775 = vmatprep.subr.bf16.mxu0 %v7076_v44  ;;  %v7162_v42 = vld [vmem:[%s10417_s1 + $0x7f4] ss:$48 sps:$4 sm:$0xff]   ;;  %v7160_v44 = vld [vmem:[%s10417_s1 + $0x7f0] ss:$48 sps:$4 sm:$0xff]   ;;  %v7189_v59 = vld [vmem:[%s10417_s1 + $0x73c] ss:$48 sps:$4 sm:$0xff]  }
  0x4a   : > { %1853 = vmatprep.subr.bf16.mxu1 %v7080_v45  ;;  %v7163_v45 = vld [vmem:[%s10417_s1 + $0x8b8] ss:$48 sps:$4 sm:$0xff]   ;;  %s6962_s5 = sshll.u32 (%p8125_p6), %s5727_s23, 3 }
  0x4b   : > { %v7211_v15 = vld [vmem:[%s10417_s1 + $0xbb8] ss:$48 sps:$4 sm:$0xff]   ;;  %s5729_s26 = scalar_lea.vmem (%p8125_p6), %s10419_s3, %s6962_s5 }
  0x4c   : > { %1776 = vmatpush2.bf16.msra.mxu0 %v7081_v47  ;;  %v7171_v47 = vld [vmem:[%s10417_s1 + $0x85c] ss:$48 sps:$4 sm:$0xff]  }
  0x4d   : > { %1854 = vmatpush1.bf16.msra.mxu1 %v7078_v46  ;;  %1777 = vmatprep.subr.bf16.mxu0 %v7082_v48  ;;  %v7168_v46 = vld [vmem:[%s10417_s1 + $0x794] ss:$48 sps:$4 sm:$0xff]   ;;  %v7166_v48 = vld [vmem:[%s10417_s1 + $0x790] ss:$48 sps:$4 sm:$0xff]  }
  0x4e   : > { %1855 = vmatprep.subr.bf16.mxu1 %v7086_v49  ;;  %v7169_v49 = vld [vmem:[%s10417_s1 + $0x858] ss:$48 sps:$4 sm:$0xff]  }
  0x50   : > { %1778 = vmatpush2.bf16.msra.mxu0 %v7087_v51  ;;  %v7177_v51 = vld [vmem:[%s10417_s1 + $0x7fc] ss:$48 sps:$4 sm:$0xff]  }
  0x51   : > { %1856 = vmatpush1.bf16.msra.mxu1 %v7084_v50  ;;  %1779 = vmatprep.subr.bf16.mxu0 %v7088_v52  ;;  %v7174_v50 = vld [vmem:[%s10417_s1 + $0x734] ss:$48 sps:$4 sm:$0xff]   ;;  %v7172_v52 = vld [vmem:[%s10417_s1 + $0x730] ss:$48 sps:$4 sm:$0xff]  }
  0x52   : > { %1857 = vmatprep.subr.bf16.mxu1 %v7092_v53  ;;  %v7175_v53 = vld [vmem:[%s10417_s1 + $0x7f8] ss:$48 sps:$4 sm:$0xff]  }
  0x54   : > { %1780 = vmatpush2.bf16.msra.mxu0 %v7093_v55  ;;  %v7183_v55 = vld [vmem:[%s10417_s1 + $0x79c] ss:$48 sps:$4 sm:$0xff]  }
  0x55   : > { %1858 = vmatpush2.bf16.msra.mxu1 %v7090_v54  ;;  %1781 = vmatprep.subr.bf16.mxu0 %v7094_v56  ;;  %v7180_v54 = vld [vmem:[%s10417_s1 + $0x6d4] ss:$48 sps:$4 sm:$0xff]   ;;  %v7178_v56 = vld [vmem:[%s10417_s1 + $0x6d0] ss:$48 sps:$4 sm:$0xff]  }
  0x56   : > { %1859 = vmatprep.subr.bf16.mxu1 %v7098_v57  ;;  %v7181_v57 = vld [vmem:[%s10417_s1 + $0x798] ss:$48 sps:$4 sm:$0xff]  }
  0x58   : > { %1782 = vmatpush2.bf16.msra.mxu0 %v7099_v60  ;;  %v7184_v60 = vld [vmem:[%s10417_s1 + $0xc70] ss:$48 sps:$4 sm:$0xff]  }
  0x59   : > { %1860 = vmatpush2.bf16.msra.mxu1 %v7096_v58  ;;  %1783 = vmatprep.subr.bf16.mxu0 %v7100_v61  ;;  %v7186_v58 = vld [vmem:[%s10417_s1 + $0xc74] ss:$48 sps:$4 sm:$0xff]   ;;  %v7187_v61 = vld [vmem:[%s10417_s1 + $0x738] ss:$48 sps:$4 sm:$0xff]  }
  0x5a   : > { %1861 = vmatprep.subr.bf16.mxu1 %v7104_v63  ;;  %v7192_v63 = vld [vmem:[%s10417_s1 + $0xc14] ss:$48 sps:$4 sm:$0xff]  }
  0x5c   : > { %1784 = vmatpush2.bf16.msra.mxu0 %v7105_v1  ;;  %v7190_v1 = vld [vmem:[%s10417_s1 + $0xc10] ss:$48 sps:$4 sm:$0xff]  }
  0x5d   : > { %1862 = vmatpush2.bf16.msra.mxu1 %v7102_v0  ;;  %1785 = vmatprep.subr.bf16.mxu0 %v7106_v2  ;;  %v7195_v0 = vld [vmem:[%s10417_s1 + $0x6dc] ss:$48 sps:$4 sm:$0xff]   ;;  %v7193_v2 = vld [vmem:[%s10417_s1 + $0x6d8] ss:$48 sps:$4 sm:$0xff]  }
  0x5e   : > { %1863 = vmatprep.subr.bf16.mxu1 %v7110_v3  ;;  %v7198_v3 = vld [vmem:[%s10417_s1 + $0xbb4] ss:$48 sps:$4 sm:$0xff]  }
  0x60   : > { %1786 = vmatpush2.bf16.msra.mxu0 %v7111_v5  ;;  %v7196_v5 = vld [vmem:[%s10417_s1 + $0xbb0] ss:$48 sps:$4 sm:$0xff]  }
  0x61   : > { %1864 = vmatpush2.bf16.msra.mxu1 %v7108_v4  ;;  %1787 = vmatprep.subr.bf16.mxu0 %v7112_v6  ;;  %v7201_v4 = vld [vmem:[%s10417_s1 + $0xc7c] ss:$48 sps:$4 sm:$0xff]   ;;  %v7199_v6 = vld [vmem:[%s10417_s1 + $0xc78] ss:$48 sps:$4 sm:$0xff]  }
  0x62   : > { %1865 = vmatprep.subr.bf16.mxu1 %v7116_v7  ;;  %v7204_v7 = vld [vmem:[%s10417_s1 + $0xb54] ss:$48 sps:$4 sm:$0xff]  }
  0x64   : > { %1788 = vmatpush2.bf16.msra.mxu0 %v7117_v9  ;;  %v7202_v9 = vld [vmem:[%s10417_s1 + $0xb50] ss:$48 sps:$4 sm:$0xff]  }
  0x65   : > { %1866 = vmatpush2.bf16.msra.mxu1 %v7114_v8  ;;  %1789 = vmatprep.subr.bf16.mxu0 %v7118_v10  ;;  %v7207_v8 = vld [vmem:[%s10417_s1 + $0xc1c] ss:$48 sps:$4 sm:$0xff]   ;;  %v7205_v10 = vld [vmem:[%s10417_s1 + $0xc18] ss:$48 sps:$4 sm:$0xff]  }
  0x66   : > { %1867 = vmatprep.subr.bf16.mxu1 %v7122_v12  ;;  %v7210_v12 = vld [vmem:[%s10417_s1 + $0xaf4] ss:$48 sps:$4 sm:$0xff]  }
  0x68   : > { %1790 = vmatpush2.bf16.msra.mxu0 %v7123_v14  ;;  %v7208_v14 = vld [vmem:[%s10417_s1 + $0xaf0] ss:$48 sps:$4 sm:$0xff]  }
  0x69   : > { %1868 = vmatpush2.bf16.msra.mxu1 %v7120_v13  ;;  %1894 = vmatprep.subr.bf16.mxu0 %v7129_v17  ;;  %v7213_v13 = vld [vmem:[%s10417_s1 + $0xbbc] ss:$48 sps:$4 sm:$0xff]  }
  0x6a   : > { %1869 = vmatprep.subr.bf16.mxu1 %v7126_v16  ;;  %v7216_v16 = vld [vmem:[%s10417_s1 + $0xa94] ss:$48 sps:$4 sm:$0xff]   ;;  %v7219_v17 = vld [vmem:[%s10417_s1 + $0xb5c] ss:$48 sps:$4 sm:$0xff]  }
  0x6b   : > { %1792 = vmatmul.mubr.bf16.vlgmr.msra.gmra.mxu0 %v8359_v18 }
  0x6c   : > { %1895 = vmatpush1.bf16.msra.mxu0 %v7127_v21  ;;  %1914 = vmatprep.mubr.bf16.mxu0 %v8056_v11  ;;  %v7217_v21 = vld [vmem:[%s10417_s1 + $0xb58] ss:$48 sps:$4 sm:$0xff]  }
  0x6d   : > { %1870 = vmatpush2.bf16.msra.mxu1 %v7124_v19  ;;  %1896 = vmatprep.subr.bf16.mxu0 %v7135_v23  ;;  %v7214_v19 = vld [vmem:[%s10417_s1 + $0xa90] ss:$48 sps:$4 sm:$0xff]   ;;  %v7225_v23 = vld [vmem:[%s10417_s1 + $0xafc] ss:$48 sps:$4 sm:$0xff]  }
  0x6e   : > { %1871 = vmatprep.subr.bf16.mxu1 %v7132_v22  ;;  %v7222_v22 = vld [vmem:[%s10417_s1 + $0xa34] ss:$48 sps:$4 sm:$0xff]  }
  0x70   : > { %1897 = vmatpush1.bf16.msra.mxu0 %v7133_v25  ;;  %v7223_v25 = vld [vmem:[%s10417_s1 + $0xaf8] ss:$48 sps:$4 sm:$0xff]  }
  0x71   : > { %1872 = vmatpush2.bf16.msra.mxu1 %v7130_v24  ;;  %1923 = vmatprep.subr.bf16.mxu0 %v7138_v26  ;;  %v7220_v24 = vld [vmem:[%s10417_s1 + $0xa30] ss:$48 sps:$4 sm:$0xff]   ;;  %v7228_v26 = vld [vmem:[%s10417_s1 + $0x9d4] ss:$48 sps:$4 sm:$0xff]  }
  0x72   : > { %1976 = vmatprep.subr.bf16.mxu1 %v7141_v27  ;;  %v7231_v27 = vld [vmem:[%s10417_s1 + $0xa9c] ss:$48 sps:$4 sm:$0xff]  }
  0x73   : > { %6288 = vmatmul.mubr.msk.bf16.vlgmr.msra.gmra.mxu0 %vm1755_vm0, %v8178_v20 }
  0x74   : > { %1874 = vmatmul.mubr.bf16.vlgmr.msra.gmra.mxu1 %v8359_v18  ;;  %1924 = vmatpush1.bf16.msra.mxu0 %v7136_v28  ;;  %v7226_v28 = vld [vmem:[%s10417_s1 + $0x9d0] ss:$48 sps:$4 sm:$0xff]  }
  0x75   : > { %1977 = vmatpush1.bf16.msra.mxu1 %v7139_v29  ;;  %1925 = vmatprep.subr.bf16.mxu0 %v7144_v30  ;;  %v7229_v29 = vld [vmem:[%s10417_s1 + $0xa98] ss:$48 sps:$4 sm:$0xff]   ;;  %v7234_v30 = vld [vmem:[%s10417_s1 + $0xa3c] ss:$48 sps:$4 sm:$0xff]  }
  0x76   : > { %1978 = vmatprep.subr.bf16.mxu1 %v7147_v31  ;;  %1996 = vmatprep.mubr.bf16.mxu1 %v8056_v11  ;;  %v7237_v31 = vld [vmem:[%s10417_s1 + $0xd3c] ss:$48 sps:$4 sm:$0xff]  }
  0x77   : > { %1955 = vmatprep.mubr.bf16.mxu0 %v8303_v62 }
  0x78   : > { %1926 = vmatpush1.bf16.msra.mxu0 %v7142_v32  ;;  %v7232_v32 = vld [vmem:[%s10417_s1 + $0xa38] ss:$48 sps:$4 sm:$0xff]  }
  0x79   : > { %1979 = vmatpush1.bf16.msra.mxu1 %v7145_v33  ;;  %1927 = vmatprep.subr.bf16.mxu0 %v7150_v34  ;;  %v7235_v33 = vld [vmem:[%s10417_s1 + $0xd38] ss:$48 sps:$4 sm:$0xff]   ;;  %v7240_v34 = vld [vmem:[%s10417_s1 + $0x9dc] ss:$48 sps:$4 sm:$0xff]  }
  0x7a   : > { %2005 = vmatprep.subr.bf16.mxu1 %v7153_v35  ;;  %v7243_v35 = vld [vmem:[%s10417_s1 + $0xcdc] ss:$48 sps:$4 sm:$0xff]  }
  0x7c   : > { %6289 = vmatmul.mubr.msk.bf16.vlgmr.msra.gmra.mxu1 %vm1755_vm0, %v8178_v20  ;;  %1928 = vmatpush1.bf16.msra.mxu0 %v7148_v36  ;;  %v7238_v36 = vld [vmem:[%s10417_s1 + $0x9d8] ss:$48 sps:$4 sm:$0xff]  }
  0x7d   : > { %2006 = vmatpush1.bf16.msra.mxu1 %v7151_v37  ;;  %1929 = vmatprep.subr.bf16.mxu0 %v7156_v38  ;;  %v7241_v37 = vld [vmem:[%s10417_s1 + $0xcd8] ss:$48 sps:$4 sm:$0xff]   ;;  %v7246_v38 = vld [vmem:[%s10417_s1 + $0x984] ss:$48 sps:$4 sm:$0xff]  }
  0x7e   : > { %2007 = vmatprep.subr.bf16.mxu1 %v7159_v39  ;;  %2037 = vmatprep.mubr.bf16.mxu1 %v8303_v62  ;;  %v7249_v39 = vld [vmem:[%s10417_s1 + $0xd44] ss:$48 sps:$4 sm:$0xff]  }
  0x80   : > { %1930 = vmatpush1.bf16.msra.mxu0 %v7154_v40  ;;  %v7244_v40 = vld [vmem:[%s10417_s1 + $0x980] ss:$48 sps:$4 sm:$0xff]  }
  0x81   : > { %2008 = vmatpush1.bf16.msra.mxu1 %v7157_v41  ;;  %1931 = vmatprep.subr.bf16.mxu0 %v7162_v42  ;;  %v7247_v41 = vld [vmem:[%s10417_s1 + $0xd40] ss:$48 sps:$4 sm:$0xff]   ;;  %v7252_v42 = vld [vmem:[%s10417_s1 + $0x924] ss:$48 sps:$4 sm:$0xff]  }
  0x82   : > { %2009 = vmatprep.subr.bf16.mxu1 %v7165_v43  ;;  %v7255_v43 = vld [vmem:[%s10417_s1 + $0xce4] ss:$48 sps:$4 sm:$0xff]  }
  0x84   : > { %1932 = vmatpush1.bf16.msra.mxu0 %v7160_v44  ;;  %v7250_v44 = vld [vmem:[%s10417_s1 + $0x920] ss:$48 sps:$4 sm:$0xff]  }
  0x85   : > { %2010 = vmatpush1.bf16.msra.mxu1 %v7163_v45  ;;  %1933 = vmatprep.subr.bf16.mxu0 %v7168_v46  ;;  %v7253_v45 = vld [vmem:[%s10417_s1 + $0xce0] ss:$48 sps:$4 sm:$0xff]   ;;  %v7258_v46 = vld [vmem:[%s10417_s1 + $0x8c4] ss:$48 sps:$4 sm:$0xff]  }
  0x86   : > { %2011 = vmatprep.subr.bf16.mxu1 %v7171_v47  ;;  %v7261_v47 = vld [vmem:[%s10417_s1 + $0x98c] ss:$48 sps:$4 sm:$0xff]  }
  0x88   : > { %1934 = vmatpush1.bf16.msra.mxu0 %v7166_v48  ;;  %v7256_v48 = vld [vmem:[%s10417_s1 + $0x8c0] ss:$48 sps:$4 sm:$0xff]  }
  0x89   : > { %2012 = vmatpush1.bf16.msra.mxu1 %v7169_v49  ;;  %1935 = vmatprep.subr.bf16.mxu0 %v7174_v50  ;;  %v7259_v49 = vld [vmem:[%s10417_s1 + $0x988] ss:$48 sps:$4 sm:$0xff]   ;;  %v7264_v50 = vld [vmem:[%s10417_s1 + $0x864] ss:$48 sps:$4 sm:$0xff]  }
  0x8a   : > { %2013 = vmatprep.subr.bf16.mxu1 %v7177_v51  ;;  %v7267_v51 = vld [vmem:[%s10417_s1 + $0x92c] ss:$48 sps:$4 sm:$0xff]  }
  0x8c   : > { %1936 = vmatpush1.bf16.msra.mxu0 %v7172_v52  ;;  %v7262_v52 = vld [vmem:[%s10417_s1 + $0x860] ss:$48 sps:$4 sm:$0xff]  }
  0x8d   : > { %2014 = vmatpush1.bf16.msra.mxu1 %v7175_v53  ;;  %1937 = vmatprep.subr.bf16.mxu0 %v7180_v54  ;;  %v7265_v53 = vld [vmem:[%s10417_s1 + $0x928] ss:$48 sps:$4 sm:$0xff]   ;;  %v7270_v54 = vld [vmem:[%s10417_s1 + $0x804] ss:$48 sps:$4 sm:$0xff]  }
  0x8e   : > { %2015 = vmatprep.subr.bf16.mxu1 %v7183_v55  ;;  %v7273_v55 = vld [vmem:[%s10417_s1 + $0x8cc] ss:$48 sps:$4 sm:$0xff]  }
  0x90   : > { %1938 = vmatpush1.bf16.msra.mxu0 %v7178_v56  ;;  %v7268_v56 = vld [vmem:[%s10417_s1 + $0x800] ss:$48 sps:$4 sm:$0xff]  }
  0x91   : > { %2016 = vmatpush1.bf16.msra.mxu1 %v7181_v57  ;;  %1939 = vmatprep.subr.bf16.mxu0 %v7186_v58  ;;  %v7271_v57 = vld [vmem:[%s10417_s1 + $0x8c8] ss:$48 sps:$4 sm:$0xff]   ;;  %v7276_v58 = vld [vmem:[%s10417_s1 + $0x7a4] ss:$48 sps:$4 sm:$0xff]  }
  0x92   : > { %2017 = vmatprep.subr.bf16.mxu1 %v7189_v59  ;;  %v7274_v59 = vld [vmem:[%s10417_s1 + $0x7a0] ss:$48 sps:$4 sm:$0xff]  }
  0x94   : > { %1940 = vmatpush2.bf16.msra.mxu0 %v7184_v60  ;;  %v7277_v60 = vld [vmem:[%s10417_s1 + $0x868] ss:$48 sps:$4 sm:$0xff]  }
  0x95   : > { %2018 = vmatpush1.bf16.msra.mxu1 %v7187_v61  ;;  %1941 = vmatprep.subr.bf16.mxu0 %v7192_v63  ;;  %v7282_v61 = vld [vmem:[%s10417_s1 + $0x744] ss:$48 sps:$4 sm:$0xff]   ;;  %v7285_v63 = vld [vmem:[%s10417_s1 + $0x80c] ss:$48 sps:$4 sm:$0xff]  }
  0x96   : > { %2019 = vmatprep.subr.bf16.mxu1 %v7195_v0  ;;  %v7280_v0 = vld [vmem:[%s10417_s1 + $0x740] ss:$48 sps:$4 sm:$0xff]  }
  0x98   : > { %1942 = vmatpush2.bf16.msra.mxu0 %v7190_v1  ;;  %v7283_v1 = vld [vmem:[%s10417_s1 + $0x808] ss:$48 sps:$4 sm:$0xff]  }
  0x99   : > { %2020 = vmatpush1.bf16.msra.mxu1 %v7193_v2  ;;  %1943 = vmatprep.subr.bf16.mxu0 %v7198_v3  ;;  %v7288_v2 = vld [vmem:[%s10417_s1 + $0x6e4] ss:$48 sps:$4 sm:$0xff]   ;;  %v7291_v3 = vld [vmem:[%s10417_s1 + $0x7ac] ss:$48 sps:$4 sm:$0xff]  }
  0x9a   : > { %2021 = vmatprep.subr.bf16.mxu1 %v7201_v4  ;;  %v7286_v4 = vld [vmem:[%s10417_s1 + $0x6e0] ss:$48 sps:$4 sm:$0xff]  }
  0x9c   : > { %1944 = vmatpush2.bf16.msra.mxu0 %v7196_v5  ;;  %v7289_v5 = vld [vmem:[%s10417_s1 + $0x7a8] ss:$48 sps:$4 sm:$0xff]  }
  0x9d   : > { %2022 = vmatpush2.bf16.msra.mxu1 %v7199_v6  ;;  %1945 = vmatprep.subr.bf16.mxu0 %v7204_v7  ;;  %v7294_v6 = vld [vmem:[%s10417_s1 + $0xc84] ss:$48 sps:$4 sm:$0xff]   ;;  %v7297_v7 = vld [vmem:[%s10417_s1 + $0x74c] ss:$48 sps:$4 sm:$0xff]  }
  0x9e   : > { %2023 = vmatprep.subr.bf16.mxu1 %v7207_v8  ;;  %v7292_v8 = vld [vmem:[%s10417_s1 + $0xc80] ss:$48 sps:$4 sm:$0xff]  }
  0xa0   : > { %1946 = vmatpush2.bf16.msra.mxu0 %v7202_v9  ;;  %v7295_v9 = vld [vmem:[%s10417_s1 + $0x748] ss:$48 sps:$4 sm:$0xff]  }
  0xa1   : > { %2024 = vmatpush2.bf16.msra.mxu1 %v7205_v10  ;;  %1947 = vmatprep.subr.bf16.mxu0 %v7210_v12  ;;  %v7300_v10 = vld [vmem:[%s10417_s1 + $0xc24] ss:$48 sps:$4 sm:$0xff]   ;;  %v7303_v12 = vld [vmem:[%s10417_s1 + $0x6ec] ss:$48 sps:$4 sm:$0xff]  }
  0xa2   : > { %2025 = vmatprep.subr.bf16.mxu1 %v7213_v13  ;;  %v7298_v13 = vld [vmem:[%s10417_s1 + $0xc20] ss:$48 sps:$4 sm:$0xff]  }
  0xa4   : > { %1948 = vmatpush2.bf16.msra.mxu0 %v7208_v14  ;;  %v7301_v14 = vld [vmem:[%s10417_s1 + $0x6e8] ss:$48 sps:$4 sm:$0xff]  }
  0xa5   : > { %2026 = vmatpush2.bf16.msra.mxu1 %v7211_v15  ;;  %1949 = vmatprep.subr.bf16.mxu0 %v7216_v16  ;;  %v7306_v15 = vld [vmem:[%s10417_s1 + $0xbc4] ss:$48 sps:$4 sm:$0xff]   ;;  %v7309_v16 = vld [vmem:[%s10417_s1 + $0xc8c] ss:$48 sps:$4 sm:$0xff]  }
  0xa6   : > { %2027 = vmatprep.subr.bf16.mxu1 %v7219_v17  ;;  %v7304_v17 = vld [vmem:[%s10417_s1 + $0xbc0] ss:$48 sps:$4 sm:$0xff]  }
  0xa8   : > { %1950 = vmatpush2.bf16.msra.mxu0 %v7214_v19  ;;  %v7307_v19 = vld [vmem:[%s10417_s1 + $0xc88] ss:$48 sps:$4 sm:$0xff]  }
  0xa9   : > { %2028 = vmatpush2.bf16.msra.mxu1 %v7217_v21  ;;  %1951 = vmatprep.subr.bf16.mxu0 %v7222_v22  ;;  %v7312_v21 = vld [vmem:[%s10417_s1 + $0xb64] ss:$48 sps:$4 sm:$0xff]   ;;  %v7315_v22 = vld [vmem:[%s10417_s1 + $0xc2c] ss:$48 sps:$4 sm:$0xff]  }
  0xaa   : > { %2029 = vmatprep.subr.bf16.mxu1 %v7225_v23  ;;  %v7310_v23 = vld [vmem:[%s10417_s1 + $0xb60] ss:$48 sps:$4 sm:$0xff]  }
  0xac   : > { %1952 = vmatpush2.bf16.msra.mxu0 %v7220_v24  ;;  %v7313_v24 = vld [vmem:[%s10417_s1 + $0xc28] ss:$48 sps:$4 sm:$0xff]  }
  0xad   : > { %2030 = vmatpush2.bf16.msra.mxu1 %v7223_v25  ;;  %1953 = vmatprep.subr.bf16.mxu0 %v7228_v26  ;;  %v7318_v25 = vld [vmem:[%s10417_s1 + $0xb04] ss:$48 sps:$4 sm:$0xff]   ;;  %v7321_v26 = vld [vmem:[%s10417_s1 + $0xbcc] ss:$48 sps:$4 sm:$0xff]  }
  0xae   : > { %2031 = vmatprep.subr.bf16.mxu1 %v7231_v27  ;;  %v7316_v27 = vld [vmem:[%s10417_s1 + $0xb00] ss:$48 sps:$4 sm:$0xff]  }
  0xb0   : > { %1954 = vmatpush2.bf16.msra.mxu0 %v7226_v28  ;;  %v7319_v28 = vld [vmem:[%s10417_s1 + $0xbc8] ss:$48 sps:$4 sm:$0xff]  }
  0xb1   : > { %2032 = vmatpush2.bf16.msra.mxu1 %v7229_v29  ;;  %2058 = vmatprep.subr.bf16.mxu0 %v7237_v31  ;;  %v7324_v29 = vld [vmem:[%s10417_s1 + $0xaa4] ss:$48 sps:$4 sm:$0xff]   ;;  %v7322_v31 = vld [vmem:[%s10417_s1 + $0xaa0] ss:$48 sps:$4 sm:$0xff]  }
  0xb2   : > { %2033 = vmatprep.subr.bf16.mxu1 %v7234_v30  ;;  %v7327_v30 = vld [vmem:[%s10417_s1 + $0xb6c] ss:$48 sps:$4 sm:$0xff]  }
  0xb3   : > { %1956 = vmatmul.mubr.bf16.vlgmr.msra.gmra.mxu0 %v8359_v18 }
  0xb4   : > { %2059 = vmatpush1.bf16.msra.mxu0 %v7235_v33  ;;  %2078 = vmatprep.mubr.bf16.mxu0 %v8056_v11  ;;  %v7330_v33 = vld [vmem:[%s10417_s1 + $0xa44] ss:$48 sps:$4 sm:$0xff]  }
  0xb5   : > { %2034 = vmatpush2.bf16.msra.mxu1 %v7232_v32  ;;  %2060 = vmatprep.subr.bf16.mxu0 %v7243_v35  ;;  %v7325_v32 = vld [vmem:[%s10417_s1 + $0xb68] ss:$48 sps:$4 sm:$0xff]   ;;  %v7328_v35 = vld [vmem:[%s10417_s1 + $0xa40] ss:$48 sps:$4 sm:$0xff]  }
  0xb6   : > { %2035 = vmatprep.subr.bf16.mxu1 %v7240_v34  ;;  %v7333_v34 = vld [vmem:[%s10417_s1 + $0xb0c] ss:$48 sps:$4 sm:$0xff]  }
  0xb8   : > { %2061 = vmatpush1.bf16.msra.mxu0 %v7241_v37  ;;  %v7336_v37 = vld [vmem:[%s10417_s1 + $0x9e4] ss:$48 sps:$4 sm:$0xff]  }
  0xb9   : > { %2036 = vmatpush2.bf16.msra.mxu1 %v7238_v36  ;;  %2087 = vmatprep.subr.bf16.mxu0 %v7246_v38  ;;  %v7331_v36 = vld [vmem:[%s10417_s1 + $0xb08] ss:$48 sps:$4 sm:$0xff]   ;;  %v7339_v38 = vld [vmem:[%s10417_s1 + $0xaac] ss:$48 sps:$4 sm:$0xff]  }
  0xba   : > { %2140 = vmatprep.subr.bf16.mxu1 %v7249_v39 }
  0xbb   : > { %6290 = vmatmul.mubr.msk.bf16.vlgmr.msra.gmra.mxu0 %vm1755_vm0, %v8178_v20 }
  0xbc   : > { %2038 = vmatmul.mubr.bf16.vlgmr.msra.gmra.mxu1 %v8359_v18  ;;  %2088 = vmatpush1.bf16.msra.mxu0 %v7244_v40  ;;  %v7334_v40 = vld [vmem:[%s10417_s1 + $0x9e0] ss:$48 sps:$4 sm:$0xff]  }
  0xbd   : > { %2141 = vmatpush1.bf16.msra.mxu1 %v7247_v41  ;;  %2089 = vmatprep.subr.bf16.mxu0 %v7252_v42  ;;  %v7337_v41 = vld [vmem:[%s10417_s1 + $0xaa8] ss:$48 sps:$4 sm:$0xff]  }
  0xbe   : > { %2142 = vmatprep.subr.bf16.mxu1 %v7255_v43  ;;  %2160 = vmatprep.mubr.bf16.mxu1 %v8056_v11  ;;  %v7342_v43 = vld [vmem:[%s10417_s1 + $0xa4c] ss:$48 sps:$4 sm:$0xff]  }
  0xbf   : > { %2119 = vmatprep.mubr.bf16.mxu0 %v8303_v62 }
  0xc0   : > { %2090 = vmatpush1.bf16.msra.mxu0 %v7250_v44  ;;  %v7345_v44 = vld [vmem:[%s10417_s1 + $0xd4c] ss:$48 sps:$4 sm:$0xff]  }
  0xc1   : > { %2143 = vmatpush1.bf16.msra.mxu1 %v7253_v45  ;;  %2091 = vmatprep.subr.bf16.mxu0 %v7258_v46  ;;  %v7340_v46 = vld [vmem:[%s10417_s1 + $0xa48] ss:$48 sps:$4 sm:$0xff]  }
  0xc2   : > { %2169 = vmatprep.subr.bf16.mxu1 %v7261_v47  ;;  %v7343_v47 = vld [vmem:[%s10417_s1 + $0xd48] ss:$48 sps:$4 sm:$0xff]  }
  0xc4   : > { %6291 = vmatmul.mubr.msk.bf16.vlgmr.msra.gmra.mxu1 %vm1755_vm0, %v8178_v20  ;;  %2092 = vmatpush1.bf16.msra.mxu0 %v7256_v48 }
  0xc5   : > { %2170 = vmatpush1.bf16.msra.mxu1 %v7259_v49  ;;  %2093 = vmatprep.subr.bf16.mxu0 %v7264_v50  ;;  %v7348_v49 = vld [vmem:[%s10417_s1 + $0x9ec] ss:$48 sps:$4 sm:$0xff]  }
  0xc6   : > { %2171 = vmatprep.subr.bf16.mxu1 %v7267_v51  ;;  %2201 = vmatprep.mubr.bf16.mxu1 %v8303_v62  ;;  %v7279_v62 = vld [vmem:[%s10417_s1 + $0x86c] ss:$48 sps:$4 sm:$0xff]   ;;  %v7346_v51 = vld [vmem:[%s10417_s1 + $0x9e8] ss:$48 sps:$4 sm:$0xff]  }
  0xc7   : > { %v7351_v50 = vld [vmem:[%s10417_s1 + $0xcec] ss:$48 sps:$4 sm:$0xff]  }
  0xc8   : > { %2094 = vmatpush1.bf16.msra.mxu0 %v7262_v52  ;;  %v7349_v52 = vld [vmem:[%s10417_s1 + $0xce8] ss:$48 sps:$4 sm:$0xff]  }
  0xc9   : > { %2172 = vmatpush1.bf16.msra.mxu1 %v7265_v53  ;;  %2095 = vmatprep.subr.bf16.mxu0 %v7270_v54  ;;  %v7354_v53 = vld [vmem:[%s10417_s1 + $0x2a4] ss:$48 sps:$4 sm:$0xff]  }
  0xca   : > { %2173 = vmatprep.subr.bf16.mxu1 %v7273_v55  ;;  %v7357_v54 = vld [vmem:[%s10417_s1 + $0x664] ss:$48 sps:$4 sm:$0xff]  }
  0xcb   : > { %v221_v55 = vld [vmem:[%s8175_s28 + $0x8] sm:$0xff] }
  0xcc   : > { %2096 = vmatpush1.bf16.msra.mxu0 %v7268_v56  ;;  %v7352_v56 = vld [vmem:[%s10417_s1 + $0x2a0] ss:$48 sps:$4 sm:$0xff]  }
  0xcd   : > { %2174 = vmatpush1.bf16.msra.mxu1 %v7271_v57  ;;  %2097 = vmatprep.subr.bf16.mxu0 %v7276_v58  ;;  %v7355_v57 = vld [vmem:[%s10417_s1 + $0x660] ss:$48 sps:$4 sm:$0xff]   ;;  %v7360_v58 = vld [vmem:[%s10417_s1 + $0x244] ss:$48 sps:$4 sm:$0xff]  }
  0xce   : > { %2175 = vmatprep.subr.bf16.mxu1 %v7279_v62  ;;  %v7363_v62 = vld [vmem:[%s10417_s1 + $0x604] ss:$48 sps:$4 sm:$0xff]  }
  0xd0   : > { %2098 = vmatpush1.bf16.msra.mxu0 %v7274_v59  ;;  %v8856_v59 = vpack.c.bf16 %v221_v55, %v221_v55 }
  0xd1   : > { %2176 = vmatpush1.bf16.msra.mxu1 %v7277_v60  ;;  %2099 = vmatprep.subr.bf16.mxu0 %v7282_v61  ;;  %v7358_v60 = vld [vmem:[%s10417_s1 + $0x240] ss:$48 sps:$4 sm:$0xff]  }
  0xd2   : > { %2177 = vmatprep.subr.bf16.mxu1 %v7285_v63  ;;  %v7361_v61 = vld [vmem:[%s10417_s1 + $0x600] ss:$48 sps:$4 sm:$0xff]  }
  0xd3   : > { %v222_v63 = vld [vmem:[%s8175_s28 + $0x10] sm:$0xff] }
  0xd4   : > { %2100 = vmatpush1.bf16.msra.mxu0 %v7280_v0  ;;  %v8876_v0 = vpack.c.bf16 %v222_v63, %v222_v63  ;;  %v7441_v63 = vld [vmem:[%s10417_s1 + $0x42c] ss:$48 sps:$4 sm:$0xff]  }
  0xd5   : > { %2178 = vmatpush1.bf16.msra.mxu1 %v7283_v1  ;;  %2101 = vmatprep.subr.bf16.mxu0 %v7288_v2  ;;  %v7364_v1 = vld [vmem:[%s10417_s1 + $0x1e0] ss:$48 sps:$4 sm:$0xff]   ;;  %v7367_v2 = vld [vmem:[%s10417_s1 + $0x2a8] ss:$48 sps:$4 sm:$0xff]  }
  0xd6   : > { %2179 = vmatprep.subr.bf16.mxu1 %v7291_v3  ;;  %v7372_v3 = vld [vmem:[%s10417_s1 + $0x184] ss:$48 sps:$4 sm:$0xff]  }
  0xd8   : > { %2102 = vmatpush1.bf16.msra.mxu0 %v7286_v4  ;;  %v7375_v4 = vld [vmem:[%s10417_s1 + $0x24c] ss:$48 sps:$4 sm:$0xff]  }
  0xd9   : > { %2180 = vmatpush1.bf16.msra.mxu1 %v7289_v5  ;;  %2103 = vmatprep.subr.bf16.mxu0 %v7294_v6  ;;  %v7370_v5 = vld [vmem:[%s10417_s1 + $0x180] ss:$48 sps:$4 sm:$0xff]   ;;  %v7373_v6 = vld [vmem:[%s10417_s1 + $0x248] ss:$48 sps:$4 sm:$0xff]  }
  0xda   : > { %2181 = vmatprep.subr.bf16.mxu1 %v7297_v7  ;;  %v7378_v7 = vld [vmem:[%s10417_s1 + $0x124] ss:$48 sps:$4 sm:$0xff]  }
  0xdc   : > { %2104 = vmatpush2.bf16.msra.mxu0 %v7292_v8  ;;  %v7381_v8 = vld [vmem:[%s10417_s1 + $0x1ec] ss:$48 sps:$4 sm:$0xff]  }
  0xdd   : > { %2182 = vmatpush1.bf16.msra.mxu1 %v7295_v9  ;;  %2105 = vmatprep.subr.bf16.mxu0 %v7300_v10  ;;  %v7376_v9 = vld [vmem:[%s10417_s1 + $0x120] ss:$48 sps:$4 sm:$0xff]   ;;  %v7379_v10 = vld [vmem:[%s10417_s1 + $0x1e8] ss:$48 sps:$4 sm:$0xff]  }
  0xde   : > { %2183 = vmatprep.subr.bf16.mxu1 %v7303_v12  ;;  %v7384_v12 = vld [vmem:[%s10417_s1 + $0xc4] ss:$48 sps:$4 sm:$0xff]  }
  0xe0   : > { %2106 = vmatpush2.bf16.msra.mxu0 %v7298_v13  ;;  %v7387_v13 = vld [vmem:[%s10417_s1 + $0x18c] ss:$48 sps:$4 sm:$0xff]  }
  0xe1   : > { %2184 = vmatpush1.bf16.msra.mxu1 %v7301_v14  ;;  %2107 = vmatprep.subr.bf16.mxu0 %v7306_v15  ;;  %v7382_v14 = vld [vmem:[%s10417_s1 + $0xc0] ss:$48 sps:$4 sm:$0xff]   ;;  %v7385_v15 = vld [vmem:[%s10417_s1 + $0x188] ss:$48 sps:$4 sm:$0xff]  }
  0xe2   : > { %2185 = vmatprep.subr.bf16.mxu1 %v7309_v16  ;;  %v7390_v16 = vld [vmem:[%s10417_s1 + $0x64] ss:$48 sps:$4 sm:$0xff]  }
  0xe4   : > { %2108 = vmatpush2.bf16.msra.mxu0 %v7304_v17  ;;  %v7393_v17 = vld [vmem:[%s10417_s1 + $0x12c] ss:$48 sps:$4 sm:$0xff]  }
  0xe5   : > { %2186 = vmatpush2.bf16.msra.mxu1 %v7307_v19  ;;  %2109 = vmatprep.subr.bf16.mxu0 %v7312_v21  ;;  %v7388_v19 = vld [vmem:[%s10417_s1 + $0x60] ss:$48 sps:$4 sm:$0xff]   ;;  %v7391_v21 = vld [vmem:[%s10417_s1 + $0x128] ss:$48 sps:$4 sm:$0xff]  }
  0xe6   : > { %2187 = vmatprep.subr.bf16.mxu1 %v7315_v22  ;;  %v7396_v22 = vld [vmem:[%s10417_s1 + $0x4] ss:$48 sps:$4 sm:$0xff]  }
  0xe8   : > { %2110 = vmatpush2.bf16.msra.mxu0 %v7310_v23  ;;  %v7399_v23 = vld [vmem:[%s10417_s1 + $0xcc] ss:$48 sps:$4 sm:$0xff]  }
  0xe9   : > { %2188 = vmatpush2.bf16.msra.mxu1 %v7313_v24  ;;  %2111 = vmatprep.subr.bf16.mxu0 %v7318_v25  ;;  %v7394_v24 = vld [vmem:[%s10417_s1] ss:$48 sps:$4 sm:$0xff]   ;;  %v7397_v25 = vld [vmem:[%s10417_s1 + $0xc8] ss:$48 sps:$4 sm:$0xff]  }
  0xea   : > { %2189 = vmatprep.subr.bf16.mxu1 %v7321_v26  ;;  %v7402_v26 = vld [vmem:[%s10417_s1 + $0x5a4] ss:$48 sps:$4 sm:$0xff]  }
  0xec   : > { %2112 = vmatpush2.bf16.msra.mxu0 %v7316_v27  ;;  %v7405_v27 = vld [vmem:[%s10417_s1 + $0x6c] ss:$48 sps:$4 sm:$0xff]  }
  0xed   : > { %2190 = vmatpush2.bf16.msra.mxu1 %v7319_v28  ;;  %2113 = vmatprep.subr.bf16.mxu0 %v7324_v29  ;;  %v7400_v28 = vld [vmem:[%s10417_s1 + $0x5a0] ss:$48 sps:$4 sm:$0xff]   ;;  %v7403_v29 = vld [vmem:[%s10417_s1 + $0x68] ss:$48 sps:$4 sm:$0xff]  }
  0xee   : > { %2191 = vmatprep.subr.bf16.mxu1 %v7327_v30  ;;  %v7408_v30 = vld [vmem:[%s10417_s1 + $0x544] ss:$48 sps:$4 sm:$0xff]  }
  0xf0   : > { %2114 = vmatpush2.bf16.msra.mxu0 %v7322_v31  ;;  %v7411_v31 = vld [vmem:[%s10417_s1 + $0xc] ss:$48 sps:$4 sm:$0xff]  }
  0xf1   : > { %2192 = vmatpush2.bf16.msra.mxu1 %v7325_v32  ;;  %2115 = vmatprep.subr.bf16.mxu0 %v7330_v33  ;;  %v7406_v32 = vld [vmem:[%s10417_s1 + $0x540] ss:$48 sps:$4 sm:$0xff]   ;;  %v7409_v33 = vld [vmem:[%s10417_s1 + $0x8] ss:$48 sps:$4 sm:$0xff]  }
  0xf2   : > { %2193 = vmatprep.subr.bf16.mxu1 %v7333_v34  ;;  %v7414_v34 = vld [vmem:[%s10417_s1 + $0x4e4] ss:$48 sps:$4 sm:$0xff]  }
  0xf4   : > { %v8801_v39 = vpop.f32.mrf.mxu1  ;;  %2116 = vmatpush2.bf16.msra.mxu0 %v7328_v35  ;;  %v7417_v35 = vld [vmem:[%s10417_s1 + $0x5ac] ss:$48 sps:$4 sm:$0xff]  }
  0xf5   : > { %2194 = vmatpush2.bf16.msra.mxu1 %v7331_v36  ;;  %2117 = vmatprep.subr.bf16.mxu0 %v7336_v37  ;;  %v7412_v36 = vld [vmem:[%s10417_s1 + $0x4e0] ss:$48 sps:$4 sm:$0xff]   ;;  %v7415_v37 = vld [vmem:[%s10417_s1 + $0x5a8] ss:$48 sps:$4 sm:$0xff]  }
  0xf6   : > { %v8809_v42 = vpop.f32.mrf.mxu1  ;;  %2195 = vmatprep.subr.bf16.mxu1 %v7339_v38  ;;  %v7420_v38 = vld [vmem:[%s10417_s1 + $0x484] ss:$48 sps:$4 sm:$0xff]  }
  0xf8   : > { %v1838_v45 = vpop.f32.mrf.mxu1  ;;  %2118 = vmatpush2.bf16.msra.mxu0 %v7334_v40  ;;  %v7423_v40 = vld [vmem:[%s10417_s1 + $0x54c] ss:$48 sps:$4 sm:$0xff]  }
  0xf9   : > { %2196 = vmatpush2.bf16.msra.mxu1 %v7337_v41  ;;  %2222 = vmatprep.subr.bf16.mxu0 %v7345_v44  ;;  %v7418_v44 = vld [vmem:[%s10417_s1 + $0x480] ss:$48 sps:$4 sm:$0xff]   ;;  %v7421_v45 = vld [vmem:[%s10417_s1 + $0x548] ss:$48 sps:$4 sm:$0xff]  }
  0xfa   : > { %v1839_v48 = vpop.f32.mrf.mxu1  ;;  %2197 = vmatprep.subr.bf16.mxu1 %v7342_v43 }
  0xfb   : > { %2120 = vmatmul.mubr.bf16.vlgmr.msra.gmra.mxu0 %v8359_v18 }
  0xfc   : > { %2223 = vmatpush1.bf16.msra.mxu0 %v7343_v47  ;;  %2242 = vmatprep.mubr.bf16.mxu0 %v8056_v11  ;;  %v7426_v47 = vld [vmem:[%s10417_s1 + $0x424] ss:$48 sps:$4 sm:$0xff]  }
  0xfd   : > { %2198 = vmatpush2.bf16.msra.mxu1 %v7340_v46  ;;  %2224 = vmatprep.subr.bf16.mxu0 %v7351_v50  ;;  %v7424_v50 = vld [vmem:[%s10417_s1 + $0x420] ss:$48 sps:$4 sm:$0xff]  }
  0xfe   : > { %2199 = vmatprep.subr.bf16.mxu1 %v7348_v49 }
 0x100   : > { %2225 = vmatpush1.bf16.msra.mxu0 %v7349_v52 }
 0x101   : > { %2200 = vmatpush2.bf16.msra.mxu1 %v7346_v51  ;;  %3334 = vmatprep.subr.bf16.mxu0 %v7354_v53  ;;  %v7427_v51 = vld [vmem:[%s10417_s1 + $0x4e8] ss:$48 sps:$4 sm:$0xff]   ;;  %v7432_v53 = vld [vmem:[%s10417_s1 + $0x3c4] ss:$48 sps:$4 sm:$0xff]  }
 0x102   : > { %3387 = vmatprep.subr.bf16.mxu1 %v7357_v54 }
 0x103   : > { %6292 = vmatmul.mubr.msk.bf16.vlgmr.msra.gmra.mxu0 %vm1755_vm0, %v8178_v20  ;;  %v7369_v20 = vld [vmem:[%s10417_s1 + $0x2ac] ss:$48 sps:$4 sm:$0xff]  }
 0x104   : > { %2202 = vmatmul.mubr.bf16.vlgmr.msra.gmra.mxu1 %v8359_v18  ;;  %3335 = vmatpush1.bf16.msra.mxu0 %v7352_v56  ;;  %v7366_v18 = vld [vmem:[%s10417_s1 + $0x1e4] ss:$48 sps:$4 sm:$0xff]  }
 0x105   : > { %3388 = vmatpush1.bf16.msra.mxu1 %v7355_v57  ;;  %3336 = vmatprep.subr.bf16.mxu0 %v7360_v58  ;;  %v7430_v57 = vld [vmem:[%s10417_s1 + $0x3c0] ss:$48 sps:$4 sm:$0xff]   ;;  %v7433_v58 = vld [vmem:[%s10417_s1 + $0x488] ss:$48 sps:$4 sm:$0xff]  }
 0x106   : > { %3389 = vmatprep.subr.bf16.mxu1 %v7363_v62  ;;  %3407 = vmatprep.mubr.bf16.mxu1 %v8056_v11 }
 0x107   : > { %3366 = vmatprep.mubr.bf16.mxu0 %v8856_v59 }
 0x108   : > { %3337 = vmatpush1.bf16.msra.mxu0 %v7358_v60 }
 0x109   : > { %3390 = vmatpush1.bf16.msra.mxu1 %v7361_v61  ;;  %3338 = vmatprep.subr.bf16.mxu0 %v7366_v18  ;;  %v7438_v61 = vld [vmem:[%s10417_s1 + $0x364] ss:$48 sps:$4 sm:$0xff]  }
 0x10a   : > { %3416 = vmatprep.subr.bf16.mxu1 %v7369_v20  ;;  %v7436_v20 = vld [vmem:[%s10417_s1 + $0x360] ss:$48 sps:$4 sm:$0xff]  }
 0x10c   : > { %6509 = vmatmul.mubr.msk.bf16.vlgmr.msra.gmra.mxu1 %vm1755_vm0, %v8876_v0  ;;  %3339 = vmatpush1.bf16.msra.mxu0 %v7364_v1  ;;  %v7439_v1 = vld [vmem:[%s10417_s1 + $0x428] ss:$48 sps:$4 sm:$0xff]  }
 0x10d   : > { %3417 = vmatpush1.bf16.msra.mxu1 %v7367_v2  ;;  %3340 = vmatprep.subr.bf16.mxu0 %v7372_v3 }
 0x10e   : > { %3418 = vmatprep.subr.bf16.mxu1 %v7375_v4  ;;  %3448 = vmatprep.mubr.bf16.mxu1 %v8856_v59 }
 0x110   : > { %3341 = vmatpush1.bf16.msra.mxu0 %v7370_v5 }
 0x111   : > { %3419 = vmatpush1.bf16.msra.mxu1 %v7373_v6  ;;  %3342 = vmatprep.subr.bf16.mxu0 %v7378_v7  ;;  %v7444_v6 = vld [vmem:[%s10417_s1 + $0x304] ss:$48 sps:$4 sm:$0xff]   ;;  %v7447_v7 = vld [vmem:[%s10417_s1 + $0x3cc] ss:$48 sps:$4 sm:$0xff]  }
 0x112   : > { %3420 = vmatprep.subr.bf16.mxu1 %v7381_v8  ;;  %v7442_v8 = vld [vmem:[%s10417_s1 + $0x300] ss:$48 sps:$4 sm:$0xff]  }
 0x114   : > { %3343 = vmatpush1.bf16.msra.mxu0 %v7376_v9  ;;  %v7445_v9 = vld [vmem:[%s10417_s1 + $0x3c8] ss:$48 sps:$4 sm:$0xff]  }
 0x115   : > { %3421 = vmatpush1.bf16.msra.mxu1 %v7379_v10  ;;  %3344 = vmatprep.subr.bf16.mxu0 %v7384_v12  ;;  %v220_v10 = vld [vmem:[%s8175_s28] sm:$0xff] }
 0x116   : > { %3422 = vmatprep.subr.bf16.mxu1 %v7387_v13 }
 0x118   : > { %3345 = vmatpush1.bf16.msra.mxu0 %v7382_v14  ;;  %v7450_v14 = vld [vmem:[%s10417_s1 + $0x36c] ss:$48 sps:$4 sm:$0xff]  }
 0x119   : > { %3423 = vmatpush1.bf16.msra.mxu1 %v7385_v15  ;;  %3346 = vmatprep.subr.bf16.mxu0 %v7390_v16  ;;  %v7453_v15 = vld [vmem:[%s10417_s1 + $0x66c] ss:$48 sps:$4 sm:$0xff]   ;;  %v7448_v16 = vld [vmem:[%s10417_s1 + $0x368] ss:$48 sps:$4 sm:$0xff]  }
 0x11a   : > { %3424 = vmatprep.subr.bf16.mxu1 %v7393_v17  ;;  %v7451_v17 = vld [vmem:[%s10417_s1 + $0x668] ss:$48 sps:$4 sm:$0xff]  }
 0x11c   : > { %3347 = vmatpush1.bf16.msra.mxu0 %v7388_v19 }
 0x11d   : > { %3425 = vmatpush1.bf16.msra.mxu1 %v7391_v21  ;;  %3348 = vmatprep.subr.bf16.mxu0 %v7396_v22  ;;  %v9070_v21 = vpack.c.bf16 %v220_v10, %v220_v10  ;;  %v7523_v10 = vld [vmem:[%s10417_s1 + $0x5b8] ss:$48 sps:$4 sm:$0xff]  }
 0x11e   : > { %3426 = vmatprep.subr.bf16.mxu1 %v7399_v23  ;;  %v7456_v23 = vld [vmem:[%s10417_s1 + $0x30c] ss:$48 sps:$4 sm:$0xff]  }
 0x120   : > { %3349 = vmatpush1.bf16.msra.mxu0 %v7394_v24  ;;  %v7459_v24 = vld [vmem:[%s10417_s1 + $0x60c] ss:$48 sps:$4 sm:$0xff]  }
 0x121   : > { %3427 = vmatpush1.bf16.msra.mxu1 %v7397_v25  ;;  %3350 = vmatprep.subr.bf16.mxu0 %v7402_v26  ;;  %v7454_v25 = vld [vmem:[%s10417_s1 + $0x308] ss:$48 sps:$4 sm:$0xff]  }
 0x122   : > { %3428 = vmatprep.subr.bf16.mxu1 %v7405_v27  ;;  %v7457_v26 = vld [vmem:[%s10417_s1 + $0x608] ss:$48 sps:$4 sm:$0xff]   ;;  %v7462_v27 = vld [vmem:[%s10417_s1 + $0x2b4] ss:$48 sps:$4 sm:$0xff]  }
 0x124   : > { %3351 = vmatpush2.bf16.msra.mxu0 %v7400_v28  ;;  %v7465_v28 = vld [vmem:[%s10417_s1 + $0x674] ss:$48 sps:$4 sm:$0xff]  }
 0x125   : > { %3429 = vmatpush1.bf16.msra.mxu1 %v7403_v29  ;;  %3352 = vmatprep.subr.bf16.mxu0 %v7408_v30  ;;  %v7460_v29 = vld [vmem:[%s10417_s1 + $0x2b0] ss:$48 sps:$4 sm:$0xff]  }
 0x126   : > { %3430 = vmatprep.subr.bf16.mxu1 %v7411_v31  ;;  %v7463_v30 = vld [vmem:[%s10417_s1 + $0x670] ss:$48 sps:$4 sm:$0xff]   ;;  %v7468_v31 = vld [vmem:[%s10417_s1 + $0x254] ss:$48 sps:$4 sm:$0xff]  }
 0x128   : > { %3353 = vmatpush2.bf16.msra.mxu0 %v7406_v32  ;;  %v7471_v32 = vld [vmem:[%s10417_s1 + $0x614] ss:$48 sps:$4 sm:$0xff]  }
 0x129   : > { %3431 = vmatpush1.bf16.msra.mxu1 %v7409_v33  ;;  %3354 = vmatprep.subr.bf16.mxu0 %v7414_v34  ;;  %v7466_v33 = vld [vmem:[%s10417_s1 + $0x250] ss:$48 sps:$4 sm:$0xff]  }
 0x12a   : > { %3432 = vmatprep.subr.bf16.mxu1 %v7417_v35  ;;  %v7469_v34 = vld [vmem:[%s10417_s1 + $0x610] ss:$48 sps:$4 sm:$0xff]   ;;  %v7474_v35 = vld [vmem:[%s10417_s1 + $0x1f4] ss:$48 sps:$4 sm:$0xff]  }
 0x12b   : > { %v1793_v41 = vpop.f32.mrf.mxu0 }
 0x12c   : > { %v8990_v43 = vadd.f32 %v8801_v39, %v1793_v41  ;;  %3355 = vmatpush2.bf16.msra.mxu0 %v7412_v36  ;;  %v7429_v39 = vld [vmem:[%s10417_s1 + $0x4ec] ss:$48 sps:$4 sm:$0xff]  }
 0x12d   : > { %3433 = vmatpush2.bf16.msra.mxu1 %v7415_v37  ;;  %v1795_v46 = vpop.f32.mrf.mxu0  ;;  %3356 = vmatprep.subr.bf16.mxu0 %v7420_v38  ;;  %v7477_v36 = vld [vmem:[%s10417_s1 + $0x2bc] ss:$48 sps:$4 sm:$0xff]   ;;  %v7472_v37 = vld [vmem:[%s10417_s1 + $0x1f0] ss:$48 sps:$4 sm:$0xff]   ;;  %v7475_v38 = vld [vmem:[%s10417_s1 + $0x2b8] ss:$48 sps:$4 sm:$0xff]  }
 0x12e   : > { %3434 = vmatprep.subr.bf16.mxu1 %v7423_v40  ;;  %v9005_v48 = vadd.f32 %v8809_v42, %v1795_v46  ;;  %v7435_v42 = vld [vmem:[%s10417_s1 + $0x48c] ss:$48 sps:$4 sm:$0xff]   ;;  %v7480_v40 = vld [vmem:[%s10417_s1 + $0x194] ss:$48 sps:$4 sm:$0xff]  }
 0x12f   : > { %v1797_v49 = vpop.f32.mrf.mxu0  ;;  %v7483_v41 = vld [vmem:[%s10417_s1 + $0x25c] ss:$48 sps:$4 sm:$0xff]   ;;  %v7486_v46 = vld [vmem:[%s10417_s1 + $0x134] ss:$48 sps:$4 sm:$0xff]  }
 0x130   : > { %3357 = vmatpush2.bf16.msra.mxu0 %v7418_v44  ;;  %v7478_v44 = vld [vmem:[%s10417_s1 + $0x190] ss:$48 sps:$4 sm:$0xff]   ;;  %v7487_v49 = vld [vmem:[%s10417_s1 + $0x1f8] ss:$48 sps:$4 sm:$0xff]  }
 0x131   : > { %3435 = vmatpush2.bf16.msra.mxu1 %v7421_v45  ;;  %v1798_v52 = vpop.f32.mrf.mxu0  ;;  %3358 = vmatprep.subr.bf16.mxu0 %v7426_v47  ;;  %v7481_v45 = vld [vmem:[%s10417_s1 + $0x258] ss:$48 sps:$4 sm:$0xff]   ;;  %v7489_v47 = vld [vmem:[%s10417_s1 + $0x1fc] ss:$48 sps:$4 sm:$0xff]  }
 0x132   : > { %3436 = vmatprep.subr.bf16.mxu1 %v7429_v39  ;;  %v7484_v39 = vld [vmem:[%s10417_s1 + $0x130] ss:$48 sps:$4 sm:$0xff]  }
 0x133   : > { %v1916_v55 = vpop.f32.mrf.mxu0  ;;  %v7490_v52 = vld [vmem:[%s10417_s1 + $0xd0] ss:$48 sps:$4 sm:$0xff]  }
 0x134   : > { %v1875_v54 = vpop.f32.mrf.mxu1  ;;  %3359 = vmatpush2.bf16.msra.mxu0 %v7424_v50  ;;  %v7492_v50 = vld [vmem:[%s10417_s1 + $0xd4] ss:$48 sps:$4 sm:$0xff]  }
 0x135   : > { %v9019_v56 = vadd.f32 %v1916_v55, %v1875_v54  ;;  %3437 = vmatpush2.bf16.msra.mxu1 %v7427_v51  ;;  %v1918_v60 = vpop.f32.mrf.mxu0  ;;  %3360 = vmatprep.subr.bf16.mxu0 %v7432_v53  ;;  %v7495_v51 = vld [vmem:[%s10417_s1 + $0x19c] ss:$48 sps:$4 sm:$0xff]   ;;  %v7493_v53 = vld [vmem:[%s10417_s1 + $0x198] ss:$48 sps:$4 sm:$0xff]   ;;  %v7496_v55 = vld [vmem:[%s10417_s1 + $0x70] ss:$48 sps:$4 sm:$0xff]  }
 0x136   : > { %v1877_v62 = vpop.f32.mrf.mxu1  ;;  %3438 = vmatprep.subr.bf16.mxu1 %v7435_v42  ;;  %v7498_v42 = vld [vmem:[%s10417_s1 + $0x74] ss:$48 sps:$4 sm:$0xff]   ;;  %v7501_v54 = vld [vmem:[%s10417_s1 + $0x13c] ss:$48 sps:$4 sm:$0xff]  }
 0x137   : > { %v9033_v18 = vadd.f32 %v1918_v60, %v1877_v62  ;;  %v1920_v3 = vpop.f32.mrf.mxu0  ;;  %v7507_v62 = vld [vmem:[%s10417_s1 + $0xdc] ss:$48 sps:$4 sm:$0xff]   ;;  %v7502_v60 = vld [vmem:[%s10417_s1 + $0x10] ss:$48 sps:$4 sm:$0xff]  }
 0x138   : > { %v1879_v2 = vpop.f32.mrf.mxu1  ;;  %3361 = vmatpush2.bf16.msra.mxu0 %v7430_v57  ;;  %v7499_v57 = vld [vmem:[%s10417_s1 + $0x138] ss:$48 sps:$4 sm:$0xff]   ;;  %v7516_v3 = vld [vmem:[%s10417_s1 + $0x554] ss:$48 sps:$4 sm:$0xff]  }
 0x139   : > { %3439 = vmatpush2.bf16.msra.mxu1 %v7433_v58  ;;  %v1921_v5 = vpop.f32.mrf.mxu0  ;;  %3362 = vmatprep.subr.bf16.mxu0 %v7438_v61  ;;  %v7504_v58 = vld [vmem:[%s10417_s1 + $0x14] ss:$48 sps:$4 sm:$0xff]   ;;  %v7505_v61 = vld [vmem:[%s10417_s1 + $0xd8] ss:$48 sps:$4 sm:$0xff]  }
 0x13a   : > { %v1880_v4 = vpop.f32.mrf.mxu1  ;;  %3440 = vmatprep.subr.bf16.mxu1 %v7441_v63  ;;  %v7510_v63 = vld [vmem:[%s10417_s1 + $0x5b4] ss:$48 sps:$4 sm:$0xff]   ;;  %v7511_v2 = vld [vmem:[%s10417_s1 + $0x78] ss:$48 sps:$4 sm:$0xff]   ;;  %v7514_v5 = vld [vmem:[%s10417_s1 + $0x550] ss:$48 sps:$4 sm:$0xff]  }
 0x13b   : > { %v7519_v4 = vld [vmem:[%s10417_s1 + $0x1c] ss:$48 sps:$4 sm:$0xff]  }
 0x13c   : > { %v9054_v12 = vpop.f32.mrf.mxu1  ;;  %3363 = vmatpush2.bf16.msra.mxu0 %v7436_v20  ;;  %v7513_v20 = vld [vmem:[%s10417_s1 + $0x7c] ss:$48 sps:$4 sm:$0xff]  }
 0x13d   : > { %3441 = vmatpush2.bf16.msra.mxu1 %v7439_v1  ;;  %3364 = vmatprep.subr.bf16.mxu0 %v7444_v6  ;;  %v7508_v1 = vld [vmem:[%s10417_s1 + $0x5b0] ss:$48 sps:$4 sm:$0xff]   ;;  %v7517_v6 = vld [vmem:[%s10417_s1 + $0x18] ss:$48 sps:$4 sm:$0xff]  }
 0x13e   : > { %v9056_v13 = vpop.f32.mrf.mxu1  ;;  %3442 = vmatprep.subr.bf16.mxu1 %v7447_v7  ;;  %v7522_v7 = vld [vmem:[%s10417_s1 + $0x4f4] ss:$48 sps:$4 sm:$0xff]  }
 0x140   : > { %v2002_v19 = vpop.f32.mrf.mxu1  ;;  %3365 = vmatpush2.bf16.msra.mxu0 %v7442_v8  ;;  %v7525_v8 = vld [vmem:[%s10417_s1 + $0x5bc] ss:$48 sps:$4 sm:$0xff]  }
 0x141   : > { %3443 = vmatpush2.bf16.msra.mxu1 %v7445_v9  ;;  %3469 = vmatprep.subr.bf16.mxu0 %v7453_v15  ;;  %v7520_v9 = vld [vmem:[%s10417_s1 + $0x4f0] ss:$48 sps:$4 sm:$0xff]   ;;  %v7531_v15 = vld [vmem:[%s10417_s1 + $0x55c] ss:$48 sps:$4 sm:$0xff]  }
 0x142   : > { %v2003_v22 = vpop.f32.mrf.mxu1  ;;  %3444 = vmatprep.subr.bf16.mxu1 %v7450_v14  ;;  %v7528_v14 = vld [vmem:[%s10417_s1 + $0x494] ss:$48 sps:$4 sm:$0xff]   ;;  %v7526_v19 = vld [vmem:[%s10417_s1 + $0x490] ss:$48 sps:$4 sm:$0xff]  }
 0x143   : > { %3367 = vmatmul.mubr.bf16.vlgmr.msra.gmra.mxu0 %v9070_v21  ;;  %v7529_v22 = vld [vmem:[%s10417_s1 + $0x558] ss:$48 sps:$4 sm:$0xff]  }
 0x144   : > { %3470 = vmatpush1.bf16.msra.mxu0 %v7451_v17  ;;  %3489 = vmatprep.mubr.bf16.mxu0 %v8056_v11 }
 0x145   : > { %3445 = vmatpush2.bf16.msra.mxu1 %v7448_v16  ;;  %3471 = vmatprep.subr.bf16.mxu0 %v7459_v24  ;;  %v7534_v24 = vld [vmem:[%s10417_s1 + $0x434] ss:$48 sps:$4 sm:$0xff]  }
 0x146   : > { %3446 = vmatprep.subr.bf16.mxu1 %v7456_v23 }
 0x148   : > { %3472 = vmatpush1.bf16.msra.mxu0 %v7457_v26 }
 0x149   : > { %3447 = vmatpush2.bf16.msra.mxu1 %v7454_v25  ;;  %3498 = vmatprep.subr.bf16.mxu0 %v7462_v27  ;;  %v7532_v27 = vld [vmem:[%s10417_s1 + $0x430] ss:$48 sps:$4 sm:$0xff]  }
 0x14a   : > { %3551 = vmatprep.subr.bf16.mxu1 %v7465_v28  ;;  %v7535_v28 = vld [vmem:[%s10417_s1 + $0x4f8] ss:$48 sps:$4 sm:$0xff]  }
 0x14b   : > { %6510 = vmatmul.mubr.msk.bf16.vlgmr.msra.gmra.mxu0 %vm1755_vm0, %v8876_v0 }
 0x14c   : > { %3449 = vmatmul.mubr.bf16.vlgmr.msra.gmra.mxu1 %v9070_v21  ;;  %3499 = vmatpush1.bf16.msra.mxu0 %v7460_v29 }
 0x14d   : > { %3552 = vmatpush1.bf16.msra.mxu1 %v7463_v30  ;;  %3500 = vmatprep.subr.bf16.mxu0 %v7468_v31  ;;  %v7540_v30 = vld [vmem:[%s10417_s1 + $0x3d4] ss:$48 sps:$4 sm:$0xff]  }
 0x14e   : > { %3553 = vmatprep.subr.bf16.mxu1 %v7471_v32  ;;  %3571 = vmatprep.mubr.bf16.mxu1 %v8056_v11 }
 0x14f   : > { %3530 = vmatprep.mubr.bf16.mxu0 %v8856_v59 }
 0x150   : > { %3501 = vmatpush1.bf16.msra.mxu0 %v7466_v33 }
 0x151   : > { %3554 = vmatpush1.bf16.msra.mxu1 %v7469_v34  ;;  %3502 = vmatprep.subr.bf16.mxu0 %v7474_v35  ;;  %v7538_v34 = vld [vmem:[%s10417_s1 + $0x3d0] ss:$48 sps:$4 sm:$0xff]   ;;  %v7541_v35 = vld [vmem:[%s10417_s1 + $0x498] ss:$48 sps:$4 sm:$0xff]  }
 0x152   : > { %3580 = vmatprep.subr.bf16.mxu1 %v7477_v36 }
 0x154   : > { %6511 = vmatmul.mubr.msk.bf16.vlgmr.msra.gmra.mxu1 %vm1755_vm0, %v8876_v0  ;;  %3503 = vmatpush1.bf16.msra.mxu0 %v7472_v37 }
 0x155   : > { %3581 = vmatpush1.bf16.msra.mxu1 %v7475_v38  ;;  %3504 = vmatprep.subr.bf16.mxu0 %v7480_v40  ;;  %v7546_v38 = vld [vmem:[%s10417_s1 + $0x374] ss:$48 sps:$4 sm:$0xff]   ;;  %v7549_v40 = vld [vmem:[%s10417_s1 + $0x43c] ss:$48 sps:$4 sm:$0xff]  }
 0x156   : > { %3582 = vmatprep.subr.bf16.mxu1 %v7483_v41  ;;  %3612 = vmatprep.mubr.bf16.mxu1 %v8856_v59 }
 0x158   : > { %3505 = vmatpush1.bf16.msra.mxu0 %v7478_v44  ;;  %v7544_v44 = vld [vmem:[%s10417_s1 + $0x370] ss:$48 sps:$4 sm:$0xff]  }
 0x159   : > { %3583 = vmatpush1.bf16.msra.mxu1 %v7481_v45  ;;  %3506 = vmatprep.subr.bf16.mxu0 %v7486_v46  ;;  %v7547_v45 = vld [vmem:[%s10417_s1 + $0x438] ss:$48 sps:$4 sm:$0xff]  }
 0x15a   : > { %3584 = vmatprep.subr.bf16.mxu1 %v7489_v47 }
 0x15c   : > { %3507 = vmatpush1.bf16.msra.mxu0 %v7484_v39 }
 0x15d   : > { %3585 = vmatpush1.bf16.msra.mxu1 %v7487_v49  ;;  %3508 = vmatprep.subr.bf16.mxu0 %v7492_v50  ;;  %v7552_v50 = vld [vmem:[%s10417_s1 + $0x314] ss:$48 sps:$4 sm:$0xff]  }
 0x15e   : > { %3586 = vmatprep.subr.bf16.mxu1 %v7495_v51  ;;  %v7555_v51 = vld [vmem:[%s10417_s1 + $0x3dc] ss:$48 sps:$4 sm:$0xff]  }
 0x160   : > { %3509 = vmatpush1.bf16.msra.mxu0 %v7490_v52  ;;  %v7550_v52 = vld [vmem:[%s10417_s1 + $0x310] ss:$48 sps:$4 sm:$0xff]  }
 0x161   : > { %3587 = vmatpush1.bf16.msra.mxu1 %v7493_v53  ;;  %3510 = vmatprep.subr.bf16.mxu0 %v7498_v42  ;;  %v7553_v53 = vld [vmem:[%s10417_s1 + $0x3d8] ss:$48 sps:$4 sm:$0xff]  }
 0x162   : > { %3588 = vmatprep.subr.bf16.mxu1 %v7501_v54 }
 0x164   : > { %3511 = vmatpush1.bf16.msra.mxu0 %v7496_v55  ;;  %v7558_v55 = vld [vmem:[%s10417_s1 + $0x37c] ss:$48 sps:$4 sm:$0xff]  }
 0x165   : > { %3589 = vmatpush1.bf16.msra.mxu1 %v7499_v57  ;;  %3512 = vmatprep.subr.bf16.mxu0 %v7504_v58  ;;  %v7561_v57 = vld [vmem:[%s10417_s1 + $0x67c] ss:$48 sps:$4 sm:$0xff]   ;;  %v7556_v58 = vld [vmem:[%s10417_s1 + $0x378] ss:$48 sps:$4 sm:$0xff]  }
 0x166   : > { %3590 = vmatprep.subr.bf16.mxu1 %v7507_v62  ;;  %v7559_v62 = vld [vmem:[%s10417_s1 + $0x678] ss:$48 sps:$4 sm:$0xff]  }
 0x168   : > { %3513 = vmatpush1.bf16.msra.mxu0 %v7502_v60 }
 0x169   : > { %3591 = vmatpush1.bf16.msra.mxu1 %v7505_v61  ;;  %3514 = vmatprep.subr.bf16.mxu0 %v7510_v63  ;;  %v7564_v63 = vld [vmem:[%s10417_s1 + $0x31c] ss:$48 sps:$4 sm:$0xff]  }
 0x16a   : > { %3592 = vmatprep.subr.bf16.mxu1 %v7513_v20  ;;  %v7567_v20 = vld [vmem:[%s10417_s1 + $0x61c] ss:$48 sps:$4 sm:$0xff]  }
 0x16c   : > { %3515 = vmatpush2.bf16.msra.mxu0 %v7508_v1  ;;  %v7562_v1 = vld [vmem:[%s10417_s1 + $0x318] ss:$48 sps:$4 sm:$0xff]  }
 0x16d   : > { %3593 = vmatpush1.bf16.msra.mxu1 %v7511_v2  ;;  %3516 = vmatprep.subr.bf16.mxu0 %v7516_v3  ;;  %v7565_v2 = vld [vmem:[%s10417_s1 + $0x618] ss:$48 sps:$4 sm:$0xff]   ;;  %v7570_v3 = vld [vmem:[%s10417_s1 + $0x2c4] ss:$48 sps:$4 sm:$0xff]  }
 0x16e   : > { %3594 = vmatprep.subr.bf16.mxu1 %v7519_v4  ;;  %v7573_v4 = vld [vmem:[%s10417_s1 + $0x684] ss:$48 sps:$4 sm:$0xff]  }
 0x170   : > { %3517 = vmatpush2.bf16.msra.mxu0 %v7514_v5  ;;  %v7568_v5 = vld [vmem:[%s10417_s1 + $0x2c0] ss:$48 sps:$4 sm:$0xff]  }
 0x171   : > { %3595 = vmatpush1.bf16.msra.mxu1 %v7517_v6  ;;  %3518 = vmatprep.subr.bf16.mxu0 %v7522_v7  ;;  %v7571_v6 = vld [vmem:[%s10417_s1 + $0x680] ss:$48 sps:$4 sm:$0xff]   ;;  %v7576_v7 = vld [vmem:[%s10417_s1 + $0x264] ss:$48 sps:$4 sm:$0xff]  }
 0x172   : > { %3596 = vmatprep.subr.bf16.mxu1 %v7525_v8  ;;  %v7579_v8 = vld [vmem:[%s10417_s1 + $0x624] ss:$48 sps:$4 sm:$0xff]  }
 0x173   : > { %v1957_v16 = vpop.f32.mrf.mxu0 }
 0x174   : > { %v9233_v17 = vadd.f32 %v9054_v12, %v1957_v16  ;;  %3519 = vmatpush2.bf16.msra.mxu0 %v7520_v9  ;;  %v7537_v12 = vld [vmem:[%s10417_s1 + $0x4fc] ss:$48 sps:$4 sm:$0xff]   ;;  %v7574_v9 = vld [vmem:[%s10417_s1 + $0x260] ss:$48 sps:$4 sm:$0xff]  }
 0x175   : > { %3597 = vmatpush2.bf16.msra.mxu1 %v7523_v10  ;;  %v1959_v23 = vpop.f32.mrf.mxu0  ;;  %3520 = vmatprep.subr.bf16.mxu0 %v7528_v14  ;;  %v7577_v10 = vld [vmem:[%s10417_s1 + $0x620] ss:$48 sps:$4 sm:$0xff]   ;;  %v7582_v14 = vld [vmem:[%s10417_s1 + $0x204] ss:$48 sps:$4 sm:$0xff]  }
 0x176   : > { %3598 = vmatprep.subr.bf16.mxu1 %v7531_v15  ;;  %v9248_v25 = vadd.f32 %v9056_v13, %v1959_v23  ;;  %v7543_v13 = vld [vmem:[%s10417_s1 + $0x49c] ss:$48 sps:$4 sm:$0xff]   ;;  %v7580_v16 = vld [vmem:[%s10417_s1 + $0x200] ss:$48 sps:$4 sm:$0xff]  }
 0x177   : > { %v1961_v26 = vpop.f32.mrf.mxu0  ;;  %v7585_v15 = vld [vmem:[%s10417_s1 + $0x2cc] ss:$48 sps:$4 sm:$0xff]  }
 0x178   : > { %3521 = vmatpush2.bf16.msra.mxu0 %v7526_v19  ;;  %v7583_v19 = vld [vmem:[%s10417_s1 + $0x2c8] ss:$48 sps:$4 sm:$0xff]   ;;  %v7591_v23 = vld [vmem:[%s10417_s1 + $0x26c] ss:$48 sps:$4 sm:$0xff]   ;;  %v7594_v26 = vld [vmem:[%s10417_s1 + $0x144] ss:$48 sps:$4 sm:$0xff]  }
 0x179   : > { %3599 = vmatpush2.bf16.msra.mxu1 %v7529_v22  ;;  %v1962_v29 = vpop.f32.mrf.mxu0  ;;  %3522 = vmatprep.subr.bf16.mxu0 %v7534_v24  ;;  %v7588_v22 = vld [vmem:[%s10417_s1 + $0x1a4] ss:$48 sps:$4 sm:$0xff]   ;;  %v7586_v24 = vld [vmem:[%s10417_s1 + $0x1a0] ss:$48 sps:$4 sm:$0xff]  }
 0x17a   : > { %3600 = vmatprep.subr.bf16.mxu1 %v7537_v12  ;;  %v7589_v12 = vld [vmem:[%s10417_s1 + $0x268] ss:$48 sps:$4 sm:$0xff]  }
 0x17b   : > { %v2080_v32 = vpop.f32.mrf.mxu0  ;;  %v7595_v29 = vld [vmem:[%s10417_s1 + $0x208] ss:$48 sps:$4 sm:$0xff]  }
 0x17c   : > { %v2039_v31 = vpop.f32.mrf.mxu1  ;;  %3523 = vmatpush2.bf16.msra.mxu0 %v7532_v27  ;;  %v7597_v27 = vld [vmem:[%s10417_s1 + $0x20c] ss:$48 sps:$4 sm:$0xff]  }
 0x17d   : > { %v9262_v33 = vadd.f32 %v2080_v32, %v2039_v31  ;;  %3601 = vmatpush2.bf16.msra.mxu1 %v7535_v28  ;;  %v2082_v37 = vpop.f32.mrf.mxu0  ;;  %3524 = vmatprep.subr.bf16.mxu0 %v7540_v30  ;;  %v7592_v28 = vld [vmem:[%s10417_s1 + $0x140] ss:$48 sps:$4 sm:$0xff]   ;;  %v7600_v30 = vld [vmem:[%s10417_s1 + $0xe4] ss:$48 sps:$4 sm:$0xff]  }
 0x17e   : > { %v2041_v36 = vpop.f32.mrf.mxu1  ;;  %3602 = vmatprep.subr.bf16.mxu1 %v7543_v13  ;;  %v7603_v13 = vld [vmem:[%s10417_s1 + $0x1ac] ss:$48 sps:$4 sm:$0xff]   ;;  %v7598_v31 = vld [vmem:[%s10417_s1 + $0xe0] ss:$48 sps:$4 sm:$0xff]   ;;  %v7606_v32 = vld [vmem:[%s10417_s1 + $0x84] ss:$48 sps:$4 sm:$0xff]  }
 0x17f   : > { %v9276_v41 = vadd.f32 %v2082_v37, %v2041_v36  ;;  %v2084_v47 = vpop.f32.mrf.mxu0  ;;  %v7607_v36 = vld [vmem:[%s10417_s1 + $0x148] ss:$48 sps:$4 sm:$0xff]   ;;  %v7612_v37 = vld [vmem:[%s10417_s1 + $0x24] ss:$48 sps:$4 sm:$0xff]  }
 0x180   : > { %v2043_v46 = vpop.f32.mrf.mxu1  ;;  %3525 = vmatpush2.bf16.msra.mxu0 %v7538_v34  ;;  %v7609_v34 = vld [vmem:[%s10417_s1 + $0x14c] ss:$48 sps:$4 sm:$0xff]   ;;  %v7616_v47 = vld [vmem:[%s10417_s1 + $0x5c0] ss:$48 sps:$4 sm:$0xff]  }
 0x181   : > { %3603 = vmatpush2.bf16.msra.mxu1 %v7541_v35  ;;  %v2085_v49 = vpop.f32.mrf.mxu0  ;;  %3526 = vmatprep.subr.bf16.mxu0 %v7546_v38  ;;  %v7604_v35 = vld [vmem:[%s10417_s1 + $0x80] ss:$48 sps:$4 sm:$0xff]   ;;  %v7615_v38 = vld [vmem:[%s10417_s1 + $0xec] ss:$48 sps:$4 sm:$0xff]  }
 0x182   : > { %v2044_v39 = vpop.f32.mrf.mxu1  ;;  %3604 = vmatprep.subr.bf16.mxu1 %v7549_v40  ;;  %v7610_v40 = vld [vmem:[%s10417_s1 + $0x20] ss:$48 sps:$4 sm:$0xff]   ;;  %v7621_v46 = vld [vmem:[%s10417_s1 + $0x8c] ss:$48 sps:$4 sm:$0xff]   ;;  %v7624_v49 = vld [vmem:[%s10417_s1 + $0x564] ss:$48 sps:$4 sm:$0xff]  }
 0x183   : > { %v7619_v39 = vld [vmem:[%s10417_s1 + $0x88] ss:$48 sps:$4 sm:$0xff]  }
 0x184   : > { %v9296_v42 = vpop.f32.mrf.mxu1  ;;  %3527 = vmatpush2.bf16.msra.mxu0 %v7544_v44  ;;  %v7613_v44 = vld [vmem:[%s10417_s1 + $0xe8] ss:$48 sps:$4 sm:$0xff]  }
 0x185   : > { %3605 = vmatpush2.bf16.msra.mxu1 %v7547_v45  ;;  %3528 = vmatprep.subr.bf16.mxu0 %v7552_v50  ;;  %v7618_v45 = vld [vmem:[%s10417_s1 + $0x5c4] ss:$48 sps:$4 sm:$0xff]   ;;  %v7627_v50 = vld [vmem:[%s10417_s1 + $0x2c] ss:$48 sps:$4 sm:$0xff]  }
 0x186   : > { %v9298_v54 = vpop.f32.mrf.mxu1  ;;  %3606 = vmatprep.subr.bf16.mxu1 %v7555_v51  ;;  %v7622_v51 = vld [vmem:[%s10417_s1 + $0x560] ss:$48 sps:$4 sm:$0xff]  }
 0x188   : > { %v2166_v60 = vpop.f32.mrf.mxu1  ;;  %3529 = vmatpush2.bf16.msra.mxu0 %v7550_v52  ;;  %v7625_v52 = vld [vmem:[%s10417_s1 + $0x28] ss:$48 sps:$4 sm:$0xff]  }
 0x189   : > { %3607 = vmatpush2.bf16.msra.mxu1 %v7553_v53  ;;  %3633 = vmatprep.subr.bf16.mxu0 %v7561_v57  ;;  %v7630_v53 = vld [vmem:[%s10417_s1 + $0x504] ss:$48 sps:$4 sm:$0xff]   ;;  %v7628_v57 = vld [vmem:[%s10417_s1 + $0x500] ss:$48 sps:$4 sm:$0xff]   ;;  %v7639_v60 = vld [vmem:[%s10417_s1 + $0x56c] ss:$48 sps:$4 sm:$0xff]  }
 0x18a   : > { %v2167_v61 = vpop.f32.mrf.mxu1  ;;  %3608 = vmatprep.subr.bf16.mxu1 %v7558_v55  ;;  %v7633_v55 = vld [vmem:[%s10417_s1 + $0x5cc] ss:$48 sps:$4 sm:$0xff]  }
 0x18b   : > { %3531 = vmatmul.mubr.bf16.vlgmr.msra.gmra.mxu0 %v9070_v21 }
 0x18c   : > { %3634 = vmatpush1.bf16.msra.mxu0 %v7559_v62  ;;  %3653 = vmatprep.mubr.bf16.mxu0 %v8056_v11  ;;  %v7636_v62 = vld [vmem:[%s10417_s1 + $0x4a4] ss:$48 sps:$4 sm:$0xff]  }
 0x18d   : > { %3609 = vmatpush2.bf16.msra.mxu1 %v7556_v58  ;;  %3635 = vmatprep.subr.bf16.mxu0 %v7567_v20  ;;  %v7631_v58 = vld [vmem:[%s10417_s1 + $0x5c8] ss:$48 sps:$4 sm:$0xff]   ;;  %v7634_v20 = vld [vmem:[%s10417_s1 + $0x4a0] ss:$48 sps:$4 sm:$0xff]  }
 0x18e   : > { %3610 = vmatprep.subr.bf16.mxu1 %v7564_v63 }
 0x190   : > { %3636 = vmatpush1.bf16.msra.mxu0 %v7565_v2 }
 0x191   : > { %3611 = vmatpush2.bf16.msra.mxu1 %v7562_v1  ;;  %3662 = vmatprep.subr.bf16.mxu0 %v7570_v3  ;;  %v7637_v1 = vld [vmem:[%s10417_s1 + $0x568] ss:$48 sps:$4 sm:$0xff]   ;;  %v7642_v3 = vld [vmem:[%s10417_s1 + $0x444] ss:$48 sps:$4 sm:$0xff]  }
 0x192   : > { %3715 = vmatprep.subr.bf16.mxu1 %v7573_v4 }
 0x193   : > { %6512 = vmatmul.mubr.msk.bf16.vlgmr.msra.gmra.mxu0 %vm1755_vm0, %v8876_v0 }
 0x194   : > { %3613 = vmatmul.mubr.bf16.vlgmr.msra.gmra.mxu1 %v9070_v21  ;;  %3663 = vmatpush1.bf16.msra.mxu0 %v7568_v5 }
 0x195   : > { %3716 = vmatpush1.bf16.msra.mxu1 %v7571_v6  ;;  %3664 = vmatprep.subr.bf16.mxu0 %v7576_v7  ;;  %v7640_v6 = vld [vmem:[%s10417_s1 + $0x440] ss:$48 sps:$4 sm:$0xff]   ;;  %v7643_v7 = vld [vmem:[%s10417_s1 + $0x508] ss:$48 sps:$4 sm:$0xff]  }
 0x196   : > { %3717 = vmatprep.subr.bf16.mxu1 %v7579_v8  ;;  %3735 = vmatprep.mubr.bf16.mxu1 %v8056_v11 }
 0x197   : > { %3694 = vmatprep.mubr.bf16.mxu0 %v8856_v59 }
 0x198   : > { %3665 = vmatpush1.bf16.msra.mxu0 %v7574_v9  ;;  %v7648_v9 = vld [vmem:[%s10417_s1 + $0x3e4] ss:$48 sps:$4 sm:$0xff]  }
 0x199   : > { %3718 = vmatpush1.bf16.msra.mxu1 %v7577_v10  ;;  %3666 = vmatprep.subr.bf16.mxu0 %v7582_v14 }
 0x19a   : > { %3744 = vmatprep.subr.bf16.mxu1 %v7585_v15 }
 0x19c   : > { %6513 = vmatmul.mubr.msk.bf16.vlgmr.msra.gmra.mxu1 %vm1755_vm0, %v8876_v0  ;;  %3667 = vmatpush1.bf16.msra.mxu0 %v7580_v16  ;;  %v7646_v16 = vld [vmem:[%s10417_s1 + $0x3e0] ss:$48 sps:$4 sm:$0xff]  }
 0x19d   : > { %3745 = vmatpush1.bf16.msra.mxu1 %v7583_v19  ;;  %3668 = vmatprep.subr.bf16.mxu0 %v7588_v22  ;;  %v7649_v19 = vld [vmem:[%s10417_s1 + $0x4a8] ss:$48 sps:$4 sm:$0xff]  }
 0x19e   : > { %3746 = vmatprep.subr.bf16.mxu1 %v7591_v23  ;;  %3776 = vmatprep.mubr.bf16.mxu1 %v8856_v59  ;;  %v7601_v59 = vld [vmem:[%s10417_s1 + $0x1a8] ss:$48 sps:$4 sm:$0xff]  }
 0x1a0   : > { %3669 = vmatpush1.bf16.msra.mxu0 %v7586_v24  ;;  %v7654_v24 = vld [vmem:[%s10417_s1 + $0x384] ss:$48 sps:$4 sm:$0xff]  }
 0x1a1   : > { %3747 = vmatpush1.bf16.msra.mxu1 %v7589_v12  ;;  %3670 = vmatprep.subr.bf16.mxu0 %v7594_v26  ;;  %v7657_v12 = vld [vmem:[%s10417_s1 + $0x44c] ss:$48 sps:$4 sm:$0xff]  }
 0x1a2   : > { %3748 = vmatprep.subr.bf16.mxu1 %v7597_v27 }
 0x1a4   : > { %3671 = vmatpush1.bf16.msra.mxu0 %v7592_v28 }
 0x1a5   : > { %3749 = vmatpush1.bf16.msra.mxu1 %v7595_v29  ;;  %3672 = vmatprep.subr.bf16.mxu0 %v7600_v30  ;;  %v7652_v29 = vld [vmem:[%s10417_s1 + $0x380] ss:$48 sps:$4 sm:$0xff]   ;;  %v7655_v30 = vld [vmem:[%s10417_s1 + $0x448] ss:$48 sps:$4 sm:$0xff]  }
 0x1a6   : > { %3750 = vmatprep.subr.bf16.mxu1 %v7603_v13 }
 0x1a8   : > { %3673 = vmatpush1.bf16.msra.mxu0 %v7598_v31 }
 0x1a9   : > { %3751 = vmatpush1.bf16.msra.mxu1 %v7601_v59  ;;  %3674 = vmatprep.subr.bf16.mxu0 %v7606_v32  ;;  %v7660_v59 = vld [vmem:[%s10417_s1 + $0x324] ss:$48 sps:$4 sm:$0xff]   ;;  %v7663_v32 = vld [vmem:[%s10417_s1 + $0x3ec] ss:$48 sps:$4 sm:$0xff]  }
 0x1aa   : > { %3752 = vmatprep.subr.bf16.mxu1 %v7609_v34 }
 0x1ac   : > { %3675 = vmatpush1.bf16.msra.mxu0 %v7604_v35  ;;  %v7658_v35 = vld [vmem:[%s10417_s1 + $0x320] ss:$48 sps:$4 sm:$0xff]  }
 0x1ad   : > { %3753 = vmatpush1.bf16.msra.mxu1 %v7607_v36  ;;  %3676 = vmatprep.subr.bf16.mxu0 %v7612_v37  ;;  %v7661_v36 = vld [vmem:[%s10417_s1 + $0x3e8] ss:$48 sps:$4 sm:$0xff]  }
 0x1ae   : > { %3754 = vmatprep.subr.bf16.mxu1 %v7615_v38  ;;  %v7666_v38 = vld [vmem:[%s10417_s1 + $0x38c] ss:$48 sps:$4 sm:$0xff]  }
 0x1b0   : > { %3677 = vmatpush1.bf16.msra.mxu0 %v7610_v40  ;;  %v7669_v40 = vld [vmem:[%s10417_s1 + $0x68c] ss:$48 sps:$4 sm:$0xff]  }
 0x1b1   : > { %3755 = vmatpush1.bf16.msra.mxu1 %v7613_v44  ;;  %3678 = vmatprep.subr.bf16.mxu0 %v7618_v45  ;;  %v7664_v45 = vld [vmem:[%s10417_s1 + $0x388] ss:$48 sps:$4 sm:$0xff]  }
 0x1b2   : > { %3756 = vmatprep.subr.bf16.mxu1 %v7621_v46  ;;  %v7667_v46 = vld [vmem:[%s10417_s1 + $0x688] ss:$48 sps:$4 sm:$0xff]  }
 0x1b4   : > { %3679 = vmatpush2.bf16.msra.mxu0 %v7616_v47 }
 0x1b5   : > { %3757 = vmatpush1.bf16.msra.mxu1 %v7619_v39  ;;  %3680 = vmatprep.subr.bf16.mxu0 %v7624_v49  ;;  %v7672_v39 = vld [vmem:[%s10417_s1 + $0x32c] ss:$48 sps:$4 sm:$0xff]  }
 0x1b6   : > { %3758 = vmatprep.subr.bf16.mxu1 %v7627_v50  ;;  %v7675_v49 = vld [vmem:[%s10417_s1 + $0x62c] ss:$48 sps:$4 sm:$0xff]   ;;  %v7670_v50 = vld [vmem:[%s10417_s1 + $0x328] ss:$48 sps:$4 sm:$0xff]  }
 0x1b8   : > { %3681 = vmatpush2.bf16.msra.mxu0 %v7622_v51  ;;  %v7673_v51 = vld [vmem:[%s10417_s1 + $0x628] ss:$48 sps:$4 sm:$0xff]  }
 0x1b9   : > { %3759 = vmatpush1.bf16.msra.mxu1 %v7625_v52  ;;  %3682 = vmatprep.subr.bf16.mxu0 %v7630_v53  ;;  %v7678_v52 = vld [vmem:[%s10417_s1 + $0x1024] ss:$48 sps:$4 sm:$0xff]  }
 0x1ba   : > { %3760 = vmatprep.subr.bf16.mxu1 %v7633_v55  ;;  %v7681_v53 = vld [vmem:[%s10417_s1 + $0x13e4] ss:$48 sps:$4 sm:$0xff]  }
 0x1bb   : > { %v2121_v61 = vpop.f32.mrf.mxu0  ;;  %v5853_v55 = vld [vmem:[%s8175_s28 + $0x38] sm:$0xff] }
 0x1bc   : > { %v9473_v63 = vadd.f32 %v9296_v42, %v2121_v61  ;;  %3683 = vmatpush2.bf16.msra.mxu0 %v7628_v57  ;;  %v7645_v42 = vld [vmem:[%s10417_s1 + $0x50c] ss:$48 sps:$4 sm:$0xff]   ;;  %v7676_v57 = vld [vmem:[%s10417_s1 + $0x1020] ss:$48 sps:$4 sm:$0xff]   ;;  %v9585_v61 = vpack.c.bf16 %v5853_v55, %v5853_v55 }
 0x1bd   : > { %3761 = vmatpush2.bf16.msra.mxu1 %v7631_v58  ;;  %v2123_v2 = vpop.f32.mrf.mxu0  ;;  %3684 = vmatprep.subr.bf16.mxu0 %v7636_v62  ;;  %v7679_v58 = vld [vmem:[%s10417_s1 + $0x13e0] ss:$48 sps:$4 sm:$0xff]   ;;  %v7684_v62 = vld [vmem:[%s10417_s1 + $0xfc4] ss:$48 sps:$4 sm:$0xff]  }
 0x1be   : > { %3762 = vmatprep.subr.bf16.mxu1 %v7639_v60  ;;  %v9488_v4 = vadd.f32 %v9298_v54, %v2123_v2  ;;  %v7651_v54 = vld [vmem:[%s10417_s1 + $0x4ac] ss:$48 sps:$4 sm:$0xff]   ;;  %v7687_v60 = vld [vmem:[%s10417_s1 + $0x1384] ss:$48 sps:$4 sm:$0xff]  }
 0x1bf   : > { %v2125_v5 = vpop.f32.mrf.mxu0  ;;  %v5854_v2 = vld [vmem:[%s8175_s28 + $0x40] sm:$0xff] }
 0x1c0   : > { %3685 = vmatpush2.bf16.msra.mxu0 %v7634_v20  ;;  %v7682_v20 = vld [vmem:[%s10417_s1 + $0xfc0] ss:$48 sps:$4 sm:$0xff]   ;;  %v7691_v5 = vld [vmem:[%s10417_s1 + $0x1028] ss:$48 sps:$4 sm:$0xff]  }
 0x1c1   : > { %3763 = vmatpush2.bf16.msra.mxu1 %v7637_v1  ;;  %v2126_v8 = vpop.f32.mrf.mxu0  ;;  %3686 = vmatprep.subr.bf16.mxu0 %v7642_v3  ;;  %v7685_v1 = vld [vmem:[%s10417_s1 + $0x1380] ss:$48 sps:$4 sm:$0xff]   ;;  %v9605_v3 = vpack.c.bf16 %v5854_v2, %v5854_v2 }
 0x1c2   : > { %3764 = vmatprep.subr.bf16.mxu1 %v7645_v42  ;;  %v7688_v42 = vld [vmem:[%s10417_s1 + $0xf60] ss:$48 sps:$4 sm:$0xff]  }
 0x1c3   : > { %v2244_v14 = vpop.f32.mrf.mxu0  ;;  %v7694_v8 = vld [vmem:[%s10417_s1 + $0xf00] ss:$48 sps:$4 sm:$0xff]  }
 0x1c4   : > { %v2203_v10 = vpop.f32.mrf.mxu1  ;;  %3687 = vmatpush2.bf16.msra.mxu0 %v7640_v6  ;;  %v7696_v6 = vld [vmem:[%s10417_s1 + $0xf04] ss:$48 sps:$4 sm:$0xff]  }
 0x1c5   : > { %v9502_v15 = vadd.f32 %v2244_v14, %v2203_v10  ;;  %3765 = vmatpush2.bf16.msra.mxu1 %v7643_v7  ;;  %v2246_v23 = vpop.f32.mrf.mxu0  ;;  %3688 = vmatprep.subr.bf16.mxu0 %v7648_v9  ;;  %v7699_v7 = vld [vmem:[%s10417_s1 + $0xfcc] ss:$48 sps:$4 sm:$0xff]   ;;  %v7697_v9 = vld [vmem:[%s10417_s1 + $0xfc8] ss:$48 sps:$4 sm:$0xff]   ;;  %v7700_v14 = vld [vmem:[%s10417_s1 + $0xea0] ss:$48 sps:$4 sm:$0xff]  }
 0x1c6   : > { %v2205_v22 = vpop.f32.mrf.mxu1  ;;  %3766 = vmatprep.subr.bf16.mxu1 %v7651_v54  ;;  %v7702_v54 = vld [vmem:[%s10417_s1 + $0xea4] ss:$48 sps:$4 sm:$0xff]   ;;  %v7705_v10 = vld [vmem:[%s10417_s1 + $0xf6c] ss:$48 sps:$4 sm:$0xff]  }
 0x1c7   : > { %v9516_v26 = vadd.f32 %v2246_v23, %v2205_v22  ;;  %v2248_v28 = vpop.f32.mrf.mxu0  ;;  %v7711_v22 = vld [vmem:[%s10417_s1 + $0xf0c] ss:$48 sps:$4 sm:$0xff]   ;;  %v7706_v23 = vld [vmem:[%s10417_s1 + $0xe40] ss:$48 sps:$4 sm:$0xff]  }
 0x1c8   : > { %v2207_v27 = vpop.f32.mrf.mxu1  ;;  %3689 = vmatpush2.bf16.msra.mxu0 %v7646_v16  ;;  %v7703_v16 = vld [vmem:[%s10417_s1 + $0xf68] ss:$48 sps:$4 sm:$0xff]   ;;  %v7712_v28 = vld [vmem:[%s10417_s1 + $0xde0] ss:$48 sps:$4 sm:$0xff]  }
 0x1c9   : > { %3767 = vmatpush2.bf16.msra.mxu1 %v7649_v19  ;;  %v2249_v31 = vpop.f32.mrf.mxu0  ;;  %3690 = vmatprep.subr.bf16.mxu0 %v7654_v24  ;;  %v7708_v19 = vld [vmem:[%s10417_s1 + $0xe44] ss:$48 sps:$4 sm:$0xff]   ;;  %v7709_v24 = vld [vmem:[%s10417_s1 + $0xf08] ss:$48 sps:$4 sm:$0xff]   ;;  %v7717_v27 = vld [vmem:[%s10417_s1 + $0xeac] ss:$48 sps:$4 sm:$0xff]  }
 0x1ca   : > { %v2208_v13 = vpop.f32.mrf.mxu1  ;;  %3768 = vmatprep.subr.bf16.mxu1 %v7657_v12  ;;  %v7714_v12 = vld [vmem:[%s10417_s1 + $0xde4] ss:$48 sps:$4 sm:$0xff]   ;;  %v7718_v31 = vld [vmem:[%s10417_s1 + $0xd80] ss:$48 sps:$4 sm:$0xff]  }
 0x1cb   : > { %v7723_v13 = vld [vmem:[%s10417_s1 + $0xe4c] ss:$48 sps:$4 sm:$0xff]  }
 0x1cc   : > { %v9530_v34 = vpop.f32.mrf.mxu1  ;;  %3691 = vmatpush2.bf16.msra.mxu0 %v7652_v29  ;;  %v7715_v29 = vld [vmem:[%s10417_s1 + $0xea8] ss:$48 sps:$4 sm:$0xff]  }
 0x1cd   : > { %3769 = vmatpush2.bf16.msra.mxu1 %v7655_v30  ;;  %3692 = vmatprep.subr.bf16.mxu0 %v7660_v59  ;;  %v7720_v30 = vld [vmem:[%s10417_s1 + $0xd84] ss:$48 sps:$4 sm:$0xff]   ;;  %v7721_v59 = vld [vmem:[%s10417_s1 + $0xe48] ss:$48 sps:$4 sm:$0xff]  }
 0x1ce   : > { %v9538_v37 = vpop.f32.mrf.mxu1  ;;  %3770 = vmatprep.subr.bf16.mxu1 %v7663_v32  ;;  %v7726_v32 = vld [vmem:[%s10417_s1 + $0x1324] ss:$48 sps:$4 sm:$0xff]  }
 0x1d0   : > { %v3413_v44 = vpop.f32.mrf.mxu1  ;;  %3693 = vmatpush2.bf16.msra.mxu0 %v7658_v35  ;;  %v7729_v35 = vld [vmem:[%s10417_s1 + $0xdec] ss:$48 sps:$4 sm:$0xff]  }
 0x1d1   : > { %3771 = vmatpush2.bf16.msra.mxu1 %v7661_v36  ;;  %3797 = vmatprep.subr.bf16.mxu0 %v7669_v40  ;;  %v7724_v36 = vld [vmem:[%s10417_s1 + $0x1320] ss:$48 sps:$4 sm:$0xff]   ;;  %v7732_v40 = vld [vmem:[%s10417_s1 + $0x12c4] ss:$48 sps:$4 sm:$0xff]   ;;  %v7735_v44 = vld [vmem:[%s10417_s1 + $0xd8c] ss:$48 sps:$4 sm:$0xff]  }
 0x1d2   : > { %v3414_v47 = vpop.f32.mrf.mxu1  ;;  %3772 = vmatprep.subr.bf16.mxu1 %v7666_v38  ;;  %v7727_v38 = vld [vmem:[%s10417_s1 + $0xde8] ss:$48 sps:$4 sm:$0xff]  }
 0x1d3   : > { %3695 = vmatmul.mubr.bf16.vlgmr.msra.gmra.mxu0 %v9070_v21  ;;  %v7738_v47 = vld [vmem:[%s10417_s1 + $0x1264] ss:$48 sps:$4 sm:$0xff]  }
 0x1d4   : > { %3798 = vmatpush1.bf16.msra.mxu0 %v7667_v46  ;;  %3817 = vmatprep.mubr.bf16.mxu0 %v8056_v11  ;;  %v7733_v46 = vld [vmem:[%s10417_s1 + $0xd88] ss:$48 sps:$4 sm:$0xff]  }
 0x1d5   : > { %3773 = vmatpush2.bf16.msra.mxu1 %v7664_v45  ;;  %3799 = vmatprep.subr.bf16.mxu0 %v7675_v49  ;;  %v7730_v45 = vld [vmem:[%s10417_s1 + $0x12c0] ss:$48 sps:$4 sm:$0xff]  }
 0x1d6   : > { %3774 = vmatprep.subr.bf16.mxu1 %v7672_v39  ;;  %v7741_v39 = vld [vmem:[%s10417_s1 + $0x132c] ss:$48 sps:$4 sm:$0xff]   ;;  %v7736_v49 = vld [vmem:[%s10417_s1 + $0x1260] ss:$48 sps:$4 sm:$0xff]  }
 0x1d8   : > { %3800 = vmatpush1.bf16.msra.mxu0 %v7673_v51  ;;  %v7744_v51 = vld [vmem:[%s10417_s1 + $0x1204] ss:$48 sps:$4 sm:$0xff]  }
 0x1d9   : > { %3775 = vmatpush2.bf16.msra.mxu1 %v7670_v50  ;;  %5126 = vmatprep.subr.bf16.mxu0 %v7678_v52  ;;  %v7739_v50 = vld [vmem:[%s10417_s1 + $0x1328] ss:$48 sps:$4 sm:$0xff]   ;;  %v7747_v52 = vld [vmem:[%s10417_s1 + $0x12cc] ss:$48 sps:$4 sm:$0xff]  }
 0x1da   : > { %5179 = vmatprep.subr.bf16.mxu1 %v7681_v53 }
 0x1db   : > { %6514 = vmatmul.mubr.msk.bf16.vlgmr.msra.gmra.mxu0 %vm1755_vm0, %v8876_v0  ;;  %v7693_v0 = vld [vmem:[%s10417_s1 + $0x102c] ss:$48 sps:$4 sm:$0xff]  }
 0x1dc   : > { %3777 = vmatmul.mubr.bf16.vlgmr.msra.gmra.mxu1 %v9070_v21  ;;  %5127 = vmatpush1.bf16.msra.mxu0 %v7676_v57  ;;  %v7690_v21 = vld [vmem:[%s10417_s1 + $0xf64] ss:$48 sps:$4 sm:$0xff]   ;;  %v7742_v57 = vld [vmem:[%s10417_s1 + $0x1200] ss:$48 sps:$4 sm:$0xff]  }
 0x1dd   : > { %5180 = vmatpush1.bf16.msra.mxu1 %v7679_v58  ;;  %5128 = vmatprep.subr.bf16.mxu0 %v7684_v62  ;;  %v7745_v58 = vld [vmem:[%s10417_s1 + $0x12c8] ss:$48 sps:$4 sm:$0xff]  }
 0x1de   : > { %5181 = vmatprep.subr.bf16.mxu1 %v7687_v60  ;;  %5199 = vmatprep.mubr.bf16.mxu1 %v8056_v11  ;;  %v7750_v60 = vld [vmem:[%s10417_s1 + $0x11a4] ss:$48 sps:$4 sm:$0xff]  }
 0x1df   : > { %5158 = vmatprep.mubr.bf16.mxu0 %v9585_v61 }
 0x1e0   : > { %5129 = vmatpush1.bf16.msra.mxu0 %v7682_v20 }
 0x1e1   : > { %5182 = vmatpush1.bf16.msra.mxu1 %v7685_v1  ;;  %5130 = vmatprep.subr.bf16.mxu0 %v7690_v21 }
 0x1e2   : > { %5208 = vmatprep.subr.bf16.mxu1 %v7693_v0  ;;  %v7748_v0 = vld [vmem:[%s10417_s1 + $0x11a0] ss:$48 sps:$4 sm:$0xff]  }
 0x1e4   : > { %6947 = vmatmul.mubr.msk.bf16.vlgmr.msra.gmra.mxu1 %vm1755_vm0, %v9605_v3  ;;  %5131 = vmatpush1.bf16.msra.mxu0 %v7688_v42  ;;  %v7751_v42 = vld [vmem:[%s10417_s1 + $0x1268] ss:$48 sps:$4 sm:$0xff]  }
 0x1e5   : > { %5209 = vmatpush1.bf16.msra.mxu1 %v7691_v5  ;;  %5132 = vmatprep.subr.bf16.mxu0 %v7696_v6 }
 0x1e6   : > { %5210 = vmatprep.subr.bf16.mxu1 %v7699_v7  ;;  %5240 = vmatprep.mubr.bf16.mxu1 %v9585_v61 }
 0x1e8   : > { %5133 = vmatpush1.bf16.msra.mxu0 %v7694_v8  ;;  %v7754_v8 = vld [vmem:[%s10417_s1 + $0x1140] ss:$48 sps:$4 sm:$0xff]  }
 0x1e9   : > { %5211 = vmatpush1.bf16.msra.mxu1 %v7697_v9  ;;  %5134 = vmatprep.subr.bf16.mxu0 %v7702_v54  ;;  %v7757_v9 = vld [vmem:[%s10417_s1 + $0x1208] ss:$48 sps:$4 sm:$0xff]  }
 0x1ea   : > { %5212 = vmatprep.subr.bf16.mxu1 %v7705_v10 }
 0x1ec   : > { %5135 = vmatpush1.bf16.msra.mxu0 %v7700_v14  ;;  %v7762_v14 = vld [vmem:[%s10417_s1 + $0x10e4] ss:$48 sps:$4 sm:$0xff]  }
 0x1ed   : > { %5213 = vmatpush1.bf16.msra.mxu1 %v7703_v16  ;;  %5136 = vmatprep.subr.bf16.mxu0 %v7708_v19 }
 0x1ee   : > { %5214 = vmatprep.subr.bf16.mxu1 %v7711_v22 }
 0x1f0   : > { %5137 = vmatpush1.bf16.msra.mxu0 %v7706_v23 }
 0x1f1   : > { %5215 = vmatpush1.bf16.msra.mxu1 %v7709_v24  ;;  %5138 = vmatprep.subr.bf16.mxu0 %v7714_v12  ;;  %v7760_v12 = vld [vmem:[%s10417_s1 + $0x10e0] ss:$48 sps:$4 sm:$0xff]  }
 0x1f2   : > { %5216 = vmatprep.subr.bf16.mxu1 %v7717_v27  ;;  %v7763_v27 = vld [vmem:[%s10417_s1 + $0x11a8] ss:$48 sps:$4 sm:$0xff]  }
 0x1f4   : > { %5139 = vmatpush1.bf16.msra.mxu0 %v7712_v28 }
 0x1f5   : > { %5217 = vmatpush1.bf16.msra.mxu1 %v7715_v29  ;;  %5140 = vmatprep.subr.bf16.mxu0 %v7720_v30  ;;  %v7771_v30 = vld [vmem:[%s10417_s1 + $0x114c] ss:$48 sps:$4 sm:$0xff]  }
 0x1f6   : > { %5218 = vmatprep.subr.bf16.mxu1 %v7723_v13 }
 0x1f8   : > { %5141 = vmatpush1.bf16.msra.mxu0 %v7718_v31  ;;  %v7766_v31 = vld [vmem:[%s10417_s1 + $0x1080] ss:$48 sps:$4 sm:$0xff]  }
 0x1f9   : > { %5219 = vmatpush1.bf16.msra.mxu1 %v7721_v59  ;;  %5142 = vmatprep.subr.bf16.mxu0 %v7726_v32  ;;  %v7769_v59 = vld [vmem:[%s10417_s1 + $0x1148] ss:$48 sps:$4 sm:$0xff]  }
 0x1fa   : > { %5220 = vmatprep.subr.bf16.mxu1 %v7729_v35  ;;  %v5852_v32 = vld [vmem:[%s8175_s28 + $0x30] sm:$0xff]  ;;  %s6969_s28 = smul.u32 96, %s197_s22 }
 0x1fc   : > { %5143 = vmatpush2.bf16.msra.mxu0 %v7724_v36  ;;  %v7774_v36 = vld [vmem:[%s10417_s1 + $0x10ec] ss:$48 sps:$4 sm:$0xff]   ;;  %s10326_s12 = scalar_lea.vmem [#allocation3], %s6969_s28 }
 0x1fd   : > { %5221 = vmatpush1.bf16.msra.mxu1 %v7727_v38  ;;  %5144 = vmatprep.subr.bf16.mxu0 %v7732_v40  ;;  %v7777_v38 = vld [vmem:[%s10417_s1 + $0x13ec] ss:$48 sps:$4 sm:$0xff]  }
 0x1fe   : > { %5222 = vmatprep.subr.bf16.mxu1 %v7735_v44  ;;  %v9797_v44 = vpack.c.bf16 %v5852_v32, %v5852_v32  ;;  %v7835_v32 = vld [vmem:[%s10417_s1 + $0xdf8] ss:$48 sps:$4 sm:$0xff]  }
 0x200   : > { %5145 = vmatpush2.bf16.msra.mxu0 %v7730_v45  ;;  %v7772_v45 = vld [vmem:[%s10417_s1 + $0x10e8] ss:$48 sps:$4 sm:$0xff]  }
 0x201   : > { %5223 = vmatpush1.bf16.msra.mxu1 %v7733_v46  ;;  %5146 = vmatprep.subr.bf16.mxu0 %v7738_v47  ;;  %v7775_v46 = vld [vmem:[%s10417_s1 + $0x13e8] ss:$48 sps:$4 sm:$0xff]  }
 0x202   : > { %5224 = vmatprep.subr.bf16.mxu1 %v7741_v39  ;;  %v7780_v39 = vld [vmem:[%s10417_s1 + $0x108c] ss:$48 sps:$4 sm:$0xff]  }
 0x203   : > { %v3368_v53 = vpop.f32.mrf.mxu0 }
 0x204   : > { %v3369_v55 = vadd.f32 %v3368_v53, %v8990_v43  ;;  %5147 = vmatpush2.bf16.msra.mxu0 %v7736_v49  ;;  %v7753_v43 = vld [vmem:[%s10417_s1 + $0x126c] ss:$48 sps:$4 sm:$0xff]   ;;  %v7789_v53 = vld [vmem:[%s10417_s1 + $0x13f4] ss:$48 sps:$4 sm:$0xff]  }
 0x205   : > { %5225 = vmatpush2.bf16.msra.mxu1 %v7739_v50  ;;  %v3370_v62 = vpop.f32.mrf.mxu0  ;;  %5148 = vmatprep.subr.bf16.mxu0 %v7744_v51  ;;  %v7783_v49 = vld [vmem:[%s10417_s1 + $0x138c] ss:$48 sps:$4 sm:$0xff]   ;;  %v7778_v50 = vld [vmem:[%s10417_s1 + $0x1088] ss:$48 sps:$4 sm:$0xff]  }
 0x206   : > { %5226 = vmatprep.subr.bf16.mxu1 %v7747_v52  ;;  %v9732_v20 = vadd.f32 %v9530_v34, %v3369_v55  ;;  %v3371_v1 = vadd.f32 %v3370_v62, %v9005_v48  ;;  %v7756_v48 = vld [vmem:[%s10417_s1 + $0x1144] ss:$48 sps:$4 sm:$0xff]   ;;  %v7759_v34 = vld [vmem:[%s10417_s1 + $0x120c] ss:$48 sps:$4 sm:$0xff]   ;;  %v7781_v51 = vld [vmem:[%s10417_s1 + $0x1388] ss:$48 sps:$4 sm:$0xff]  }
 0x207   : > { %v3372_v2 = vpop.f32.mrf.mxu0  ;;  %v7786_v52 = vld [vmem:[%s10417_s1 + $0x1034] ss:$48 sps:$4 sm:$0xff]   ;;  %v7784_v55 = vld [vmem:[%s10417_s1 + $0x1030] ss:$48 sps:$4 sm:$0xff]  }
 0x208   : > { %v9736_v21 = vadd.f32 %v9538_v37, %v3371_v1  ;;  %5149 = vmatpush2.bf16.msra.mxu0 %v7742_v57  ;;  %v7787_v57 = vld [vmem:[%s10417_s1 + $0x13f0] ss:$48 sps:$4 sm:$0xff]   ;;  %v7795_v62 = vld [vmem:[%s10417_s1 + $0x1394] ss:$48 sps:$4 sm:$0xff]   ;;  %v7801_v2 = vld [vmem:[%s10417_s1 + $0x103c] ss:$48 sps:$4 sm:$0xff]  }
 0x209   : > { %5227 = vmatpush2.bf16.msra.mxu1 %v7745_v58  ;;  %v3373_v5 = vpop.f32.mrf.mxu0  ;;  %5150 = vmatprep.subr.bf16.mxu0 %v7750_v60  ;;  %v7792_v58 = vld [vmem:[%s10417_s1 + $0xfd4] ss:$48 sps:$4 sm:$0xff]   ;;  %v7790_v60 = vld [vmem:[%s10417_s1 + $0xfd0] ss:$48 sps:$4 sm:$0xff]  }
 0x20a   : > { %5228 = vmatprep.subr.bf16.mxu1 %v7753_v43  ;;  %v7793_v43 = vld [vmem:[%s10417_s1 + $0x1390] ss:$48 sps:$4 sm:$0xff]   ;;  %v7798_v1 = vld [vmem:[%s10417_s1 + $0xf74] ss:$48 sps:$4 sm:$0xff]  }
 0x20b   : > { %v3491_v6 = vpop.f32.mrf.mxu0  ;;  %v7804_v5 = vld [vmem:[%s10417_s1 + $0xf14] ss:$48 sps:$4 sm:$0xff]  }
 0x20c   : > { %v3450_v37 = vpop.f32.mrf.mxu1  ;;  %5151 = vmatpush2.bf16.msra.mxu0 %v7748_v0  ;;  %v7796_v0 = vld [vmem:[%s10417_s1 + $0xf70] ss:$48 sps:$4 sm:$0xff]  }
 0x20d   : > { %v3451_v7 = vadd.f32 %v3450_v37, %v9019_v56  ;;  %5229 = vmatpush2.bf16.msra.mxu1 %v7751_v42  ;;  %v3493_v10 = vpop.f32.mrf.mxu0  ;;  %5152 = vmatprep.subr.bf16.mxu0 %v7756_v48  ;;  %v7765_v56 = vld [vmem:[%s10417_s1 + $0x11ac] ss:$48 sps:$4 sm:$0xff]   ;;  %v7799_v42 = vld [vmem:[%s10417_s1 + $0x1038] ss:$48 sps:$4 sm:$0xff]  }
 0x20e   : > { %v3452_v54 = vpop.f32.mrf.mxu1  ;;  %5230 = vmatprep.subr.bf16.mxu1 %v7759_v34  ;;  %v7807_v48 = vld [vmem:[%s10417_s1 + $0xfdc] ss:$48 sps:$4 sm:$0xff]   ;;  %v7802_v34 = vld [vmem:[%s10417_s1 + $0xf10] ss:$48 sps:$4 sm:$0xff]   ;;  %v7805_v37 = vld [vmem:[%s10417_s1 + $0xfd8] ss:$48 sps:$4 sm:$0xff]  }
 0x20f   : > { %v9763_v16 = vadd.f32 %v3491_v6, %v3451_v7  ;;  %v3453_v19 = vadd.f32 %v3452_v54, %v9033_v18  ;;  %v3495_v23 = vpop.f32.mrf.mxu0  ;;  %v7768_v18 = vld [vmem:[%s10417_s1 + $0x1084] ss:$48 sps:$4 sm:$0xff]   ;;  %v7813_v7 = vld [vmem:[%s10417_s1 + $0xf7c] ss:$48 sps:$4 sm:$0xff]  }
 0x210   : > { %v3454_v22 = vpop.f32.mrf.mxu1  ;;  %5153 = vmatpush2.bf16.msra.mxu0 %v7754_v8  ;;  %v7810_v6 = vld [vmem:[%s10417_s1 + $0xeb4] ss:$48 sps:$4 sm:$0xff]   ;;  %v7808_v8 = vld [vmem:[%s10417_s1 + $0xeb0] ss:$48 sps:$4 sm:$0xff]  }
 0x211   : > { %v9766_v24 = vadd.f32 %v3493_v10, %v3453_v19  ;;  %5231 = vmatpush2.bf16.msra.mxu1 %v7757_v9  ;;  %v3496_v29 = vpop.f32.mrf.mxu0  ;;  %5154 = vmatprep.subr.bf16.mxu0 %v7762_v14  ;;  %v7811_v9 = vld [vmem:[%s10417_s1 + $0xf78] ss:$48 sps:$4 sm:$0xff]   ;;  %v7816_v54 = vld [vmem:[%s10417_s1 + $0xe54] ss:$48 sps:$4 sm:$0xff]   ;;  %v7819_v10 = vld [vmem:[%s10417_s1 + $0xf1c] ss:$48 sps:$4 sm:$0xff]  }
 0x212   : > { %v3455_v28 = vpop.f32.mrf.mxu1  ;;  %5232 = vmatprep.subr.bf16.mxu1 %v7765_v56  ;;  %v7814_v14 = vld [vmem:[%s10417_s1 + $0xe50] ss:$48 sps:$4 sm:$0xff]   ;;  %v7817_v56 = vld [vmem:[%s10417_s1 + $0xf18] ss:$48 sps:$4 sm:$0xff]   ;;  %v7822_v19 = vld [vmem:[%s10417_s1 + $0xdf4] ss:$48 sps:$4 sm:$0xff]  }
 0x213   : > { %v7825_v22 = vld [vmem:[%s10417_s1 + $0xebc] ss:$48 sps:$4 sm:$0xff]   ;;  %v7820_v23 = vld [vmem:[%s10417_s1 + $0xdf0] ss:$48 sps:$4 sm:$0xff]  }
 0x214   : > { %v9780_v13 = vpop.f32.mrf.mxu1  ;;  %5155 = vmatpush2.bf16.msra.mxu0 %v7760_v12  ;;  %v7823_v12 = vld [vmem:[%s10417_s1 + $0xeb8] ss:$48 sps:$4 sm:$0xff]   ;;  %v7831_v28 = vld [vmem:[%s10417_s1 + $0xe5c] ss:$48 sps:$4 sm:$0xff]   ;;  %v7826_v29 = vld [vmem:[%s10417_s1 + $0xd90] ss:$48 sps:$4 sm:$0xff]  }
 0x215   : > { %5233 = vmatpush2.bf16.msra.mxu1 %v7763_v27  ;;  %5156 = vmatprep.subr.bf16.mxu0 %v7768_v18  ;;  %v7828_v27 = vld [vmem:[%s10417_s1 + $0xd94] ss:$48 sps:$4 sm:$0xff]   ;;  %v7829_v18 = vld [vmem:[%s10417_s1 + $0xe58] ss:$48 sps:$4 sm:$0xff]  }
 0x216   : > { %v9789_v35 = vpop.f32.mrf.mxu1  ;;  %5234 = vmatprep.subr.bf16.mxu1 %v7771_v30  ;;  %v7834_v30 = vld [vmem:[%s10417_s1 + $0x1334] ss:$48 sps:$4 sm:$0xff]  }
 0x218   : > { %v3577_v40 = vpop.f32.mrf.mxu1  ;;  %5157 = vmatpush2.bf16.msra.mxu0 %v7766_v31  ;;  %v7837_v31 = vld [vmem:[%s10417_s1 + $0xdfc] ss:$48 sps:$4 sm:$0xff]  }
 0x219   : > { %5235 = vmatpush2.bf16.msra.mxu1 %v7769_v59  ;;  %5261 = vmatprep.subr.bf16.mxu0 %v7777_v38  ;;  %v7832_v59 = vld [vmem:[%s10417_s1 + $0x1330] ss:$48 sps:$4 sm:$0xff]   ;;  %v7843_v38 = vld [vmem:[%s10417_s1 + $0xd9c] ss:$48 sps:$4 sm:$0xff]  }
 0x21a   : > { %v3578_v47 = vpop.f32.mrf.mxu1  ;;  %5236 = vmatprep.subr.bf16.mxu1 %v7774_v36  ;;  %v7840_v36 = vld [vmem:[%s10417_s1 + $0x12d4] ss:$48 sps:$4 sm:$0xff]   ;;  %v7838_v40 = vld [vmem:[%s10417_s1 + $0x12d0] ss:$48 sps:$4 sm:$0xff]  }
 0x21b   : > { %5159 = vmatmul.mubr.bf16.vlgmr.msra.gmra.mxu0 %v9797_v44  ;;  %v7849_v47 = vld [vmem:[%s10417_s1 + $0x133c] ss:$48 sps:$4 sm:$0xff]  }
 0x21c   : > { %5262 = vmatpush1.bf16.msra.mxu0 %v7775_v46  ;;  %5281 = vmatprep.mubr.bf16.mxu0 %v8056_v11  ;;  %v7846_v46 = vld [vmem:[%s10417_s1 + $0x1274] ss:$48 sps:$4 sm:$0xff]  }
 0x21d   : > { %5237 = vmatpush2.bf16.msra.mxu1 %v7772_v45  ;;  %5263 = vmatprep.subr.bf16.mxu0 %v7783_v49  ;;  %v7841_v45 = vld [vmem:[%s10417_s1 + $0xd98] ss:$48 sps:$4 sm:$0xff]  }
 0x21e   : > { %5238 = vmatprep.subr.bf16.mxu1 %v7780_v39  ;;  %v7844_v39 = vld [vmem:[%s10417_s1 + $0x1270] ss:$48 sps:$4 sm:$0xff]   ;;  %v7847_v49 = vld [vmem:[%s10417_s1 + $0x1338] ss:$48 sps:$4 sm:$0xff]  }
 0x220   : > { %5264 = vmatpush1.bf16.msra.mxu0 %v7781_v51  ;;  %v7855_v51 = vld [vmem:[%s10417_s1 + $0x12dc] ss:$48 sps:$4 sm:$0xff]  }
 0x221   : > { %5239 = vmatpush2.bf16.msra.mxu1 %v7778_v50  ;;  %5290 = vmatprep.subr.bf16.mxu0 %v7786_v52  ;;  %v7852_v50 = vld [vmem:[%s10417_s1 + $0x1214] ss:$48 sps:$4 sm:$0xff]  }
 0x222   : > { %5343 = vmatprep.subr.bf16.mxu1 %v7789_v53 }
 0x223   : > { %6948 = vmatmul.mubr.msk.bf16.vlgmr.msra.gmra.mxu0 %vm1755_vm0, %v9605_v3 }
 0x224   : > { %5241 = vmatmul.mubr.bf16.vlgmr.msra.gmra.mxu1 %v9797_v44  ;;  %5291 = vmatpush1.bf16.msra.mxu0 %v7784_v55  ;;  %v7850_v55 = vld [vmem:[%s10417_s1 + $0x1210] ss:$48 sps:$4 sm:$0xff]  }
 0x225   : > { %5344 = vmatpush1.bf16.msra.mxu1 %v7787_v57  ;;  %5292 = vmatprep.subr.bf16.mxu0 %v7792_v58  ;;  %v7853_v57 = vld [vmem:[%s10417_s1 + $0x12d8] ss:$48 sps:$4 sm:$0xff]  }
 0x226   : > { %5345 = vmatprep.subr.bf16.mxu1 %v7795_v62  ;;  %5363 = vmatprep.mubr.bf16.mxu1 %v8056_v11  ;;  %v7858_v62 = vld [vmem:[%s10417_s1 + $0x11b4] ss:$48 sps:$4 sm:$0xff]  }
 0x227   : > { %5322 = vmatprep.mubr.bf16.mxu0 %v9585_v61 }
 0x228   : > { %5293 = vmatpush1.bf16.msra.mxu0 %v7790_v60 }
 0x229   : > { %5346 = vmatpush1.bf16.msra.mxu1 %v7793_v43  ;;  %5294 = vmatprep.subr.bf16.mxu0 %v7798_v1 }
 0x22a   : > { %5372 = vmatprep.subr.bf16.mxu1 %v7801_v2 }
 0x22c   : > { %6949 = vmatmul.mubr.msk.bf16.vlgmr.msra.gmra.mxu1 %vm1755_vm0, %v9605_v3  ;;  %5295 = vmatpush1.bf16.msra.mxu0 %v7796_v0  ;;  %v7856_v0 = vld [vmem:[%s10417_s1 + $0x11b0] ss:$48 sps:$4 sm:$0xff]  }
 0x22d   : > { %5373 = vmatpush1.bf16.msra.mxu1 %v7799_v42  ;;  %5296 = vmatprep.subr.bf16.mxu0 %v7804_v5  ;;  %v7859_v42 = vld [vmem:[%s10417_s1 + $0x1278] ss:$48 sps:$4 sm:$0xff]  }
 0x22e   : > { %5374 = vmatprep.subr.bf16.mxu1 %v7807_v48  ;;  %5404 = vmatprep.mubr.bf16.mxu1 %v9585_v61 }
 0x230   : > { %5297 = vmatpush1.bf16.msra.mxu0 %v7802_v34 }
 0x231   : > { %5375 = vmatpush1.bf16.msra.mxu1 %v7805_v37  ;;  %5298 = vmatprep.subr.bf16.mxu0 %v7810_v6  ;;  %v7862_v37 = vld [vmem:[%s10417_s1 + $0x1150] ss:$48 sps:$4 sm:$0xff]   ;;  %v7865_v6 = vld [vmem:[%s10417_s1 + $0x1218] ss:$48 sps:$4 sm:$0xff]  }
 0x232   : > { %5376 = vmatprep.subr.bf16.mxu1 %v7813_v7 }
 0x234   : > { %5299 = vmatpush1.bf16.msra.mxu0 %v7808_v8 }
 0x235   : > { %5377 = vmatpush1.bf16.msra.mxu1 %v7811_v9  ;;  %5300 = vmatprep.subr.bf16.mxu0 %v7816_v54  ;;  %v7870_v9 = vld [vmem:[%s10417_s1 + $0x10f4] ss:$48 sps:$4 sm:$0xff]  }
 0x236   : > { %5378 = vmatprep.subr.bf16.mxu1 %v7819_v10 }
 0x238   : > { %5301 = vmatpush1.bf16.msra.mxu0 %v7814_v14 }
 0x239   : > { %5379 = vmatpush1.bf16.msra.mxu1 %v7817_v56  ;;  %5302 = vmatprep.subr.bf16.mxu0 %v7822_v19 }
 0x23a   : > { %5380 = vmatprep.subr.bf16.mxu1 %v7825_v22  ;;  %v7868_v22 = vld [vmem:[%s10417_s1 + $0x10f0] ss:$48 sps:$4 sm:$0xff]  }
 0x23c   : > { %5303 = vmatpush1.bf16.msra.mxu0 %v7820_v23  ;;  %v7871_v23 = vld [vmem:[%s10417_s1 + $0x11b8] ss:$48 sps:$4 sm:$0xff]  }
 0x23d   : > { %5381 = vmatpush1.bf16.msra.mxu1 %v7823_v12  ;;  %5304 = vmatprep.subr.bf16.mxu0 %v7828_v27 }
 0x23e   : > { %5382 = vmatprep.subr.bf16.mxu1 %v7831_v28  ;;  %v7879_v28 = vld [vmem:[%s10417_s1 + $0x115c] ss:$48 sps:$4 sm:$0xff]  }
 0x240   : > { %5305 = vmatpush1.bf16.msra.mxu0 %v7826_v29 }
 0x241   : > { %5383 = vmatpush1.bf16.msra.mxu1 %v7829_v18  ;;  %5306 = vmatprep.subr.bf16.mxu0 %v7834_v30  ;;  %v7874_v18 = vld [vmem:[%s10417_s1 + $0x1090] ss:$48 sps:$4 sm:$0xff]   ;;  %v7877_v30 = vld [vmem:[%s10417_s1 + $0x1158] ss:$48 sps:$4 sm:$0xff]  }
 0x242   : > { %5384 = vmatprep.subr.bf16.mxu1 %v7837_v31 }
 0x244   : > { %5307 = vmatpush2.bf16.msra.mxu0 %v7832_v59  ;;  %v7882_v59 = vld [vmem:[%s10417_s1 + $0x10fc] ss:$48 sps:$4 sm:$0xff]  }
 0x245   : > { %5385 = vmatpush1.bf16.msra.mxu1 %v7835_v32  ;;  %5308 = vmatprep.subr.bf16.mxu0 %v7840_v36  ;;  %v7885_v32 = vld [vmem:[%s10417_s1 + $0x13fc] ss:$48 sps:$4 sm:$0xff]  }
 0x246   : > { %5386 = vmatprep.subr.bf16.mxu1 %v7843_v38  ;;  %v7880_v38 = vld [vmem:[%s10417_s1 + $0x10f8] ss:$48 sps:$4 sm:$0xff]  }
 0x248   : > { %5309 = vmatpush2.bf16.msra.mxu0 %v7838_v40  ;;  %v7883_v40 = vld [vmem:[%s10417_s1 + $0x13f8] ss:$48 sps:$4 sm:$0xff]  }
 0x249   : > { %5387 = vmatpush1.bf16.msra.mxu1 %v7841_v45  ;;  %5310 = vmatprep.subr.bf16.mxu0 %v7846_v46  ;;  %v7888_v46 = vld [vmem:[%s10417_s1 + $0x109c] ss:$48 sps:$4 sm:$0xff]  }
 0x24a   : > { %5388 = vmatprep.subr.bf16.mxu1 %v7849_v47  ;;  %v7891_v47 = vld [vmem:[%s10417_s1 + $0x139c] ss:$48 sps:$4 sm:$0xff]  }
 0x24b   : > { %v3532_v52 = vpop.f32.mrf.mxu0 }
 0x24c   : > { %v3533_v53 = vadd.f32 %v3532_v52, %v9233_v17  ;;  %5311 = vmatpush2.bf16.msra.mxu0 %v7844_v39  ;;  %v7861_v17 = vld [vmem:[%s10417_s1 + $0x127c] ss:$48 sps:$4 sm:$0xff]   ;;  %v7886_v39 = vld [vmem:[%s10417_s1 + $0x1098] ss:$48 sps:$4 sm:$0xff]   ;;  %v7892_v52 = vld [vmem:[%s10417_s1 + $0x1040] ss:$48 sps:$4 sm:$0xff]  }
 0x24d   : > { %5389 = vmatpush2.bf16.msra.mxu1 %v7847_v49  ;;  %v3534_v58 = vpop.f32.mrf.mxu0  ;;  %5312 = vmatprep.subr.bf16.mxu0 %v7852_v50  ;;  %v7889_v49 = vld [vmem:[%s10417_s1 + $0x1398] ss:$48 sps:$4 sm:$0xff]   ;;  %v7894_v50 = vld [vmem:[%s10417_s1 + $0x1044] ss:$48 sps:$4 sm:$0xff]  }
 0x24e   : > { %5390 = vmatprep.subr.bf16.mxu1 %v7855_v51  ;;  %v9979_v60 = vadd.f32 %v9780_v13, %v3533_v53  ;;  %v3535_v43 = vadd.f32 %v3534_v58, %v9248_v25  ;;  %v7864_v25 = vld [vmem:[%s10417_s1 + $0x1154] ss:$48 sps:$4 sm:$0xff]   ;;  %v7867_v13 = vld [vmem:[%s10417_s1 + $0x121c] ss:$48 sps:$4 sm:$0xff]   ;;  %v7895_v53 = vld [vmem:[%s10417_s1 + $0x1400] ss:$48 sps:$4 sm:$0xff]  }
 0x24f   : > { %v3536_v1 = vpop.f32.mrf.mxu0  ;;  %v7897_v51 = vld [vmem:[%s10417_s1 + $0x1404] ss:$48 sps:$4 sm:$0xff]   ;;  %v7898_v58 = vld [vmem:[%s10417_s1 + $0xfe0] ss:$48 sps:$4 sm:$0xff]  }
 0x250   : > { %v9983_v2 = vadd.f32 %v9789_v35, %v3535_v43  ;;  %5313 = vmatpush2.bf16.msra.mxu0 %v7850_v55  ;;  %v7900_v55 = vld [vmem:[%s10417_s1 + $0xfe4] ss:$48 sps:$4 sm:$0xff]   ;;  %v7909_v43 = vld [vmem:[%s10417_s1 + $0x104c] ss:$48 sps:$4 sm:$0xff]   ;;  %v7904_v1 = vld [vmem:[%s10417_s1 + $0xf80] ss:$48 sps:$4 sm:$0xff]  }
 0x251   : > { %5391 = vmatpush2.bf16.msra.mxu1 %v7853_v57  ;;  %v3537_v5 = vpop.f32.mrf.mxu0  ;;  %5314 = vmatprep.subr.bf16.mxu0 %v7858_v62  ;;  %v7903_v57 = vld [vmem:[%s10417_s1 + $0x13a4] ss:$48 sps:$4 sm:$0xff]   ;;  %v7901_v62 = vld [vmem:[%s10417_s1 + $0x13a0] ss:$48 sps:$4 sm:$0xff]  }
 0x252   : > { %5392 = vmatprep.subr.bf16.mxu1 %v7861_v17  ;;  %v7906_v17 = vld [vmem:[%s10417_s1 + $0xf84] ss:$48 sps:$4 sm:$0xff]   ;;  %v7915_v5 = vld [vmem:[%s10417_s1 + $0xfec] ss:$48 sps:$4 sm:$0xff]  }
 0x253   : > { %v3655_v48 = vpop.f32.mrf.mxu0 }
 0x254   : > { %v3614_v35 = vpop.f32.mrf.mxu1  ;;  %5315 = vmatpush2.bf16.msra.mxu0 %v7856_v0  ;;  %v7907_v0 = vld [vmem:[%s10417_s1 + $0x1048] ss:$48 sps:$4 sm:$0xff]  }
 0x255   : > { %v3615_v34 = vadd.f32 %v3614_v35, %v9262_v33  ;;  %5393 = vmatpush2.bf16.msra.mxu1 %v7859_v42  ;;  %v3657_v8 = vpop.f32.mrf.mxu0  ;;  %5316 = vmatprep.subr.bf16.mxu0 %v7864_v25  ;;  %v7873_v33 = vld [vmem:[%s10417_s1 + $0x11bc] ss:$48 sps:$4 sm:$0xff]   ;;  %v7912_v42 = vld [vmem:[%s10417_s1 + $0xf24] ss:$48 sps:$4 sm:$0xff]   ;;  %v7910_v25 = vld [vmem:[%s10417_s1 + $0xf20] ss:$48 sps:$4 sm:$0xff]  }
 0x256   : > { %v3616_v7 = vpop.f32.mrf.mxu1  ;;  %5394 = vmatprep.subr.bf16.mxu1 %v7867_v13  ;;  %v7913_v13 = vld [vmem:[%s10417_s1 + $0xfe8] ss:$48 sps:$4 sm:$0xff]   ;;  %v7918_v35 = vld [vmem:[%s10417_s1 + $0xec4] ss:$48 sps:$4 sm:$0xff]  }
 0x257   : > { %v10010_v54 = vadd.f32 %v3655_v48, %v3615_v34  ;;  %v3617_v10 = vadd.f32 %v3616_v7, %v9276_v41  ;;  %v3659_v56 = vpop.f32.mrf.mxu0  ;;  %v7876_v41 = vld [vmem:[%s10417_s1 + $0x1094] ss:$48 sps:$4 sm:$0xff]   ;;  %v7921_v48 = vld [vmem:[%s10417_s1 + $0xf8c] ss:$48 sps:$4 sm:$0xff]   ;;  %v7916_v34 = vld [vmem:[%s10417_s1 + $0xec0] ss:$48 sps:$4 sm:$0xff]  }
 0x258   : > { %v3618_v14 = vpop.f32.mrf.mxu1  ;;  %5317 = vmatpush2.bf16.msra.mxu0 %v7862_v37  ;;  %v7919_v37 = vld [vmem:[%s10417_s1 + $0xf88] ss:$48 sps:$4 sm:$0xff]   ;;  %v7922_v7 = vld [vmem:[%s10417_s1 + $0xe60] ss:$48 sps:$4 sm:$0xff]   ;;  %v7936_v56 = vld [vmem:[%s10417_s1 + $0xda4] ss:$48 sps:$4 sm:$0xff]  }
 0x259   : > { %v10013_v19 = vadd.f32 %v3657_v8, %v3617_v10  ;;  %5395 = vmatpush2.bf16.msra.mxu1 %v7865_v6  ;;  %v3660_v27 = vpop.f32.mrf.mxu0  ;;  %5318 = vmatprep.subr.bf16.mxu0 %v7870_v9  ;;  %v7924_v6 = vld [vmem:[%s10417_s1 + $0xe64] ss:$48 sps:$4 sm:$0xff]   ;;  %v7925_v8 = vld [vmem:[%s10417_s1 + $0xf28] ss:$48 sps:$4 sm:$0xff]   ;;  %v7928_v10 = vld [vmem:[%s10417_s1 + $0xe00] ss:$48 sps:$4 sm:$0xff]  }
 0x25a   : > { %v3619_v12 = vpop.f32.mrf.mxu1  ;;  %5396 = vmatprep.subr.bf16.mxu1 %v7873_v33  ;;  %v7930_v9 = vld [vmem:[%s10417_s1 + $0xe04] ss:$48 sps:$4 sm:$0xff]   ;;  %v7933_v33 = vld [vmem:[%s10417_s1 + $0xecc] ss:$48 sps:$4 sm:$0xff]   ;;  %v7931_v14 = vld [vmem:[%s10417_s1 + $0xec8] ss:$48 sps:$4 sm:$0xff]  }
 0x25b   : > { %v7937_v12 = vld [vmem:[%s10417_s1 + $0xe68] ss:$48 sps:$4 sm:$0xff]   ;;  %v7942_v27 = vld [vmem:[%s10417_s1 + $0x1344] ss:$48 sps:$4 sm:$0xff]  }
 0x25c   : > { %v10027_v29 = vpop.f32.mrf.mxu1  ;;  %5319 = vmatpush2.bf16.msra.mxu0 %v7868_v22  ;;  %v7939_v22 = vld [vmem:[%s10417_s1 + $0xe6c] ss:$48 sps:$4 sm:$0xff]  }
 0x25d   : > { %5397 = vmatpush2.bf16.msra.mxu1 %v7871_v23  ;;  %5320 = vmatprep.subr.bf16.mxu0 %v7876_v41  ;;  %v7934_v23 = vld [vmem:[%s10417_s1 + $0xda0] ss:$48 sps:$4 sm:$0xff]   ;;  %v7945_v41 = vld [vmem:[%s10417_s1 + $0xe0c] ss:$48 sps:$4 sm:$0xff]  }
 0x25e   : > { %v10035_v31 = vpop.f32.mrf.mxu1  ;;  %5398 = vmatprep.subr.bf16.mxu1 %v7879_v28  ;;  %v7940_v28 = vld [vmem:[%s10417_s1 + $0x1340] ss:$48 sps:$4 sm:$0xff]  }
 0x260   : > { %v3741_v36 = vpop.f32.mrf.mxu1  ;;  %5321 = vmatpush2.bf16.msra.mxu0 %v7874_v18  ;;  %v7943_v18 = vld [vmem:[%s10417_s1 + $0xe08] ss:$48 sps:$4 sm:$0xff]  }
 0x261   : > { %5399 = vmatpush2.bf16.msra.mxu1 %v7877_v30  ;;  %5425 = vmatprep.subr.bf16.mxu0 %v7885_v32  ;;  %v7948_v30 = vld [vmem:[%s10417_s1 + $0x12e4] ss:$48 sps:$4 sm:$0xff]   ;;  %v7946_v32 = vld [vmem:[%s10417_s1 + $0x12e0] ss:$48 sps:$4 sm:$0xff]   ;;  %v7949_v36 = vld [vmem:[%s10417_s1 + $0xda8] ss:$48 sps:$4 sm:$0xff]  }
 0x262   : > { %v3742_v45 = vpop.f32.mrf.mxu1  ;;  %5400 = vmatprep.subr.bf16.mxu1 %v7882_v59  ;;  %v7951_v59 = vld [vmem:[%s10417_s1 + $0xdac] ss:$48 sps:$4 sm:$0xff]  }
 0x263   : > { %5323 = vmatmul.mubr.bf16.vlgmr.msra.gmra.mxu0 %v9797_v44  ;;  %v7952_v45 = vld [vmem:[%s10417_s1 + $0x1280] ss:$48 sps:$4 sm:$0xff]  }
 0x264   : > { %5426 = vmatpush1.bf16.msra.mxu0 %v7883_v40  ;;  %5445 = vmatprep.mubr.bf16.mxu0 %v8056_v11  ;;  %v7957_v40 = vld [vmem:[%s10417_s1 + $0x134c] ss:$48 sps:$4 sm:$0xff]  }
 0x265   : > { %5401 = vmatpush2.bf16.msra.mxu1 %v7880_v38  ;;  %5427 = vmatprep.subr.bf16.mxu0 %v7891_v47  ;;  %v7954_v38 = vld [vmem:[%s10417_s1 + $0x1284] ss:$48 sps:$4 sm:$0xff]  }
 0x266   : > { %5402 = vmatprep.subr.bf16.mxu1 %v7888_v46  ;;  %v7955_v46 = vld [vmem:[%s10417_s1 + $0x1348] ss:$48 sps:$4 sm:$0xff]   ;;  %v7960_v47 = vld [vmem:[%s10417_s1 + $0x1224] ss:$48 sps:$4 sm:$0xff]  }
 0x268   : > { %5428 = vmatpush1.bf16.msra.mxu0 %v7889_v49 }
 0x269   : > { %5403 = vmatpush2.bf16.msra.mxu1 %v7886_v39  ;;  %5454 = vmatprep.subr.bf16.mxu0 %v7894_v50  ;;  %v7963_v39 = vld [vmem:[%s10417_s1 + $0x12ec] ss:$48 sps:$4 sm:$0xff]  }
 0x26a   : > { %5507 = vmatprep.subr.bf16.mxu1 %v7897_v51  ;;  %v7958_v51 = vld [vmem:[%s10417_s1 + $0x1220] ss:$48 sps:$4 sm:$0xff]  }
 0x26b   : > { %6950 = vmatmul.mubr.msk.bf16.vlgmr.msra.gmra.mxu0 %vm1755_vm0, %v9605_v3 }
 0x26c   : > { %5405 = vmatmul.mubr.bf16.vlgmr.msra.gmra.mxu1 %v9797_v44  ;;  %5455 = vmatpush1.bf16.msra.mxu0 %v7892_v52  ;;  %v7961_v52 = vld [vmem:[%s10417_s1 + $0x12e8] ss:$48 sps:$4 sm:$0xff]  }
 0x26d   : > { %5508 = vmatpush1.bf16.msra.mxu1 %v7895_v53  ;;  %5456 = vmatprep.subr.bf16.mxu0 %v7900_v55  ;;  %v7966_v55 = vld [vmem:[%s10417_s1 + $0x11c4] ss:$48 sps:$4 sm:$0xff]  }
 0x26e   : > { %5509 = vmatprep.subr.bf16.mxu1 %v7903_v57  ;;  %5527 = vmatprep.mubr.bf16.mxu1 %v8056_v11 }
 0x26f   : > { %5486 = vmatprep.mubr.bf16.mxu0 %v9585_v61 }
 0x270   : > { %5457 = vmatpush1.bf16.msra.mxu0 %v7898_v58 }
 0x271   : > { %5510 = vmatpush1.bf16.msra.mxu1 %v7901_v62  ;;  %5458 = vmatprep.subr.bf16.mxu0 %v7906_v17 }
 0x272   : > { %5536 = vmatprep.subr.bf16.mxu1 %v7909_v43  ;;  %v7964_v43 = vld [vmem:[%s10417_s1 + $0x11c0] ss:$48 sps:$4 sm:$0xff]  }
 0x274   : > { %6951 = vmatmul.mubr.msk.bf16.vlgmr.msra.gmra.mxu1 %vm1755_vm0, %v9605_v3  ;;  %5459 = vmatpush1.bf16.msra.mxu0 %v7904_v1  ;;  %v7967_v1 = vld [vmem:[%s10417_s1 + $0x1288] ss:$48 sps:$4 sm:$0xff]  }
 0x275   : > { %5537 = vmatpush1.bf16.msra.mxu1 %v7907_v0  ;;  %5460 = vmatprep.subr.bf16.mxu0 %v7912_v42 }
 0x276   : > { %5538 = vmatprep.subr.bf16.mxu1 %v7915_v5  ;;  %5568 = vmatprep.mubr.bf16.mxu1 %v9585_v61  ;;  %v7927_v61 = vld [vmem:[%s10417_s1 + $0xf2c] ss:$48 sps:$4 sm:$0xff]  }
 0x278   : > { %5461 = vmatpush1.bf16.msra.mxu0 %v7910_v25  ;;  %v7970_v25 = vld [vmem:[%s10417_s1 + $0x1160] ss:$48 sps:$4 sm:$0xff]  }
 0x279   : > { %5539 = vmatpush1.bf16.msra.mxu1 %v7913_v13  ;;  %5462 = vmatprep.subr.bf16.mxu0 %v7918_v35  ;;  %v7973_v13 = vld [vmem:[%s10417_s1 + $0x1228] ss:$48 sps:$4 sm:$0xff]  }
 0x27a   : > { %5540 = vmatprep.subr.bf16.mxu1 %v7921_v48 }
 0x27c   : > { %5463 = vmatpush1.bf16.msra.mxu0 %v7916_v34  ;;  %v7978_v34 = vld [vmem:[%s10417_s1 + $0x1104] ss:$48 sps:$4 sm:$0xff]  }
 0x27d   : > { %5541 = vmatpush1.bf16.msra.mxu1 %v7919_v37  ;;  %5464 = vmatprep.subr.bf16.mxu0 %v7924_v6 }
 0x27e   : > { %5542 = vmatprep.subr.bf16.mxu1 %v7927_v61 }
 0x280   : > { %5465 = vmatpush1.bf16.msra.mxu0 %v7922_v7 }
 0x281   : > { %5543 = vmatpush1.bf16.msra.mxu1 %v7925_v8  ;;  %5466 = vmatprep.subr.bf16.mxu0 %v7930_v9  ;;  %v7976_v9 = vld [vmem:[%s10417_s1 + $0x1100] ss:$48 sps:$4 sm:$0xff]  }
 0x282   : > { %5544 = vmatprep.subr.bf16.mxu1 %v7933_v33  ;;  %v7979_v33 = vld [vmem:[%s10417_s1 + $0x11c8] ss:$48 sps:$4 sm:$0xff]  }
 0x284   : > { %5467 = vmatpush1.bf16.msra.mxu0 %v7928_v10 }
 0x285   : > { %5545 = vmatpush1.bf16.msra.mxu1 %v7931_v14  ;;  %5468 = vmatprep.subr.bf16.mxu0 %v7936_v56  ;;  %v7987_v56 = vld [vmem:[%s10417_s1 + $0x116c] ss:$48 sps:$4 sm:$0xff]  }
 0x286   : > { %5546 = vmatprep.subr.bf16.mxu1 %v7939_v22 }
 0x288   : > { %5469 = vmatpush1.bf16.msra.mxu0 %v7934_v23  ;;  %v7982_v23 = vld [vmem:[%s10417_s1 + $0x10a0] ss:$48 sps:$4 sm:$0xff]  }
 0x289   : > { %5547 = vmatpush1.bf16.msra.mxu1 %v7937_v12  ;;  %5470 = vmatprep.subr.bf16.mxu0 %v7942_v27  ;;  %v7985_v12 = vld [vmem:[%s10417_s1 + $0x1168] ss:$48 sps:$4 sm:$0xff]  }
 0x28a   : > { %5548 = vmatprep.subr.bf16.mxu1 %v7945_v41  ;;  %v7990_v41 = vld [vmem:[%s10417_s1 + $0x110c] ss:$48 sps:$4 sm:$0xff]  }
 0x28c   : > { %5471 = vmatpush2.bf16.msra.mxu0 %v7940_v28  ;;  %v7993_v28 = vld [vmem:[%s10417_s1 + $0x140c] ss:$48 sps:$4 sm:$0xff]  }
 0x28d   : > { %5549 = vmatpush1.bf16.msra.mxu1 %v7943_v18  ;;  %5472 = vmatprep.subr.bf16.mxu0 %v7948_v30  ;;  %v7988_v30 = vld [vmem:[%s10417_s1 + $0x1108] ss:$48 sps:$4 sm:$0xff]  }
 0x28e   : > { %5550 = vmatprep.subr.bf16.mxu1 %v7951_v59  ;;  %v7991_v59 = vld [vmem:[%s10417_s1 + $0x1408] ss:$48 sps:$4 sm:$0xff]  }
 0x290   : > { %5473 = vmatpush2.bf16.msra.mxu0 %v7946_v32 }
 0x291   : > { %5551 = vmatpush1.bf16.msra.mxu1 %v7949_v36  ;;  %5474 = vmatprep.subr.bf16.mxu0 %v7954_v38  ;;  %v7996_v36 = vld [vmem:[%s10417_s1 + $0x10ac] ss:$48 sps:$4 sm:$0xff]  }
 0x292   : > { %5552 = vmatprep.subr.bf16.mxu1 %v7957_v40  ;;  %v7999_v38 = vld [vmem:[%s10417_s1 + $0x13ac] ss:$48 sps:$4 sm:$0xff]   ;;  %v7994_v40 = vld [vmem:[%s10417_s1 + $0x10a8] ss:$48 sps:$4 sm:$0xff]  }
 0x293   : > { %v3696_v49 = vpop.f32.mrf.mxu0 }
 0x294   : > { %v3697_v50 = vadd.f32 %v3696_v49, %v9473_v63  ;;  %5475 = vmatpush2.bf16.msra.mxu0 %v7952_v45  ;;  %v7969_v63 = vld [vmem:[%s10417_s1 + $0x128c] ss:$48 sps:$4 sm:$0xff]   ;;  %v7997_v45 = vld [vmem:[%s10417_s1 + $0x13a8] ss:$48 sps:$4 sm:$0xff]   ;;  %v10312_v49 = vld [vmem:[%s10418_s2] sm:$0xff] }
 0x295   : > { %5553 = vmatpush2.bf16.msra.mxu1 %v7955_v46  ;;  %v3698_v53 = vpop.f32.mrf.mxu0  ;;  %5476 = vmatprep.subr.bf16.mxu0 %v7960_v47  ;;  %v5632_v46 = vlaneseq }
 0x296   : > { %5554 = vmatprep.subr.bf16.mxu1 %v7963_v39  ;;  %v10223_v57 = vadd.f32 %v10027_v29, %v3697_v50  ;;  %v3699_v58 = vadd.f32 %v3698_v53, %v9488_v4  ;;  %v7972_v4 = vld [vmem:[%s10417_s1 + $0x1164] ss:$48 sps:$4 sm:$0xff]   ;;  %v7975_v29 = vld [vmem:[%s10417_s1 + $0x122c] ss:$48 sps:$4 sm:$0xff]  }
 0x297   : > { %v3700_v62 = vpop.f32.mrf.mxu0  ;;  %v10306_v47 = vshrl.u32 %v5632_v46, 7 }
 0x298   : > { %v10227_v17 = vadd.f32 %v10035_v31, %v3699_v58  ;;  %5477 = vmatpush2.bf16.msra.mxu0 %v7958_v51 }
 0x299   : > { %5555 = vmatpush2.bf16.msra.mxu1 %v7961_v52  ;;  %v3701_v0 = vpop.f32.mrf.mxu0  ;;  %5478 = vmatprep.subr.bf16.mxu0 %v7966_v55  ;;  %v5634_v39 = vsub.s32 0, %v10306_v47  ;;  %v5638_v50 = vsub.s32 1, %v10306_v47 }
 0x29a   : > { %5556 = vmatprep.subr.bf16.mxu1 %v7969_v63 }
 0x29b   : > { %v3819_v42 = vpop.f32.mrf.mxu0  ;;  %v5639_v55 = vrot.slane %v10312_v49, %v5638_v50 }
 0x29c   : > { %v3778_v31 = vpop.f32.mrf.mxu1  ;;  %5479 = vmatpush2.bf16.msra.mxu0 %v7964_v43  ;;  %v5642_v43 = vsub.s32 2, %v10306_v47 }
 0x29d   : > { %v3779_v5 = vadd.f32 %v3778_v31, %v9502_v15  ;;  %5557 = vmatpush2.bf16.msra.mxu1 %v7967_v1  ;;  %v3821_v48 = vpop.f32.mrf.mxu0  ;;  %5480 = vmatprep.subr.bf16.mxu0 %v7972_v4  ;;  %v7981_v15 = vld [vmem:[%s10417_s1 + $0x11cc] ss:$48 sps:$4 sm:$0xff]  }
 0x29e   : > { %v3780_v35 = vpop.f32.mrf.mxu1  ;;  %5558 = vmatprep.subr.bf16.mxu1 %v7975_v29 }
 0x29f   : > { %v10254_v37 = vadd.f32 %v3819_v42, %v3779_v5  ;;  %v3781_v6 = vadd.f32 %v3780_v35, %v9516_v26  ;;  %v3823_v7 = vpop.f32.mrf.mxu0  ;;  %v7984_v26 = vld [vmem:[%s10417_s1 + $0x10a4] ss:$48 sps:$4 sm:$0xff]  }
 0x2a0   : > { %v3782_v61 = vpop.f32.mrf.mxu1  ;;  %5481 = vmatpush2.bf16.msra.mxu0 %v7970_v25 }
 0x2a1   : > { %v10257_v8 = vadd.f32 %v3821_v48, %v3781_v6  ;;  %5559 = vmatpush2.bf16.msra.mxu1 %v7973_v13  ;;  %v3824_v14 = vpop.f32.mrf.mxu0  ;;  %5482 = vmatprep.subr.bf16.mxu0 %v7978_v34 }
 0x2a2   : > { %v3783_v10 = vpop.f32.mrf.mxu1  ;;  %5560 = vmatprep.subr.bf16.mxu1 %v7981_v15 }
 0x2a4   : > { %v5201_v22 = vpop.f32.mrf.mxu1  ;;  %5483 = vmatpush2.bf16.msra.mxu0 %v7976_v9 }
 0x2a5   : > { %5561 = vmatpush2.bf16.msra.mxu1 %v7979_v33  ;;  %5484 = vmatprep.subr.bf16.mxu0 %v7984_v26  ;;  %v5650_v26 = vsub.s32 4, %v10306_v47 }
 0x2a6   : > { %v5203_v27 = vpop.f32.mrf.mxu1  ;;  %5562 = vmatprep.subr.bf16.mxu1 %v7987_v56  ;;  %v5654_v56 = vsub.s32 5, %v10306_v47 }
 0x2a8   : > { %v5205_v18 = vpop.f32.mrf.mxu1  ;;  %5485 = vmatpush2.bf16.msra.mxu0 %v7982_v23 }
 0x2a9   : > { %5563 = vmatpush2.bf16.msra.mxu1 %v7985_v12  ;;  %5589 = vmatprep.subr.bf16.mxu0 %v7993_v28  ;;  %v5651_v12 = vrot.slane %v10312_v49, %v5650_v26  ;;  %v5655_v28 = vrot.slane %v10312_v49, %v5654_v56 }
 0x2aa   : > { %v5206_v32 = vpop.f32.mrf.mxu1  ;;  %5564 = vmatprep.subr.bf16.mxu1 %v7990_v41 }
 0x2ab   : > { %5487 = vmatmul.mubr.bf16.vlgmr.msra.gmra.mxu0 %v9797_v44  ;;  %v5658_v32 = vsub.s32 6, %v10306_v47 }
 0x2ac   : > { %5590 = vmatpush1.bf16.msra.mxu0 %v7991_v59  ;;  %5609 = vmatprep.mubr.bf16.mxu0 %v8056_v11 }
 0x2ad   : > { %5565 = vmatpush2.bf16.msra.mxu1 %v7988_v30  ;;  %5591 = vmatprep.subr.bf16.mxu0 %v7999_v38 }
 0x2ae   : > { %5566 = vmatprep.subr.bf16.mxu1 %v7996_v36 }
 0x2b0   : > { %5592 = vmatpush1.bf16.msra.mxu0 %v7997_v45 }
 0x2b1   : > { %5567 = vmatpush2.bf16.msra.mxu1 %v7994_v40  ;;  %v5662_v40 = vsub.s32 7, %v10306_v47 }
 0x2b3   : > { %6952 = vmatmul.mubr.msk.bf16.vlgmr.msra.gmra.mxu0 %vm1755_vm0, %v9605_v3  ;;  %v5635_v3 = vrot.slane %v10312_v49, %v5634_v39 }
 0x2b4   : > { %5569 = vmatmul.mubr.bf16.vlgmr.msra.gmra.mxu1 %v9797_v44 }
 0x2db   : > { %v5160_v11 = vpop.f32.mrf.mxu0 }
 0x2dc   : > { %v5202_v51 = vadd.f32 %v5201_v22, %v5160_v11 }
 0x2dd   : > { %v5162_v44 = vpop.f32.mrf.mxu0 }
 0x2de   : > { %v5618_v52 = vadd.f32 %v5202_v51, %v9732_v20  ;;  %v5204_v53 = vadd.f32 %v5203_v27, %v5162_v44  ;;  %v5646_v20 = vsub.s32 3, %v10306_v47 }
 0x2df   : > { %v5164_v63 = vpop.f32.mrf.mxu0 }
 0x2e0   : > { %v5692_v58 = vadd.f32 %v5635_v3, %v5618_v52  ;;  %v5619_v62 = vadd.f32 %v5204_v53, %v9736_v21  ;;  %v5643_v21 = vrot.slane %v10312_v49, %v5642_v43  ;;  %v5647_v35 = vrot.slane %v10312_v49, %v5646_v20 }
 0x2e1   : > { %v5165_v1 = vpop.f32.mrf.mxu0  ;;  %v5663_v52 = vrot.slane %v10312_v49, %v5662_v40 }
 0x2e2   : > { %5704 = vst [vmem:[%s10326_s12] sm:$0xff] %v5692_v58  ;;  %v5693_v0 = vadd.f32 %v5639_v55, %v5619_v62 }
 0x2e3   : > { %v5283_v29 = vpop.f32.mrf.mxu0 }
 0x2e4   : > { %v5242_v4 = vpop.f32.mrf.mxu1  ;;  %5705 = vst [vmem:[%s10326_s12 + $0x8] sm:$0xff] %v5693_v0 }
 0x2e5   : > { %v5284_v31 = vadd.f32 %v5283_v29, %v5242_v4  ;;  %v5285_v5 = vpop.f32.mrf.mxu0 }
 0x2e6   : > { %v5244_v42 = vpop.f32.mrf.mxu1 }
 0x2e7   : > { %v5620_v25 = vadd.f32 %v5284_v31, %v9763_v16  ;;  %v5286_v13 = vadd.f32 %v5285_v5, %v5244_v42  ;;  %v5287_v34 = vpop.f32.mrf.mxu0 }
 0x2e8   : > { %v5246_v48 = vpop.f32.mrf.mxu1 }
 0x2e9   : > { %v5694_v15 = vadd.f32 %v5643_v21, %v5620_v25  ;;  %v5621_v6 = vadd.f32 %v5286_v13, %v9766_v24  ;;  %v5288_v7 = vpop.f32.mrf.mxu0 }
 0x2ea   : > { %v5247_v61 = vpop.f32.mrf.mxu1 }
 0x2eb   : > { %5706 = vst [vmem:[%s10326_s12 + $0x10] sm:$0xff] %v5694_v15  ;;  %v5695_v9 = vadd.f32 %v5647_v35, %v5621_v6 }
 0x2ec   : > { %v5365_v33 = vpop.f32.mrf.mxu1 }
 0x2ed   : > { %5707 = vst [vmem:[%s10326_s12 + $0x18] sm:$0xff] %v5695_v9 }
 0x2ee   : > { %v5367_v10 = vpop.f32.mrf.mxu1 }
 0x2f0   : > { %v5369_v14 = vpop.f32.mrf.mxu1 }
 0x2f2   : > { %v5370_v16 = vpop.f32.mrf.mxu1  ;;  %v5746_v47 = vld [vmem:[%s10326_s12 + $0x10] sm:$0xff] (%p8125_p6) }
 0x2f3   : > { %5747 = vst [vmem:[%s5729_s26 + $0x10] sm:$0xff] (%p8125_p6), %v5746_v47 }
 0x323   : > { %v5324_v22 = vpop.f32.mrf.mxu0 }
 0x324   : > { %v5366_v23 = vadd.f32 %v5365_v33, %v5324_v22 }
 0x325   : > { %v5326_v24 = vpop.f32.mrf.mxu0 }
 0x326   : > { %v5622_v27 = vadd.f32 %v5366_v23, %v9979_v60  ;;  %v5368_v41 = vadd.f32 %v5367_v10, %v5326_v24  ;;  %v5659_v60 = vrot.slane %v10312_v49, %v5658_v32 }
 0x327   : > { %v5328_v18 = vpop.f32.mrf.mxu0 }
 0x328   : > { %v5696_v30 = vadd.f32 %v5651_v12, %v5622_v27  ;;  %v5623_v59 = vadd.f32 %v5368_v41, %v9983_v2 }
 0x329   : > { %v5329_v36 = vpop.f32.mrf.mxu0 }
 0x32a   : > { %6953 = vst [vmem:[%s10326_s12 + $0x20] sm:$0xff] %v5696_v30  ;;  %v5697_v38 = vadd.f32 %v5655_v28, %v5623_v59 }
 0x32b   : > { %v5447_v46 = vpop.f32.mrf.mxu0 }
 0x32c   : > { %v5406_v45 = vpop.f32.mrf.mxu1  ;;  %6954 = vst [vmem:[%s10326_s12 + $0x28] sm:$0xff] %v5697_v38 }
 0x32d   : > { %v5448_v11 = vadd.f32 %v5447_v46, %v5406_v45  ;;  %v5449_v3 = vpop.f32.mrf.mxu0 }
 0x32e   : > { %v5408_v51 = vpop.f32.mrf.mxu1 }
 0x32f   : > { %v5624_v44 = vadd.f32 %v5448_v11, %v10010_v54  ;;  %v5450_v2 = vadd.f32 %v5449_v3, %v5408_v51  ;;  %v5451_v55 = vpop.f32.mrf.mxu0  ;;  %v241_v54 = vld [vmem:[%s10418_s2 + $0x8] sm:$0xf] }
 0x330   : > { %v5410_v53 = vpop.f32.mrf.mxu1  ;;  %v5671_v35 = vrot.slane %v241_v54, %v5638_v50 }
 0x331   : > { %v5698_v63 = vadd.f32 %v5659_v60, %v5624_v44  ;;  %v5625_v58 = vadd.f32 %v5450_v2, %v10013_v19  ;;  %v5452_v1 = vpop.f32.mrf.mxu0  ;;  %v5667_v19 = vrot.slane %v241_v54, %v5634_v39 }
 0x332   : > { %v5411_v62 = vpop.f32.mrf.mxu1 }
 0x333   : > { %6955 = vst [vmem:[%s10326_s12 + $0x30] sm:$0xff] %v5698_v63  ;;  %v5699_v0 = vadd.f32 %v5663_v52, %v5625_v58  ;;  %v5752_v27 = vld [vmem:[%s10326_s12 + $0x28] sm:$0xff] (%p8125_p6) }
 0x334   : > { %v5529_v4 = vpop.f32.mrf.mxu1  ;;  %5753 = vst [vmem:[%s5729_s26 + $0x88] sm:$0xff] (%p8125_p6), %v5752_v27 }
 0x335   : > { %6956 = vst [vmem:[%s10326_s12 + $0x38] sm:$0xff] %v5699_v0 }
 0x336   : > { %v5531_v29 = vpop.f32.mrf.mxu1 }
 0x338   : > { %v5533_v31 = vpop.f32.mrf.mxu1 }
 0x33a   : > { %v5534_v21 = vpop.f32.mrf.mxu1  ;;  %v5754_v41 = vld [vmem:[%s10326_s12 + $0x30] sm:$0xff] (%p8125_p6) }
 0x33b   : > { %5755 = vst [vmem:[%s5729_s26 + $0x90] sm:$0xff] (%p8125_p6), %v5754_v41 }
 0x33c   : > { %v5756_v28 = vld [vmem:[%s10326_s12 + $0x38] sm:$0xff] (%p8125_p6) }
 0x33d   : > { %5757 = vst [vmem:[%s5729_s26 + $0x98] sm:$0xff] (%p8125_p6), %v5756_v28 }
 0x36b   : > { %v5488_v49 = vpop.f32.mrf.mxu0 }
 0x36c   : > { %v5530_v42 = vadd.f32 %v5529_v4, %v5488_v49 }
 0x36d   : > { %v5490_v5 = vpop.f32.mrf.mxu0 }
 0x36e   : > { %v5626_v25 = vadd.f32 %v5530_v42, %v10223_v57  ;;  %v5532_v13 = vadd.f32 %v5531_v29, %v5490_v5  ;;  %v5675_v57 = vrot.slane %v241_v54, %v5642_v43  ;;  %v5748_v43 = vld [vmem:[%s10326_s12 + $0x18] sm:$0xff] (%p8125_p6) }
 0x36f   : > { %v5492_v48 = vpop.f32.mrf.mxu0  ;;  %5749 = vst [vmem:[%s5729_s26 + $0x18] sm:$0xff] (%p8125_p6), %v5748_v43 }
 0x370   : > { %v5700_v34 = vadd.f32 %v5667_v19, %v5626_v25  ;;  %v5627_v15 = vadd.f32 %v5532_v13, %v10227_v17  ;;  %v5679_v17 = vrot.slane %v241_v54, %v5646_v20  ;;  %v5750_v20 = vld [vmem:[%s10326_s12 + $0x20] sm:$0xff] (%p8125_p6) }
 0x371   : > { %v5493_v6 = vpop.f32.mrf.mxu0  ;;  %5751 = vst [vmem:[%s5729_s26 + $0x80] sm:$0xff] (%p8125_p6), %v5750_v20 }
 0x372   : > { %6957 = vst [vmem:[%s10326_s12 + $0x40] sm:$0xff] %v5700_v34  ;;  %v5701_v61 = vadd.f32 %v5671_v35, %v5627_v15 }
 0x373   : > { %v5611_v9 = vpop.f32.mrf.mxu0 }
 0x374   : > { %v5570_v7 = vpop.f32.mrf.mxu1  ;;  %6958 = vst [vmem:[%s10326_s12 + $0x48] sm:$0xff] %v5701_v61 }
 0x375   : > { %v5612_v39 = vadd.f32 %v5611_v9, %v5570_v7  ;;  %v5613_v10 = vpop.f32.mrf.mxu0 }
 0x376   : > { %v5572_v33 = vpop.f32.mrf.mxu1 }
 0x377   : > { %v5628_v50 = vadd.f32 %v5612_v39, %v10254_v37  ;;  %v5614_v14 = vadd.f32 %v5613_v10, %v5572_v33  ;;  %v5615_v26 = vpop.f32.mrf.mxu0  ;;  %v5742_v37 = vld [vmem:[%s10326_s12] sm:$0xff] (%p8125_p6) }
 0x378   : > { %v5574_v16 = vpop.f32.mrf.mxu1  ;;  %5743 = vst [vmem:[%s5729_s26] sm:$0xff] (%p8125_p6), %v5742_v37 }
 0x379   : > { %v5702_v56 = vadd.f32 %v5675_v57, %v5628_v50  ;;  %v5629_v22 = vadd.f32 %v5614_v14, %v10257_v8  ;;  %v5616_v12 = vpop.f32.mrf.mxu0  ;;  %5724 = sbr.rel (!%p8125_p6) target bundleno = 902 (0x386), region = 59  ;;  %v5744_v8 = vld [vmem:[%s10326_s12 + $0x8] sm:$0xff] (%p8125_p6)  ;;  %v5758_v18 = vld [vmem:[%s10326_s12 + $0x40] sm:$0xff] (%p8125_p6) }
 0x37a   : > { %v5575_v23 = vpop.f32.mrf.mxu1  ;;  %5745 = vst [vmem:[%s5729_s26 + $0x8] sm:$0xff] (%p8125_p6), %v5744_v8  ;;  %5759 = vst [vmem:[%s5729_s26 + $0x100] sm:$0xff] (%p8125_p6), %v5758_v18 }
 0x37b   : > { %6959 = vst [vmem:[%s10326_s12 + $0x50] sm:$0xff] %v5702_v56  ;;  %v5703_v24 = vadd.f32 %v5679_v17, %v5629_v22  ;;  %v5760_v30 = vld [vmem:[%s10326_s12 + $0x48] sm:$0xff] (%p8125_p6) }
 0x37c   : > { %5761 = vst [vmem:[%s5729_s26 + $0x108] sm:$0xff] (%p8125_p6), %v5760_v30 }
 0x37d   : > { %6960 = vst [vmem:[%s10326_s12 + $0x58] sm:$0xff] %v5703_v24 }
 0x382   : > { %v5762_v59 = vld [vmem:[%s10326_s12 + $0x50] sm:$0xff] }
 0x383   : > { %5763 = vst [vmem:[%s5729_s26 + $0x110] sm:$0xff] %v5762_v59 }
 0x384   : > { %v5764_v32 = vld [vmem:[%s10326_s12 + $0x58] sm:$0xff] }
 0x385   : > { %5765 = vst [vmem:[%s5729_s26 + $0x118] sm:$0xff] %v5764_v32 }
 0x386 PF: > { %s13_s18 = sadd.s32 1, %s8054_s18   ;;  %s10421_s12 = smov %s8034_s13 }
 0x387   : > { %p10_p12 = scmp.ge.s32.totalorder %s13_s18, 10   ;;  %s10422_s13 = smov %s8133_s27 }
 0x388   : > { %s10423_s14 = smov %s8046_s16  ;;  %s10424_s15 = smov %s8050_s17 }
 0x389   : > { %s10425_s16 = smov %s10428_s19  ;;  %s10426_s17 = smov %s10432_s20 }
 0x38a   :  { %12 = sbr.rel (!%p10_p12) target bundleno = 4 (0x4), region = 119 }

</bundles_post_ra>
